<compile_context>
chip_gen: v6e
topology: v6e:2x2x1
jax: 0.10.0
libtpu: 0.0.40
codegen_flags: <defaults>
</compile_context>

<pallas_src>
import functools

import jax
import jax.numpy as jnp
from jax import lax
from jax.experimental import pallas as pl
from jax.experimental.pallas import tpu as pltpu


def _round_up(x, m):
    return ((x + m - 1) // m) * m


# ----------------------------------------------------------------------------
# Pallas kernel: one output tile of  relu_opt(x @ w.T + b)
#   x tile: (tm, K)  bf16
#   w tile: (tn, K)  bf16   (PyTorch nn.Linear [out, in] layout, NOT transposed)
#   K is covered by a single tile -> single MXU contraction, fused epilogue.
# ----------------------------------------------------------------------------
_NT_DIMS = (((1,), (1,)), ((), ()))   # contract dim 1 of both operands: x @ w.T


def _linear_kernel(x_ref, w_ref, b_ref, o_ref, *, relu):
    acc = lax.dot_general(
        x_ref[...], w_ref[...], _NT_DIMS,
        preferred_element_type=jnp.float32)
    acc = acc + b_ref[...]               # (tm, tn) + (1, tn) broadcast
    if relu:
        acc = jnp.maximum(acc, 0.0)
    o_ref[...] = acc.astype(o_ref.dtype)


def pallas_linear(x, w, b, *, relu=False, out_dtype=jnp.float32,
                  tn=512, trim=True):
    """relu_opt(x @ w.T + b) via a single-pass (no K loop) Pallas TPU GEMM.

    x: [M, K] activations, w: [N, K] weight in PyTorch nn.Linear layout,
    b: [N] or [1, N] bias.  bf16 operands, f32 accumulation, fused bias/ReLU,
    output emitted directly in `out_dtype`.  Padding / casting branches below
    are resolved at trace time; with pre-packed weights they emit no XLA ops.
    With trim=False the (Mp, Np)-padded output is returned so consecutive FC
    layers can chain without pad/slice churn.
    """
    M, K = x.shape
    N, K2 = w.shape
    assert K == K2

    Kp = _round_up(K, 128)                    # single K tile (tk == Kp)
    tm = min(256, _round_up(M, 16))
    Mp = _round_up(M, tm)
    tn = min(tn, _round_up(N, 128))
    Np = _round_up(N, tn)

    x = x.astype(jnp.bfloat16)
    w = w.astype(jnp.bfloat16)                # no-op for pre-packed weights
    if (M, K) != (Mp, Kp):
        x = jnp.pad(x, ((0, Mp - M), (0, Kp - K)))
    if (N, K) != (Np, Kp):
        w = jnp.pad(w, ((0, Np - N), (0, Kp - K)))
    if b.ndim == 1:
        b = b.reshape(1, -1)
    b = b.astype(jnp.float32)
    if b.shape[1] != Np:
        b = jnp.pad(b, ((0, 0), (0, Np - b.shape[1])))

    grid = (Mp // tm, Np // tn)

    out = pl.pallas_call(
        functools.partial(_linear_kernel, relu=relu),
        out_shape=jax.ShapeDtypeStruct((Mp, Np), out_dtype),
        grid_spec=pltpu.PrefetchScalarGridSpec(
            num_scalar_prefetch=0,
            grid=grid,
            in_specs=[
                pl.BlockSpec((tm, Kp), lambda i, j: (i, 0)),
                pl.BlockSpec((tn, Kp), lambda i, j: (j, 0)),
                pl.BlockSpec((1, tn), lambda i, j: (0, j)),
            ],
            out_specs=pl.BlockSpec((tm, tn), lambda i, j: (i, j)),
        ),
        compiler_params=pltpu.CompilerParams(
            dimension_semantics=("parallel", "parallel")),
    )(x, w, b)

    if trim and (M, N) != (Mp, Np):
        out = out[:M, :N]
    return out


# ----------------------------------------------------------------------------
# Tiny convs: intentionally left to XLA's native conv (see header note).
# TODO(synk): no Pallas conv here on purpose — an im2col GEMM for 32-channel
# 3x3 convs wastes most of the MXU and adds per-call overhead.
# ----------------------------------------------------------------------------
def conv2d_relu(x, w, b, *, stride, pad):
    y = lax.conv_general_dilated(
        x, w, window_strides=(stride, stride),
        padding=[(pad, pad), (pad, pad)],
        dimension_numbers=("NCHW", "OIHW", "NCHW"),
        precision=lax.Precision.HIGHEST)
    return jnp.maximum(y + b[None, :, None, None], 0.0)


# ----------------------------------------------------------------------------
# Encoder parameters, one-time packing, and forward
# ----------------------------------------------------------------------------
def init_params(key, label_dim, img_channels=3):
    hidden = 2048

    def uniform(k, shape, fan_in):
        bound = 1.0 / jnp.sqrt(jnp.float32(fan_in))
        return jax.random.uniform(k, shape, jnp.float32, -bound, bound)

    keys = jax.random.split(key, 10)
    p = {}
    p["conv1_w"] = uniform(keys[0], (32, img_channels, 3, 3), img_channels * 9)
    p["conv1_b"] = uniform(keys[1], (32,), img_channels * 9)
    p["conv2_w"] = uniform(keys[2], (32, 32, 3, 3), 32 * 9)
    p["conv2_b"] = uniform(keys[3], (32,), 32 * 9)
    p["conv3_w"] = uniform(keys[4], (32, 32, 3, 3), 32 * 9)
    p["conv3_b"] = uniform(keys[5], (32,), 32 * 9)
    p["fc1_w"] = uniform(keys[6], (hidden, hidden), hidden)        # [out, in]
    p["fc1_b"] = uniform(keys[7], (hidden,), hidden)
    p["fc_out_w"] = uniform(keys[8], (2 * label_dim, hidden), hidden)
    p["fc_out_b"] = uniform(keys[9], (2 * label_dim,), hidden)
    return p


def pack_params(params):
    """One-time packing for the TPU forward:
       * FC weights -> bf16, kept in PyTorch [out, in] layout (never transposed).
       * fc_out weight/bias padded to 128 output rows HERE (not on the hot path).
       * biases stored as f32 row vectors (1, Np)."""
    packed = {k: params[k] for k in
              ("conv1_w", "conv1_b", "conv2_w", "conv2_b", "conv3_w", "conv3_b")}

    packed["fc1_w"] = params["fc1_w"].astype(jnp.bfloat16)          # (2048, 2048)
    packed["fc1_b"] = params["fc1_b"].astype(jnp.float32).reshape(1, -1)

    w, b = params["fc_out_w"], params["fc_out_b"]
    n_out = w.shape[0]
    n_pad = _round_up(n_out, 128)
    packed["fc_out_w"] = jnp.pad(
        w, ((0, n_pad - n_out), (0, 0))).astype(jnp.bfloat16)        # (128, 2048)
    packed["fc_out_b"] = jnp.pad(
        b.astype(jnp.float32), (0, n_pad - n_out)).reshape(1, -1)    # (1, 128)
    return packed


def encoder_forward(packed_params, x, *, n_out):
    """x: [N, C, 64, 64] (NCHW) -> [N, n_out]   (n_out = 2 * label_dim)."""
    p = packed_params
    h1 = conv2d_relu(x, p["conv1_w"], p["conv1_b"], stride=2, pad=0)
    h2 = conv2d_relu(h1, p["conv2_w"], p["conv2_b"], stride=2, pad=0)
    h3 = conv2d_relu(h2, p["conv3_w"], p["conv3_b"], stride=2, pad=1)
    n = h3.shape[0]
    h3f = h3.reshape(n, -1).astype(jnp.bfloat16)   # NCHW flatten == torch .view

    # Pad batch -> Mp=16 once (inside the first call), keep it padded through
    # both FC layers, slice once at the very end.
    h4 = pallas_linear(h3f, p["fc1_w"], p["fc1_b"], relu=True,
                       out_dtype=jnp.bfloat16, tn=512, trim=False)
    out = pallas_linear(h4, p["fc_out_w"], p["fc_out_b"], relu=False,
                        out_dtype=jnp.float32, tn=128, trim=False)
    return out[:n, :n_out]


# ----------------------------------------------------------------------------
# Pure-JAX f32 reference (correctness check only).  The TPU forward uses bf16
# operands, so agreement with this f32 reference is ~1e-2, as expected.
# ----------------------------------------------------------------------------
def _ref_forward(params, x):
    def conv(x, w, b, stride, pad):
        y = lax.conv_general_dilated(
            x, w, window_strides=(stride, stride),
            padding=[(pad, pad), (pad, pad)],
            dimension_numbers=("NCHW", "OIHW", "NCHW"),
            precision=lax.Precision.HIGHEST)
        return jnp.maximum(y + b[None, :, None, None], 0.0)

    h1 = conv(x, params["conv1_w"], params["conv1_b"], 2, 0)
    h2 = conv(h1, params["conv2_w"], params["conv2_b"], 2, 0)
    h3 = conv(h2, params["conv3_w"], params["conv3_b"], 2, 1)
    h3f = h3.reshape(h3.shape[0], -1)
    h4 = jnp.maximum(
        jnp.dot(h3f, params["fc1_w"].T, precision=lax.Precision.HIGHEST)
        + params["fc1_b"], 0.0)
    return (jnp.dot(h4, params["fc_out_w"].T, precision=lax.Precision.HIGHEST)
            + params["fc_out_b"])


if __name__ == "__main__":
    label_dim = 4
    batch = 2
    img_channels = 3

    key = jax.random.PRNGKey(0)
    kx, kp = jax.random.split(key)
    # imsize must be 64 so the conv stack flattens to hidden_size=2048.
    x = jax.random.normal(kx, (batch, img_channels, 64, 64), jnp.float32)
    params = init_params(kp, label_dim, img_channels)
    packed = pack_params(params)          # one-time bf16 packing + fc_out padding

    fwd = jax.jit(functools.partial(encoder_forward, n_out=2 * label_dim))
    out = jax.block_until_ready(fwd(packed, x))
    assert out.shape == (batch, 2 * label_dim), out.shape

    ref = jax.block_until_ready(_ref_forward(params, x))
    assert jnp.allclose(out, ref, rtol=2e-2, atol=2e-2), (
        float(jnp.max(jnp.abs(out - ref))))

    print("KERNEL_OK")
</pallas_src>

<mosaic_0001>
module attributes {stable_mosaic.version = 11 : i64} {
  func.func @_linear_kernel(%arg0: i32, %arg1: i32, %arg2: memref<16x2048xbf16, #tpu.memory_space<vmem>>, %arg3: memref<512x2048xbf16, #tpu.memory_space<vmem>>, %arg4: memref<1x512xf32, #tpu.memory_space<vmem>>, %arg5: memref<16x512xbf16, #tpu.memory_space<vmem>>) attributes {dimension_semantics = [#tpu.dimension_semantics<parallel>, #tpu.dimension_semantics<parallel>], iteration_bounds = array<i64: 1, 4>, scalar_prefetch = 0 : i64, scratch_operands = 0 : i64, tpu.core_type = #tpu.core_type<tc>, window_params = [{transform_indices = @transform_0, window_bounds = array<i64: 16, 2048>}, {transform_indices = @transform_1, window_bounds = array<i64: 512, 2048>}, {transform_indices = @transform_2, window_bounds = array<i64: 1, 512>}, {transform_indices = @transform_3, window_bounds = array<i64: 16, 512>}]} {
    %c0 = arith.constant 0 : index
    %c0_0 = arith.constant 0 : index
    %0 = vector.load %arg2[%c0, %c0_0] : memref<16x2048xbf16, #tpu.memory_space<vmem>>, vector<16x2048xbf16>
    %c0_1 = arith.constant 0 : index
    %c0_2 = arith.constant 0 : index
    %1 = vector.load %arg3[%c0_1, %c0_2] : memref<512x2048xbf16, #tpu.memory_space<vmem>>, vector<512x2048xbf16>
    %cst = arith.constant dense<0.000000e+00> : vector<16x512xf32>
    %2 = tpu.matmul %0, %1, %cst {dimension_numbers = #tpu.dot_dimension_numbers<[1], [1], [0], [0], [0, 0, 1, 0], [], []>} : vector<16x2048xbf16>, vector<512x2048xbf16>, vector<16x512xf32> -> vector<16x512xf32>
    %c0_3 = arith.constant 0 : index
    %c0_4 = arith.constant 0 : index
    %3 = vector.load %arg4[%c0_3, %c0_4] : memref<1x512xf32, #tpu.memory_space<vmem>>, vector<1x512xf32>
    %4 = vector.broadcast %3 : vector<1x512xf32> to vector<16x512xf32>
    %5 = arith.addf %2, %4 : vector<16x512xf32>
    %cst_5 = arith.constant 0.000000e+00 : f32
    %6 = vector.broadcast %cst_5 : f32 to vector<16x512xf32>
    %7 = arith.maximumf %5, %6 : vector<16x512xf32>
    %8 = arith.truncf %7 : vector<16x512xf32> to vector<16x512xbf16>
    %c0_6 = arith.constant 0 : index
    %c0_7 = arith.constant 0 : index
    %9 = vector.load %arg5[%c0_6, %c0_7] : memref<16x512xbf16, #tpu.memory_space<vmem>>, vector<16x512xbf16>
    tpu.vector_store %arg5[%c0_6, %c0_7], %8 {strides = array<i32>} : memref<16x512xbf16, #tpu.memory_space<vmem>>, vector<16x512xbf16>,
    return
  }
  func.func @transform_0(%arg0: i32, %arg1: i32) -> (i32, i32) {
    %c0_i32 = arith.constant 0 : i32
    %c0_i32_0 = arith.constant 0 : i32
    return %arg0, %c0_i32 : i32, i32
  }
  func.func @transform_1(%arg0: i32, %arg1: i32) -> (i32, i32) {
    %c0_i32 = arith.constant 0 : i32
    %c0_i32_0 = arith.constant 0 : i32
    return %arg1, %c0_i32 : i32, i32
  }
  func.func @transform_2(%arg0: i32, %arg1: i32) -> (i32, i32) {
    %c0_i32 = arith.constant 0 : i32
    %c0_i32_0 = arith.constant 0 : i32
    return %c0_i32, %arg1 : i32, i32
  }
  func.func @transform_3(%arg0: i32, %arg1: i32) -> (i32, i32) {
    %c0_i32 = arith.constant 0 : i32
    return %arg0, %arg1 : i32, i32
  }
}

module attributes {stable_mosaic.version = 11 : i64} {
  func.func @_linear_kernel(%arg0: i32, %arg1: i32, %arg2: memref<16x2048xbf16, #tpu.memory_space<vmem>>, %arg3: memref<128x2048xbf16, #tpu.memory_space<vmem>>, %arg4: memref<1x128xf32, #tpu.memory_space<vmem>>, %arg5: memref<16x128xf32, #tpu.memory_space<vmem>>) attributes {dimension_semantics = [#tpu.dimension_semantics<parallel>, #tpu.dimension_semantics<parallel>], iteration_bounds = array<i64: 1, 1>, scalar_prefetch = 0 : i64, scratch_operands = 0 : i64, tpu.core_type = #tpu.core_type<tc>, window_params = [{transform_indices = @transform_0, window_bounds = array<i64: 16, 2048>}, {transform_indices = @transform_1, window_bounds = array<i64: 128, 2048>}, {transform_indices = @transform_2, window_bounds = array<i64: 1, 128>}, {transform_indices = @transform_3, window_bounds = array<i64: 16, 128>}]} {
    %c0 = arith.constant 0 : index
    %c0_0 = arith.constant 0 : index
    %0 = vector.load %arg2[%c0, %c0_0] : memref<16x2048xbf16, #tpu.memory_space<vmem>>, vector<16x2048xbf16>
    %c0_1 = arith.constant 0 : index
    %c0_2 = arith.constant 0 : index
    %1 = vector.load %arg3[%c0_1, %c0_2] : memref<128x2048xbf16, #tpu.memory_space<vmem>>, vector<128x2048xbf16>
    %cst = arith.constant dense<0.000000e+00> : vector<16x128xf32>
    %2 = tpu.matmul %0, %1, %cst {dimension_numbers = #tpu.dot_dimension_numbers<[1], [1], [0], [0], [0, 0, 1, 0], [], []>} : vector<16x2048xbf16>, vector<128x2048xbf16>, vector<16x128xf32> -> vector<16x128xf32>
    %c0_3 = arith.constant 0 : index
    %c0_4 = arith.constant 0 : index
    %3 = vector.load %arg4[%c0_3, %c0_4] : memref<1x128xf32, #tpu.memory_space<vmem>>, vector<1x128xf32>
    %4 = vector.broadcast %3 : vector<1x128xf32> to vector<16x128xf32>
    %5 = arith.addf %2, %4 : vector<16x128xf32>
    %c0_5 = arith.constant 0 : index
    %c0_6 = arith.constant 0 : index
    %6 = vector.load %arg5[%c0_5, %c0_6] : memref<16x128xf32, #tpu.memory_space<vmem>>, vector<16x128xf32>
    tpu.vector_store %arg5[%c0_5, %c0_6], %5 {strides = array<i32>} : memref<16x128xf32, #tpu.memory_space<vmem>>, vector<16x128xf32>,
    return
  }
  func.func @transform_0(%arg0: i32, %arg1: i32) -> (i32, i32) {
    %c0_i32 = arith.constant 0 : i32
    %c0_i32_0 = arith.constant 0 : i32
    return %arg0, %c0_i32 : i32, i32
  }
  func.func @transform_1(%arg0: i32, %arg1: i32) -> (i32, i32) {
    %c0_i32 = arith.constant 0 : i32
    %c0_i32_0 = arith.constant 0 : i32
    return %arg1, %c0_i32 : i32, i32
  }
  func.func @transform_2(%arg0: i32, %arg1: i32) -> (i32, i32) {
    %c0_i32 = arith.constant 0 : i32
    %c0_i32_0 = arith.constant 0 : i32
    return %c0_i32, %arg1 : i32, i32
  }
  func.func @transform_3(%arg0: i32, %arg1: i32) -> (i32, i32) {
    %c0_i32 = arith.constant 0 : i32
    return %arg0, %arg1 : i32, i32
  }
}

</mosaic_0001>

<bundles_post_ra>
// kernel: encoder_forward.2
= control target key start
LH: loop header
LB: loop body
LE: loop exit
PB: predicated region body
PF: predicated region fallthrough
CT: control target
= control target key end

     0   :  { %s4921_s12 = smov 0   ;;  %s4923_s13 = smov 0   ;;  %s5652_s0 = inlined_call_operand.vmem [shape: bf16[16,2048], index: 0, kind: input, shape index: {}]   ;;  %s5653_s1 = inlined_call_operand.vmem [shape: bf16[2048,2048], index: 1, kind: input, shape index: {}]   ;;  %s5654_s2 = inlined_call_operand.vmem [shape: f32[1,2048], index: 2, kind: input, shape index: {}]   ;;  %s5655_s3 = inlined_call_operand.vmem [shape: bf16[16,2048], index: 3, kind: output, shape index: {}]  }
   0x1   :  { %s4925_s14 = smov 0   ;;  %s4927_s15 = smov 0  }
   0x2   :  { %s4929_s16 = smov 0  }
   0x3 LB: > { %s4266_s17 = sadd.s32 4294967295, %s4899_s16   ;;  %s22_s18 = sadd.s32 1, %s4895_s15  ;;  %s4899_s16 = sphi %s4929_s16, %s13_s16   ;;  %s4895_s15 = sphi %s4927_s15, %s5660_s15   ;;  %s4891_s14 = sphi %s4925_s14, %s5659_s14   ;;  %s4887_s13 = sphi %s4923_s13, %s5658_s13   ;;  %s4883_s12 = sphi %s4921_s12, %s5657_s12  }
   0x4   : > { %p23_p0 = scmp.ge.s32.totalorder %s22_s18, 4  ;;  %s112_s19 = sadd.s32 1, %s4887_s13 }
   0x5   : > { %p122_p1 = scmp.ne.s32.totalorder %s4887_s13, %s4883_s12  ;;  %p123_p2 = scmp.eq.s32.totalorder %s4266_s17, 3 }
   0x6   : > { %s5662_s18 = smov (%p23_p0, %s22_s18), 0  ;;  %p4271_p4 = scmp.ge.s32.totalorder %s4899_s16, 1 }
   0x7   : > { %p4953_p3 = por %p123_p2, %p122_p1  ;;  %s108_s21 = ssub.s32 %s4895_s15, %s5662_s18 }
   0x8   : > { %p175_p5 = scmp.lt.s32.totalorder %s4899_s16, 5  ;;  %p110_p6 = scmp.eq.s32.totalorder %s108_s21, 0 }
   0xa   : > { %p176_p7 = pnand %p4271_p4, %p175_p5 }
   0xb   : > { %s4962_s22 = scalar_select %p110_p6, %s4887_s13, %s112_s19  }
   0xc   : > { %179 = sbr.rel (%p176_p7) target bundleno = 1264 (0x4f0), region = 32  ;;  %s4273_s23 = sshll.u32 (!%p176_p7), %s4891_s14, 6 }
   0xd   : > { %p217_p8 = scmp.lt.s32.totalorder (!%p176_p7), %s4273_s23, 255  ;;  %s206_s27 = sand.u32 (!%p176_p7), 1, %s4883_s12  }
   0xe   : > { %s4272_s28 = sshll.u32 (!%p176_p7), %s206_s27, 5 }
   0xf   : > { %s5460_s12 = scalar_lea.vmem (!%p176_p7), [#allocation2], %s4272_s28 }
  0x11   : > { %s5664_s23 = smov (!%p217_p8, %s4273_s23), 255  ;;  %v230_v0 = vld [vmem:[%s5652_s0] sm:$0xff]  ;;  %v231_v2 = vld [vmem:[%s5652_s0 + $0x8] sm:$0xff] }
  0x12   : > { %v238_v1 = vld [vmem:[%s5652_s0 + $0x40] sm:$0xff]  ;;  %s4814_s30 = sshll.u32 %s5664_s23, 6  ;;  %v239_v5 = vld [vmem:[%s5652_s0 + $0x48] sm:$0xff]  ;;  %s4276_s23 = sshll.u32 %s4891_s14, 2 }
  0x13   : > { %v4974_v3 = vcombine.low %v230_v0, %v238_v1  ;;  %v4976_v4 = vcombine.high %v230_v0, %v238_v1  ;;  %s4984_s8 = scalar_lea.vmem %s5653_s1, %s4814_s30  ;;  %v4986_v6 = vcombine.low %v231_v2, %v239_v5  ;;  %v4988_v7 = vcombine.high %v231_v2, %v239_v5  ;;  %p224_p9 = scmp.lt.s32.totalorder %s4276_s23, 15 }
  0x14   : > { %v358_v8 = vld [vmem:[%s4984_s8 + $0x380] sm:$0xff]  ;;  %v359_v10 = vld [vmem:[%s4984_s8 + $0x388] sm:$0xff] }
  0x15   : > { %v366_v9 = vld [vmem:[%s4984_s8 + $0x3c0] sm:$0xff]  ;;  %3452 = vmatprep.mubr.bf16.mxu0 %v4976_v4  ;;  %v367_v12 = vld [vmem:[%s4984_s8 + $0x3c8] sm:$0xff]  ;;  %3495 = vmatprep.mubr.bf16.mxu1 %v4988_v7  ;;  %s5666_s23 = smov (!%p224_p9, %s4276_s23), 15 }
  0x16   : > { %v4406_v11 = vcombine.high %v358_v8, %v366_v9  ;;  %v4405_v13 = vcombine.low %v358_v8, %v366_v9  ;;  %v342_v14 = vld [vmem:[%s4984_s8 + $0x300] sm:$0xff]  ;;  %v4408_v16 = vcombine.high %v359_v10, %v367_v12  ;;  %v4407_v17 = vcombine.low %v359_v10, %v367_v12  ;;  %v343_v19 = vld [vmem:[%s4984_s8 + $0x308] sm:$0xff]  ;;  %s5434_s26 = scalar_lea.vmem %s5654_s2, %s5666_s23 }
  0x17   : > { %v350_v15 = vld [vmem:[%s4984_s8 + $0x340] sm:$0xff]  ;;  %v351_v20 = vld [vmem:[%s4984_s8 + $0x348] sm:$0xff] }
  0x18   : > { %v4390_v18 = vcombine.high %v342_v14, %v350_v15  ;;  %3420 = vmatprep.subr.bf16.mxu0 %v4406_v11  ;;  %v4392_v21 = vcombine.high %v343_v19, %v351_v20  ;;  %3463 = vmatprep.subr.bf16.mxu1 %v4408_v16  ;;  %v326_v22 = vld [vmem:[%s4984_s8 + $0x280] sm:$0xff]  ;;  %v327_v24 = vld [vmem:[%s4984_s8 + $0x288] sm:$0xff]  ;;  %v4389_v26 = vcombine.low %v342_v14, %v350_v15 }
  0x19   : > { %3421 = vmatpush1.bf16.xpose.msra.mxu0 %v4405_v13  ;;  %3464 = vmatpush1.bf16.xpose.msra.mxu1 %v4407_v17  ;;  %v334_v23 = vld [vmem:[%s4984_s8 + $0x2c0] sm:$0xff]  ;;  %v335_v25 = vld [vmem:[%s4984_s8 + $0x2c8] sm:$0xff]  ;;  %v4391_v27 = vcombine.low %v343_v19, %v351_v20 }
  0x1a   : > { %3422 = vmatprep.subr.bf16.mxu0 %v4390_v18  ;;  %3465 = vmatprep.subr.bf16.mxu1 %v4392_v21  ;;  %v4374_v28 = vcombine.high %v326_v22, %v334_v23  ;;  %v4376_v29 = vcombine.high %v327_v24, %v335_v25  ;;  %v310_v30 = vld [vmem:[%s4984_s8 + $0x200] sm:$0xff]  ;;  %v311_v32 = vld [vmem:[%s4984_s8 + $0x208] sm:$0xff]  ;;  %v4373_v34 = vcombine.low %v326_v22, %v334_v23 }
  0x1b   : > { %v318_v31 = vld [vmem:[%s4984_s8 + $0x240] sm:$0xff]  ;;  %v319_v33 = vld [vmem:[%s4984_s8 + $0x248] sm:$0xff]  ;;  %v4375_v35 = vcombine.low %v327_v24, %v335_v25 }
  0x1c   : > { %v4358_v36 = vcombine.high %v310_v30, %v318_v31  ;;  %v4360_v37 = vcombine.high %v311_v32, %v319_v33  ;;  %v294_v38 = vld [vmem:[%s4984_s8 + $0x180] sm:$0xff]  ;;  %v295_v40 = vld [vmem:[%s4984_s8 + $0x188] sm:$0xff]  ;;  %v4357_v42 = vcombine.low %v310_v30, %v318_v31  ;;  %v4359_v43 = vcombine.low %v311_v32, %v319_v33 }
  0x1d   : > { %v302_v39 = vld [vmem:[%s4984_s8 + $0x1c0] sm:$0xff]  ;;  %v303_v41 = vld [vmem:[%s4984_s8 + $0x1c8] sm:$0xff] }
  0x1e   : > { %v4342_v44 = vcombine.high %v294_v38, %v302_v39  ;;  %v4344_v45 = vcombine.high %v295_v40, %v303_v41  ;;  %v278_v46 = vld [vmem:[%s4984_s8 + $0x100] sm:$0xff]  ;;  %v279_v48 = vld [vmem:[%s4984_s8 + $0x108] sm:$0xff]  ;;  %v4341_v50 = vcombine.low %v294_v38, %v302_v39  ;;  %v4343_v51 = vcombine.low %v295_v40, %v303_v41 }
  0x1f   : > { %v286_v47 = vld [vmem:[%s4984_s8 + $0x140] sm:$0xff]  ;;  %v287_v49 = vld [vmem:[%s4984_s8 + $0x148] sm:$0xff] }
  0x20   : > { %v4326_v52 = vcombine.high %v278_v46, %v286_v47  ;;  %v4328_v53 = vcombine.high %v279_v48, %v287_v49  ;;  %v262_v54 = vld [vmem:[%s4984_s8 + $0x80] sm:$0xff]  ;;  %v263_v56 = vld [vmem:[%s4984_s8 + $0x88] sm:$0xff]  ;;  %v4325_v58 = vcombine.low %v278_v46, %v286_v47  ;;  %v4327_v59 = vcombine.low %v279_v48, %v287_v49 }
  0x21   : > { %3423 = vmatpush1.bf16.xpose.msra.mxu0 %v4389_v26  ;;  %3466 = vmatpush1.bf16.xpose.msra.mxu1 %v4391_v27  ;;  %v270_v55 = vld [vmem:[%s4984_s8 + $0xc0] sm:$0xff]  ;;  %v271_v57 = vld [vmem:[%s4984_s8 + $0xc8] sm:$0xff] }
  0x22   : > { %3424 = vmatprep.subr.bf16.mxu0 %v4374_v28  ;;  %3467 = vmatprep.subr.bf16.mxu1 %v4376_v29  ;;  %v4310_v60 = vcombine.high %v262_v54, %v270_v55  ;;  %v4312_v61 = vcombine.high %v263_v56, %v271_v57  ;;  %v246_v62 = vld [vmem:[%s4984_s8] sm:$0xff]  ;;  %v247_v0 = vld [vmem:[%s4984_s8 + $0x8] sm:$0xff]  ;;  %v4309_v2 = vcombine.low %v262_v54, %v270_v55 }
  0x23   : > { %v254_v63 = vld [vmem:[%s4984_s8 + $0x40] sm:$0xff]  ;;  %v255_v1 = vld [vmem:[%s4984_s8 + $0x48] sm:$0xff]  ;;  %v4311_v5 = vcombine.low %v263_v56, %v271_v57 }
  0x24   : > { %v4294_v8 = vcombine.high %v246_v62, %v254_v63  ;;  %v4296_v9 = vcombine.high %v247_v0, %v255_v1  ;;  %v486_v10 = vld [vmem:[%s4984_s8 + $0x780] sm:$0xff]  ;;  %v487_v12 = vld [vmem:[%s4984_s8 + $0x788] sm:$0xff]  ;;  %v4293_v14 = vcombine.low %v246_v62, %v254_v63  ;;  %v4295_v15 = vcombine.low %v247_v0, %v255_v1 }
  0x25   : > { %v494_v11 = vld [vmem:[%s4984_s8 + $0x7c0] sm:$0xff]  ;;  %v495_v13 = vld [vmem:[%s4984_s8 + $0x7c8] sm:$0xff] }
  0x26   : > { %v4534_v16 = vcombine.high %v486_v10, %v494_v11  ;;  %v4536_v17 = vcombine.high %v487_v12, %v495_v13  ;;  %v470_v18 = vld [vmem:[%s4984_s8 + $0x700] sm:$0xff]  ;;  %v471_v20 = vld [vmem:[%s4984_s8 + $0x708] sm:$0xff]  ;;  %v4533_v22 = vcombine.low %v486_v10, %v494_v11  ;;  %v4535_v23 = vcombine.low %v487_v12, %v495_v13 }
  0x27   : > { %v478_v19 = vld [vmem:[%s4984_s8 + $0x740] sm:$0xff]  ;;  %v479_v21 = vld [vmem:[%s4984_s8 + $0x748] sm:$0xff] }
  0x28   : > { %v4518_v24 = vcombine.high %v470_v18, %v478_v19  ;;  %v4520_v25 = vcombine.high %v471_v20, %v479_v21  ;;  %v454_v26 = vld [vmem:[%s4984_s8 + $0x680] sm:$0xff]  ;;  %v455_v28 = vld [vmem:[%s4984_s8 + $0x688] sm:$0xff]  ;;  %v4517_v30 = vcombine.low %v470_v18, %v478_v19  ;;  %v4519_v31 = vcombine.low %v471_v20, %v479_v21 }
  0x29   : > { %3425 = vmatpush1.bf16.xpose.msra.mxu0 %v4373_v34  ;;  %3468 = vmatpush1.bf16.xpose.msra.mxu1 %v4375_v35  ;;  %v462_v27 = vld [vmem:[%s4984_s8 + $0x6c0] sm:$0xff]  ;;  %v463_v29 = vld [vmem:[%s4984_s8 + $0x6c8] sm:$0xff] }
  0x2a   : > { %3426 = vmatprep.subr.bf16.mxu0 %v4358_v36  ;;  %3469 = vmatprep.subr.bf16.mxu1 %v4360_v37  ;;  %v4502_v32 = vcombine.high %v454_v26, %v462_v27  ;;  %v4504_v33 = vcombine.high %v455_v28, %v463_v29  ;;  %v438_v34 = vld [vmem:[%s4984_s8 + $0x600] sm:$0xff]  ;;  %v439_v36 = vld [vmem:[%s4984_s8 + $0x608] sm:$0xff]  ;;  %v4501_v38 = vcombine.low %v454_v26, %v462_v27  ;;  %v352_v26 = vld [vmem:[%s4984_s8 + $0x350] sm:$0xff] }
  0x2b   : > { %v446_v35 = vld [vmem:[%s4984_s8 + $0x640] sm:$0xff]  ;;  %v447_v37 = vld [vmem:[%s4984_s8 + $0x648] sm:$0xff]  ;;  %v4503_v39 = vcombine.low %v455_v28, %v463_v29  ;;  %v241_v28 = vld [vmem:[%s5652_s0 + $0x58] sm:$0xff] }
  0x2c   : > { %v4486_v40 = vcombine.high %v438_v34, %v446_v35  ;;  %v4488_v41 = vcombine.high %v439_v36, %v447_v37  ;;  %v4485_v46 = vcombine.low %v438_v34, %v446_v35  ;;  %v4487_v47 = vcombine.low %v439_v36, %v447_v37  ;;  %v345_v29 = vld [vmem:[%s4984_s8 + $0x318] sm:$0xff] }
  0x31   : > { %3427 = vmatpush1.bf16.xpose.msra.mxu0 %v4357_v42  ;;  %3470 = vmatpush1.bf16.xpose.msra.mxu1 %v4359_v43  ;;  %v422_v42 = vld [vmem:[%s4984_s8 + $0x580] sm:$0xff] }
  0x32   : > { %3428 = vmatprep.subr.bf16.mxu0 %v4342_v44  ;;  %3471 = vmatprep.subr.bf16.mxu1 %v4344_v45  ;;  %v430_v43 = vld [vmem:[%s4984_s8 + $0x5c0] sm:$0xff]  ;;  %v423_v44 = vld [vmem:[%s4984_s8 + $0x588] sm:$0xff] }
  0x33   : > { %v431_v45 = vld [vmem:[%s4984_s8 + $0x5c8] sm:$0xff]  ;;  %v4470_v48 = vcombine.high %v422_v42, %v430_v43  ;;  %v4469_v54 = vcombine.low %v422_v42, %v430_v43 }
  0x34   : > { %v4472_v49 = vcombine.high %v423_v44, %v431_v45  ;;  %v4471_v55 = vcombine.low %v423_v44, %v431_v45 }
  0x39   : > { %3429 = vmatpush1.bf16.xpose.msra.mxu0 %v4341_v50  ;;  %3472 = vmatpush1.bf16.xpose.msra.mxu1 %v4343_v51  ;;  %v406_v50 = vld [vmem:[%s4984_s8 + $0x500] sm:$0xff] }
  0x3a   : > { %3430 = vmatprep.subr.bf16.mxu0 %v4326_v52  ;;  %3473 = vmatprep.subr.bf16.mxu1 %v4328_v53  ;;  %v414_v51 = vld [vmem:[%s4984_s8 + $0x540] sm:$0xff]  ;;  %v407_v52 = vld [vmem:[%s4984_s8 + $0x508] sm:$0xff] }
  0x3b   : > { %v415_v53 = vld [vmem:[%s4984_s8 + $0x548] sm:$0xff]  ;;  %v4454_v56 = vcombine.high %v406_v50, %v414_v51  ;;  %v4453_v62 = vcombine.low %v406_v50, %v414_v51 }
  0x3c   : > { %v4456_v57 = vcombine.high %v407_v52, %v415_v53  ;;  %v4455_v63 = vcombine.low %v407_v52, %v415_v53 }
  0x41   : > { %3431 = vmatpush1.bf16.xpose.msra.mxu0 %v4325_v58  ;;  %3474 = vmatpush1.bf16.xpose.msra.mxu1 %v4327_v59  ;;  %v390_v58 = vld [vmem:[%s4984_s8 + $0x480] sm:$0xff] }
  0x42   : > { %3432 = vmatprep.subr.bf16.mxu0 %v4310_v60  ;;  %3475 = vmatprep.subr.bf16.mxu1 %v4312_v61  ;;  %v398_v59 = vld [vmem:[%s4984_s8 + $0x4c0] sm:$0xff]  ;;  %v391_v60 = vld [vmem:[%s4984_s8 + $0x488] sm:$0xff] }
  0x43   : > { %v399_v61 = vld [vmem:[%s4984_s8 + $0x4c8] sm:$0xff]  ;;  %v4438_v0 = vcombine.high %v390_v58, %v398_v59  ;;  %v4437_v10 = vcombine.low %v390_v58, %v398_v59 }
  0x44   : > { %v4440_v1 = vcombine.high %v391_v60, %v399_v61  ;;  %v4439_v11 = vcombine.low %v391_v60, %v399_v61 }
  0x49   : > { %3433 = vmatpush1.bf16.xpose.msra.mxu0 %v4309_v2  ;;  %3476 = vmatpush1.bf16.xpose.msra.mxu1 %v4311_v5  ;;  %v374_v2 = vld [vmem:[%s4984_s8 + $0x400] sm:$0xff] }
  0x4a   : > { %3434 = vmatprep.subr.bf16.mxu0 %v4294_v8  ;;  %3477 = vmatprep.subr.bf16.mxu1 %v4296_v9  ;;  %v382_v5 = vld [vmem:[%s4984_s8 + $0x440] sm:$0xff]  ;;  %v375_v8 = vld [vmem:[%s4984_s8 + $0x408] sm:$0xff] }
  0x4b   : > { %v383_v9 = vld [vmem:[%s4984_s8 + $0x448] sm:$0xff]  ;;  %v4422_v12 = vcombine.high %v374_v2, %v382_v5  ;;  %v4421_v18 = vcombine.low %v374_v2, %v382_v5 }
  0x4c   : > { %v4424_v13 = vcombine.high %v375_v8, %v383_v9  ;;  %v4423_v19 = vcombine.low %v375_v8, %v383_v9 }
  0x51   : > { %3435 = vmatpush1.bf16.xpose.msra.mxu0 %v4293_v14  ;;  %3478 = vmatpush1.bf16.xpose.msra.mxu1 %v4295_v15  ;;  %v360_v14 = vld [vmem:[%s4984_s8 + $0x390] sm:$0xff] }
  0x52   : > { %3436 = vmatprep.subr.bf16.mxu0 %v4534_v16  ;;  %3479 = vmatprep.subr.bf16.mxu1 %v4536_v17  ;;  %v368_v15 = vld [vmem:[%s4984_s8 + $0x3d0] sm:$0xff]  ;;  %v361_v16 = vld [vmem:[%s4984_s8 + $0x398] sm:$0xff] }
  0x53   : > { %v369_v17 = vld [vmem:[%s4984_s8 + $0x3d8] sm:$0xff]  ;;  %v4410_v20 = vcombine.high %v360_v14, %v368_v15 }
  0x54   : > { %v4412_v21 = vcombine.high %v361_v16, %v369_v17 }
  0x59   : > { %3437 = vmatpush2.bf16.xpose.msra.mxu0 %v4533_v22  ;;  %3480 = vmatpush2.bf16.xpose.msra.mxu1 %v4535_v23  ;;  %v232_v22 = vld [vmem:[%s5652_s0 + $0x10] sm:$0xff] }
  0x5a   : > { %3438 = vmatprep.subr.bf16.mxu0 %v4518_v24  ;;  %3481 = vmatprep.subr.bf16.mxu1 %v4520_v25  ;;  %v240_v23 = vld [vmem:[%s5652_s0 + $0x50] sm:$0xff]  ;;  %v233_v24 = vld [vmem:[%s5652_s0 + $0x18] sm:$0xff] }
  0x5b   : > { %v344_v25 = vld [vmem:[%s4984_s8 + $0x310] sm:$0xff]  ;;  %v5071_v27 = vcombine.low %v232_v22, %v240_v23  ;;  %v5080_v36 = vcombine.high %v232_v22, %v240_v23  ;;  %v5083_v37 = vcombine.high %v233_v24, %v241_v28 }
  0x5c   : > { %v4394_v34 = vcombine.high %v344_v25, %v352_v26  ;;  %v4393_v42 = vcombine.low %v344_v25, %v352_v26  ;;  %v488_v26 = vld [vmem:[%s4984_s8 + $0x790] sm:$0xff] }
  0x61   : > { %3439 = vmatpush2.bf16.xpose.msra.mxu0 %v4517_v30  ;;  %3482 = vmatpush2.bf16.xpose.msra.mxu1 %v4519_v31  ;;  %v353_v30 = vld [vmem:[%s4984_s8 + $0x358] sm:$0xff]  ;;  %v5078_v31 = vcombine.low %v233_v24, %v241_v28  ;;  %v496_v28 = vld [vmem:[%s4984_s8 + $0x7d0] sm:$0xff] }
  0x62   : > { %3440 = vmatprep.subr.bf16.mxu0 %v4502_v32  ;;  %3483 = vmatprep.subr.bf16.mxu1 %v4504_v33  ;;  %v4409_v32 = vcombine.low %v360_v14, %v368_v15  ;;  %v4411_v33 = vcombine.low %v361_v16, %v369_v17  ;;  %v4396_v35 = vcombine.high %v345_v29, %v353_v30 }
  0x63   : > { %v4395_v43 = vcombine.low %v345_v29, %v353_v30  ;;  %v489_v29 = vld [vmem:[%s4984_s8 + $0x798] sm:$0xff] }
  0x64   : > { %v497_v30 = vld [vmem:[%s4984_s8 + $0x7d8] sm:$0xff] }
  0x69   : > { %3441 = vmatpush2.bf16.xpose.msra.mxu0 %v4501_v38  ;;  %3484 = vmatpush2.bf16.xpose.msra.mxu1 %v4503_v39  ;;  %v328_v38 = vld [vmem:[%s4984_s8 + $0x290] sm:$0xff] }
  0x6a   : > { %3442 = vmatprep.subr.bf16.mxu0 %v4486_v40  ;;  %3485 = vmatprep.subr.bf16.mxu1 %v4488_v41  ;;  %v336_v39 = vld [vmem:[%s4984_s8 + $0x2d0] sm:$0xff]  ;;  %v329_v40 = vld [vmem:[%s4984_s8 + $0x298] sm:$0xff] }
  0x6b   : > { %v337_v41 = vld [vmem:[%s4984_s8 + $0x2d8] sm:$0xff]  ;;  %v4378_v44 = vcombine.high %v328_v38, %v336_v39  ;;  %v4377_v50 = vcombine.low %v328_v38, %v336_v39  ;;  %v472_v38 = vld [vmem:[%s4984_s8 + $0x710] sm:$0xff] }
  0x6c   : > { %v4380_v45 = vcombine.high %v329_v40, %v337_v41  ;;  %v4379_v51 = vcombine.low %v329_v40, %v337_v41  ;;  %v480_v39 = vld [vmem:[%s4984_s8 + $0x750] sm:$0xff]  ;;  %v473_v40 = vld [vmem:[%s4984_s8 + $0x718] sm:$0xff] }
  0x6d   : > { %v481_v41 = vld [vmem:[%s4984_s8 + $0x758] sm:$0xff] }
  0x71   : > { %3443 = vmatpush2.bf16.xpose.msra.mxu0 %v4485_v46  ;;  %3486 = vmatpush2.bf16.xpose.msra.mxu1 %v4487_v47  ;;  %v312_v46 = vld [vmem:[%s4984_s8 + $0x210] sm:$0xff] }
  0x72   : > { %3444 = vmatprep.subr.bf16.mxu0 %v4470_v48  ;;  %3487 = vmatprep.subr.bf16.mxu1 %v4472_v49  ;;  %v320_v47 = vld [vmem:[%s4984_s8 + $0x250] sm:$0xff]  ;;  %v313_v48 = vld [vmem:[%s4984_s8 + $0x218] sm:$0xff] }
  0x73   : > { %v321_v49 = vld [vmem:[%s4984_s8 + $0x258] sm:$0xff]  ;;  %v4362_v52 = vcombine.high %v312_v46, %v320_v47  ;;  %v4361_v58 = vcombine.low %v312_v46, %v320_v47  ;;  %v456_v46 = vld [vmem:[%s4984_s8 + $0x690] sm:$0xff] }
  0x74   : > { %v4364_v53 = vcombine.high %v313_v48, %v321_v49  ;;  %v4363_v59 = vcombine.low %v313_v48, %v321_v49  ;;  %v464_v47 = vld [vmem:[%s4984_s8 + $0x6d0] sm:$0xff]  ;;  %v457_v48 = vld [vmem:[%s4984_s8 + $0x698] sm:$0xff] }
  0x75   : > { %v465_v49 = vld [vmem:[%s4984_s8 + $0x6d8] sm:$0xff] }
  0x79   : > { %3445 = vmatpush2.bf16.xpose.msra.mxu0 %v4469_v54  ;;  %3488 = vmatpush2.bf16.xpose.msra.mxu1 %v4471_v55  ;;  %v296_v54 = vld [vmem:[%s4984_s8 + $0x190] sm:$0xff] }
  0x7a   : > { %3446 = vmatprep.subr.bf16.mxu0 %v4454_v56  ;;  %3489 = vmatprep.subr.bf16.mxu1 %v4456_v57  ;;  %v304_v55 = vld [vmem:[%s4984_s8 + $0x1d0] sm:$0xff]  ;;  %v297_v56 = vld [vmem:[%s4984_s8 + $0x198] sm:$0xff] }
  0x7b   : > { %v305_v57 = vld [vmem:[%s4984_s8 + $0x1d8] sm:$0xff]  ;;  %v4346_v60 = vcombine.high %v296_v54, %v304_v55  ;;  %v4345_v2 = vcombine.low %v296_v54, %v304_v55  ;;  %v440_v54 = vld [vmem:[%s4984_s8 + $0x610] sm:$0xff] }
  0x7c   : > { %v4348_v61 = vcombine.high %v297_v56, %v305_v57  ;;  %v4347_v5 = vcombine.low %v297_v56, %v305_v57  ;;  %v448_v55 = vld [vmem:[%s4984_s8 + $0x650] sm:$0xff]  ;;  %v441_v56 = vld [vmem:[%s4984_s8 + $0x618] sm:$0xff] }
  0x7d   : > { %v449_v57 = vld [vmem:[%s4984_s8 + $0x658] sm:$0xff] }
  0x81   : > { %3447 = vmatpush2.bf16.xpose.msra.mxu0 %v4453_v62  ;;  %3490 = vmatpush2.bf16.xpose.msra.mxu1 %v4455_v63  ;;  %v280_v62 = vld [vmem:[%s4984_s8 + $0x110] sm:$0xff] }
  0x82   : > { %3448 = vmatprep.subr.bf16.mxu0 %v4438_v0  ;;  %3491 = vmatprep.subr.bf16.mxu1 %v4440_v1  ;;  %v288_v63 = vld [vmem:[%s4984_s8 + $0x150] sm:$0xff]  ;;  %v281_v0 = vld [vmem:[%s4984_s8 + $0x118] sm:$0xff] }
  0x83   : > { %v289_v1 = vld [vmem:[%s4984_s8 + $0x158] sm:$0xff]  ;;  %v4330_v8 = vcombine.high %v280_v62, %v288_v63  ;;  %v4329_v14 = vcombine.low %v280_v62, %v288_v63  ;;  %v424_v62 = vld [vmem:[%s4984_s8 + $0x590] sm:$0xff] }
  0x84   : > { %v4332_v9 = vcombine.high %v281_v0, %v289_v1  ;;  %v4331_v15 = vcombine.low %v281_v0, %v289_v1  ;;  %v432_v63 = vld [vmem:[%s4984_s8 + $0x5d0] sm:$0xff]  ;;  %v425_v0 = vld [vmem:[%s4984_s8 + $0x598] sm:$0xff] }
  0x85   : > { %v433_v1 = vld [vmem:[%s4984_s8 + $0x5d8] sm:$0xff] }
  0x89   : > { %3449 = vmatpush2.bf16.xpose.msra.mxu0 %v4437_v10  ;;  %3492 = vmatpush2.bf16.xpose.msra.mxu1 %v4439_v11  ;;  %v264_v10 = vld [vmem:[%s4984_s8 + $0x90] sm:$0xff] }
  0x8a   : > { %3450 = vmatprep.subr.bf16.mxu0 %v4422_v12  ;;  %3493 = vmatprep.subr.bf16.mxu1 %v4424_v13  ;;  %v272_v11 = vld [vmem:[%s4984_s8 + $0xd0] sm:$0xff]  ;;  %v265_v12 = vld [vmem:[%s4984_s8 + $0x98] sm:$0xff] }
  0x8b   : > { %v273_v13 = vld [vmem:[%s4984_s8 + $0xd8] sm:$0xff]  ;;  %v4314_v16 = vcombine.high %v264_v10, %v272_v11  ;;  %v4313_v22 = vcombine.low %v264_v10, %v272_v11  ;;  %v408_v10 = vld [vmem:[%s4984_s8 + $0x510] sm:$0xff] }
  0x8c   : > { %v4316_v17 = vcombine.high %v265_v12, %v273_v13  ;;  %v4315_v23 = vcombine.low %v265_v12, %v273_v13  ;;  %v416_v11 = vld [vmem:[%s4984_s8 + $0x550] sm:$0xff]  ;;  %v409_v12 = vld [vmem:[%s4984_s8 + $0x518] sm:$0xff] }
  0x8d   : > { %v417_v13 = vld [vmem:[%s4984_s8 + $0x558] sm:$0xff] }
  0x91   : > { %3451 = vmatpush2.bf16.xpose.msra.mxu0 %v4421_v18  ;;  %3494 = vmatpush2.bf16.xpose.msra.mxu1 %v4423_v19  ;;  %v248_v18 = vld [vmem:[%s4984_s8 + $0x10] sm:$0xff] }
  0x92   : > { %3506 = vmatprep.subr.bf16.mxu0 %v4410_v20  ;;  %3549 = vmatprep.subr.bf16.mxu1 %v4412_v21  ;;  %v256_v19 = vld [vmem:[%s4984_s8 + $0x50] sm:$0xff]  ;;  %v249_v20 = vld [vmem:[%s4984_s8 + $0x18] sm:$0xff] }
  0x93   : > { %v257_v21 = vld [vmem:[%s4984_s8 + $0x58] sm:$0xff]  ;;  %v4298_v24 = vcombine.high %v248_v18, %v256_v19 }
  0x94   : > { %v4300_v25 = vcombine.high %v249_v20, %v257_v21 }
  0x98   : > { %3453 = vmatmul.mubr.bf16.vlgmr.msra.gmra.mxu0 %v4974_v3  ;;  %3496 = vmatmul.mubr.bf16.vlgmr.msra.gmra.mxu1 %v4986_v6 }
  0x99   : > { %3507 = vmatpush1.bf16.xpose.msra.mxu0 %v4409_v32  ;;  %3550 = vmatpush1.bf16.xpose.msra.mxu1 %v4411_v33  ;;  %v4297_v32 = vcombine.low %v248_v18, %v256_v19  ;;  %v4299_v33 = vcombine.low %v249_v20, %v257_v21  ;;  %v392_v18 = vld [vmem:[%s4984_s8 + $0x490] sm:$0xff]  ;;  %v393_v20 = vld [vmem:[%s4984_s8 + $0x498] sm:$0xff] }
  0x9a   : > { %3508 = vmatprep.subr.bf16.mxu0 %v4394_v34  ;;  %3551 = vmatprep.subr.bf16.mxu1 %v4396_v35  ;;  %v4538_v34 = vcombine.high %v488_v26, %v496_v28  ;;  %v4540_v35 = vcombine.high %v489_v29, %v497_v30  ;;  %v400_v19 = vld [vmem:[%s4984_s8 + $0x4d0] sm:$0xff]  ;;  %v401_v21 = vld [vmem:[%s4984_s8 + $0x4d8] sm:$0xff] }
  0x9b   : > { %3538 = vmatprep.mubr.bf16.mxu0 %v5080_v36  ;;  %3581 = vmatprep.mubr.bf16.mxu1 %v5083_v37 }
  0xa1   : > { %3509 = vmatpush1.bf16.xpose.msra.mxu0 %v4393_v42  ;;  %3552 = vmatpush1.bf16.xpose.msra.mxu1 %v4395_v43  ;;  %v4537_v42 = vcombine.low %v488_v26, %v496_v28  ;;  %v4539_v43 = vcombine.low %v489_v29, %v497_v30  ;;  %v376_v26 = vld [vmem:[%s4984_s8 + $0x410] sm:$0xff]  ;;  %v377_v29 = vld [vmem:[%s4984_s8 + $0x418] sm:$0xff] }
  0xa2   : > { %3510 = vmatprep.subr.bf16.mxu0 %v4378_v44  ;;  %3553 = vmatprep.subr.bf16.mxu1 %v4380_v45  ;;  %v4522_v44 = vcombine.high %v472_v38, %v480_v39  ;;  %v4524_v45 = vcombine.high %v473_v40, %v481_v41  ;;  %v384_v28 = vld [vmem:[%s4984_s8 + $0x450] sm:$0xff]  ;;  %v385_v30 = vld [vmem:[%s4984_s8 + $0x458] sm:$0xff] }
  0xa9   : > { %3511 = vmatpush1.bf16.xpose.msra.mxu0 %v4377_v50  ;;  %3554 = vmatpush1.bf16.xpose.msra.mxu1 %v4379_v51  ;;  %v4521_v50 = vcombine.low %v472_v38, %v480_v39  ;;  %v4523_v51 = vcombine.low %v473_v40, %v481_v41  ;;  %v362_v38 = vld [vmem:[%s4984_s8 + $0x3a0] sm:$0xff]  ;;  %v363_v40 = vld [vmem:[%s4984_s8 + $0x3a8] sm:$0xff] }
  0xaa   : > { %3512 = vmatprep.subr.bf16.mxu0 %v4362_v52  ;;  %3555 = vmatprep.subr.bf16.mxu1 %v4364_v53  ;;  %v4506_v52 = vcombine.high %v456_v46, %v464_v47  ;;  %v4508_v53 = vcombine.high %v457_v48, %v465_v49  ;;  %v370_v39 = vld [vmem:[%s4984_s8 + $0x3e0] sm:$0xff]  ;;  %v371_v41 = vld [vmem:[%s4984_s8 + $0x3e8] sm:$0xff] }
  0xb1   : > { %3513 = vmatpush1.bf16.xpose.msra.mxu0 %v4361_v58  ;;  %3556 = vmatpush1.bf16.xpose.msra.mxu1 %v4363_v59  ;;  %v4505_v58 = vcombine.low %v456_v46, %v464_v47  ;;  %v4507_v59 = vcombine.low %v457_v48, %v465_v49  ;;  %v234_v46 = vld [vmem:[%s5652_s0 + $0x20] sm:$0xff]  ;;  %v235_v48 = vld [vmem:[%s5652_s0 + $0x28] sm:$0xff] }
  0xb2   : > { %3514 = vmatprep.subr.bf16.mxu0 %v4346_v60  ;;  %3557 = vmatprep.subr.bf16.mxu1 %v4348_v61  ;;  %v4490_v60 = vcombine.high %v440_v54, %v448_v55  ;;  %v4492_v61 = vcombine.high %v441_v56, %v449_v57  ;;  %v242_v47 = vld [vmem:[%s5652_s0 + $0x60] sm:$0xff] }
  0xb3   : > { %v346_v49 = vld [vmem:[%s4984_s8 + $0x320] sm:$0xff] }
  0xb9   : > { %3515 = vmatpush1.bf16.xpose.msra.mxu0 %v4345_v2  ;;  %3558 = vmatpush1.bf16.xpose.msra.mxu1 %v4347_v5  ;;  %v4489_v2 = vcombine.low %v440_v54, %v448_v55  ;;  %v4491_v5 = vcombine.low %v441_v56, %v449_v57  ;;  %v355_v54 = vld [vmem:[%s4984_s8 + $0x368] sm:$0xff]  ;;  %v4413_v56 = vcombine.low %v362_v38, %v370_v39 }
  0xba   : > { %3516 = vmatprep.subr.bf16.mxu0 %v4330_v8  ;;  %3559 = vmatprep.subr.bf16.mxu1 %v4332_v9  ;;  %v4474_v8 = vcombine.high %v424_v62, %v432_v63  ;;  %v4476_v9 = vcombine.high %v425_v0, %v433_v1  ;;  %v4415_v57 = vcombine.low %v363_v40, %v371_v41 }
  0xc1   : > { %3517 = vmatpush1.bf16.xpose.msra.mxu0 %v4329_v14  ;;  %3560 = vmatpush1.bf16.xpose.msra.mxu1 %v4331_v15  ;;  %v4473_v14 = vcombine.low %v424_v62, %v432_v63  ;;  %v4475_v15 = vcombine.low %v425_v0, %v433_v1  ;;  %v330_v62 = vld [vmem:[%s4984_s8 + $0x2a0] sm:$0xff]  ;;  %v331_v0 = vld [vmem:[%s4984_s8 + $0x2a8] sm:$0xff] }
  0xc2   : > { %3518 = vmatprep.subr.bf16.mxu0 %v4314_v16  ;;  %3561 = vmatprep.subr.bf16.mxu1 %v4316_v17  ;;  %v4458_v16 = vcombine.high %v408_v10, %v416_v11  ;;  %v4460_v17 = vcombine.high %v409_v12, %v417_v13  ;;  %v338_v63 = vld [vmem:[%s4984_s8 + $0x2e0] sm:$0xff]  ;;  %v339_v1 = vld [vmem:[%s4984_s8 + $0x2e8] sm:$0xff] }
  0xc9   : > { %3519 = vmatpush1.bf16.xpose.msra.mxu0 %v4313_v22  ;;  %3562 = vmatpush1.bf16.xpose.msra.mxu1 %v4315_v23  ;;  %v4457_v22 = vcombine.low %v408_v10, %v416_v11  ;;  %v4459_v23 = vcombine.low %v409_v12, %v417_v13  ;;  %v314_v10 = vld [vmem:[%s4984_s8 + $0x220] sm:$0xff]  ;;  %v315_v12 = vld [vmem:[%s4984_s8 + $0x228] sm:$0xff] }
  0xca   : > { %3520 = vmatprep.subr.bf16.mxu0 %v4298_v24  ;;  %3563 = vmatprep.subr.bf16.mxu1 %v4300_v25  ;;  %v4442_v24 = vcombine.high %v392_v18, %v400_v19  ;;  %v4444_v25 = vcombine.high %v393_v20, %v401_v21  ;;  %v322_v11 = vld [vmem:[%s4984_s8 + $0x260] sm:$0xff]  ;;  %v323_v13 = vld [vmem:[%s4984_s8 + $0x268] sm:$0xff] }
  0xd1   : > { %3521 = vmatpush1.bf16.xpose.msra.mxu0 %v4297_v32  ;;  %3564 = vmatpush1.bf16.xpose.msra.mxu1 %v4299_v33  ;;  %v4441_v32 = vcombine.low %v392_v18, %v400_v19  ;;  %v4443_v33 = vcombine.low %v393_v20, %v401_v21  ;;  %v298_v18 = vld [vmem:[%s4984_s8 + $0x1a0] sm:$0xff]  ;;  %v299_v20 = vld [vmem:[%s4984_s8 + $0x1a8] sm:$0xff] }
  0xd2   : > { %3522 = vmatprep.subr.bf16.mxu0 %v4538_v34  ;;  %3565 = vmatprep.subr.bf16.mxu1 %v4540_v35  ;;  %v4426_v34 = vcombine.high %v376_v26, %v384_v28  ;;  %v4428_v35 = vcombine.high %v377_v29, %v385_v30  ;;  %v306_v19 = vld [vmem:[%s4984_s8 + $0x1e0] sm:$0xff]  ;;  %v307_v21 = vld [vmem:[%s4984_s8 + $0x1e8] sm:$0xff] }
  0xd9   : > { %3523 = vmatpush2.bf16.xpose.msra.mxu0 %v4537_v42  ;;  %3566 = vmatpush2.bf16.xpose.msra.mxu1 %v4539_v43  ;;  %v4425_v42 = vcombine.low %v376_v26, %v384_v28  ;;  %v4427_v43 = vcombine.low %v377_v29, %v385_v30  ;;  %v282_v26 = vld [vmem:[%s4984_s8 + $0x120] sm:$0xff]  ;;  %v283_v29 = vld [vmem:[%s4984_s8 + $0x128] sm:$0xff] }
  0xda   : > { %3524 = vmatprep.subr.bf16.mxu0 %v4522_v44  ;;  %3567 = vmatprep.subr.bf16.mxu1 %v4524_v45  ;;  %v4414_v44 = vcombine.high %v362_v38, %v370_v39  ;;  %v4416_v45 = vcombine.high %v363_v40, %v371_v41  ;;  %v290_v28 = vld [vmem:[%s4984_s8 + $0x160] sm:$0xff]  ;;  %v291_v30 = vld [vmem:[%s4984_s8 + $0x168] sm:$0xff] }
  0xdb   : > { %v266_v38 = vld [vmem:[%s4984_s8 + $0xa0] sm:$0xff]  ;;  %v267_v40 = vld [vmem:[%s4984_s8 + $0xa8] sm:$0xff] }
  0xdc   : > { %v274_v39 = vld [vmem:[%s4984_s8 + $0xe0] sm:$0xff]  ;;  %v275_v41 = vld [vmem:[%s4984_s8 + $0xe8] sm:$0xff] }
  0xe1   : > { %3525 = vmatpush2.bf16.xpose.msra.mxu0 %v4521_v50  ;;  %3568 = vmatpush2.bf16.xpose.msra.mxu1 %v4523_v51  ;;  %v354_v50 = vld [vmem:[%s4984_s8 + $0x360] sm:$0xff]  ;;  %v5159_v51 = vcombine.low %v234_v46, %v242_v47 }
  0xe2   : > { %3526 = vmatprep.subr.bf16.mxu0 %v4506_v52  ;;  %3569 = vmatprep.subr.bf16.mxu1 %v4508_v53  ;;  %v243_v52 = vld [vmem:[%s5652_s0 + $0x68] sm:$0xff] }
  0xe3   : > { %v347_v53 = vld [vmem:[%s4984_s8 + $0x328] sm:$0xff]  ;;  %v5166_v55 = vcombine.low %v235_v48, %v243_v52 }
  0xe9   : > { %3527 = vmatpush2.bf16.xpose.msra.mxu0 %v4505_v58  ;;  %3570 = vmatpush2.bf16.xpose.msra.mxu1 %v4507_v59  ;;  %v4398_v58 = vcombine.high %v346_v49, %v354_v50  ;;  %v4400_v59 = vcombine.high %v347_v53, %v355_v54 }
  0xea   : > { %3528 = vmatprep.subr.bf16.mxu0 %v4490_v60  ;;  %3571 = vmatprep.subr.bf16.mxu1 %v4492_v61  ;;  %v5168_v60 = vcombine.high %v234_v46, %v242_v47  ;;  %v5171_v61 = vcombine.high %v235_v48, %v243_v52  ;;  %v250_v46 = vld [vmem:[%s4984_s8 + $0x20] sm:$0xff]  ;;  %v251_v48 = vld [vmem:[%s4984_s8 + $0x28] sm:$0xff]  ;;  %v4319_v52 = vcombine.low %v267_v40, %v275_v41 }
  0xeb   : > { %v258_v47 = vld [vmem:[%s4984_s8 + $0x60] sm:$0xff] }
  0xf1   : > { %3529 = vmatpush2.bf16.xpose.msra.mxu0 %v4489_v2  ;;  %3572 = vmatpush2.bf16.xpose.msra.mxu1 %v4491_v5  ;;  %v4397_v2 = vcombine.low %v346_v49, %v354_v50  ;;  %v4399_v5 = vcombine.low %v347_v53, %v355_v54  ;;  %v259_v49 = vld [vmem:[%s4984_s8 + $0x68] sm:$0xff]  ;;  %v4317_v50 = vcombine.low %v266_v38, %v274_v39 }
  0xf2   : > { %3530 = vmatprep.subr.bf16.mxu0 %v4474_v8  ;;  %3573 = vmatprep.subr.bf16.mxu1 %v4476_v9  ;;  %v4382_v8 = vcombine.high %v330_v62, %v338_v63  ;;  %v4384_v9 = vcombine.high %v331_v0, %v339_v1  ;;  %v4302_v53 = vcombine.high %v250_v46, %v258_v47 }
  0xf3   : > { %v4304_v54 = vcombine.high %v251_v48, %v259_v49 }
  0xf9   : > { %3531 = vmatpush2.bf16.xpose.msra.mxu0 %v4473_v14  ;;  %3574 = vmatpush2.bf16.xpose.msra.mxu1 %v4475_v15  ;;  %v4381_v14 = vcombine.low %v330_v62, %v338_v63  ;;  %v4383_v15 = vcombine.low %v331_v0, %v339_v1  ;;  %v4301_v62 = vcombine.low %v250_v46, %v258_v47 }
  0xfa   : > { %3532 = vmatprep.subr.bf16.mxu0 %v4458_v16  ;;  %3575 = vmatprep.subr.bf16.mxu1 %v4460_v17  ;;  %v4366_v16 = vcombine.high %v314_v10, %v322_v11  ;;  %v4368_v17 = vcombine.high %v315_v12, %v323_v13  ;;  %v4303_v63 = vcombine.low %v251_v48, %v259_v49 }
 0x101   : > { %3533 = vmatpush2.bf16.xpose.msra.mxu0 %v4457_v22  ;;  %3576 = vmatpush2.bf16.xpose.msra.mxu1 %v4459_v23  ;;  %v4365_v22 = vcombine.low %v314_v10, %v322_v11  ;;  %v4367_v23 = vcombine.low %v315_v12, %v323_v13 }
 0x102   : > { %3534 = vmatprep.subr.bf16.mxu0 %v4442_v24  ;;  %3577 = vmatprep.subr.bf16.mxu1 %v4444_v25  ;;  %v4350_v24 = vcombine.high %v298_v18, %v306_v19  ;;  %v4352_v25 = vcombine.high %v299_v20, %v307_v21 }
 0x109   : > { %3535 = vmatpush2.bf16.xpose.msra.mxu0 %v4441_v32  ;;  %3578 = vmatpush2.bf16.xpose.msra.mxu1 %v4443_v33  ;;  %v4349_v32 = vcombine.low %v298_v18, %v306_v19  ;;  %v4351_v33 = vcombine.low %v299_v20, %v307_v21 }
 0x10a   : > { %3536 = vmatprep.subr.bf16.mxu0 %v4426_v34  ;;  %3579 = vmatprep.subr.bf16.mxu1 %v4428_v35  ;;  %v4334_v34 = vcombine.high %v282_v26, %v290_v28  ;;  %v4336_v35 = vcombine.high %v283_v29, %v291_v30 }
 0x111   : > { %3537 = vmatpush2.bf16.xpose.msra.mxu0 %v4425_v42  ;;  %3580 = vmatpush2.bf16.xpose.msra.mxu1 %v4427_v43  ;;  %v4333_v42 = vcombine.low %v282_v26, %v290_v28  ;;  %v4335_v43 = vcombine.low %v283_v29, %v291_v30 }
 0x112   : > { %3592 = vmatprep.subr.bf16.mxu0 %v4414_v44  ;;  %3635 = vmatprep.subr.bf16.mxu1 %v4416_v45  ;;  %v4318_v44 = vcombine.high %v266_v38, %v274_v39  ;;  %v4320_v45 = vcombine.high %v267_v40, %v275_v41 }
 0x118   : > { %3539 = vmatmul.mubr.bf16.vlgmr.msra.gmra.mxu0 %v5071_v27  ;;  %3582 = vmatmul.mubr.bf16.vlgmr.msra.gmra.mxu1 %v5078_v31 }
 0x119   : > { %3593 = vmatpush1.bf16.xpose.msra.mxu0 %v4413_v56  ;;  %3636 = vmatpush1.bf16.xpose.msra.mxu1 %v4415_v57  ;;  %v490_v56 = vld [vmem:[%s4984_s8 + $0x7a0] sm:$0xff] }
 0x11a   : > { %3594 = vmatprep.subr.bf16.mxu0 %v4398_v58  ;;  %3637 = vmatprep.subr.bf16.mxu1 %v4400_v59  ;;  %v498_v57 = vld [vmem:[%s4984_s8 + $0x7e0] sm:$0xff]  ;;  %v491_v58 = vld [vmem:[%s4984_s8 + $0x7a8] sm:$0xff] }
 0x11b   : > { %3624 = vmatprep.mubr.bf16.mxu0 %v5168_v60  ;;  %3667 = vmatprep.mubr.bf16.mxu1 %v5171_v61  ;;  %v499_v59 = vld [vmem:[%s4984_s8 + $0x7e8] sm:$0xff]  ;;  %v4542_v0 = vcombine.high %v490_v56, %v498_v57  ;;  %v4541_v10 = vcombine.low %v490_v56, %v498_v57 }
 0x11c   : > { %v4544_v1 = vcombine.high %v491_v58, %v499_v59  ;;  %v4543_v11 = vcombine.low %v491_v58, %v499_v59 }
 0x121   : > { %3595 = vmatpush1.bf16.xpose.msra.mxu0 %v4397_v2  ;;  %3638 = vmatpush1.bf16.xpose.msra.mxu1 %v4399_v5  ;;  %v474_v2 = vld [vmem:[%s4984_s8 + $0x720] sm:$0xff] }
 0x122   : > { %3596 = vmatprep.subr.bf16.mxu0 %v4382_v8  ;;  %3639 = vmatprep.subr.bf16.mxu1 %v4384_v9  ;;  %v482_v5 = vld [vmem:[%s4984_s8 + $0x760] sm:$0xff]  ;;  %v475_v8 = vld [vmem:[%s4984_s8 + $0x728] sm:$0xff] }
 0x123   : > { %v483_v9 = vld [vmem:[%s4984_s8 + $0x768] sm:$0xff]  ;;  %v4526_v12 = vcombine.high %v474_v2, %v482_v5  ;;  %v4525_v18 = vcombine.low %v474_v2, %v482_v5 }
 0x124   : > { %v4528_v13 = vcombine.high %v475_v8, %v483_v9  ;;  %v4527_v19 = vcombine.low %v475_v8, %v483_v9 }
 0x129   : > { %3597 = vmatpush1.bf16.xpose.msra.mxu0 %v4381_v14  ;;  %3640 = vmatpush1.bf16.xpose.msra.mxu1 %v4383_v15  ;;  %v458_v14 = vld [vmem:[%s4984_s8 + $0x6a0] sm:$0xff] }
 0x12a   : > { %3598 = vmatprep.subr.bf16.mxu0 %v4366_v16  ;;  %3641 = vmatprep.subr.bf16.mxu1 %v4368_v17  ;;  %v466_v15 = vld [vmem:[%s4984_s8 + $0x6e0] sm:$0xff]  ;;  %v459_v16 = vld [vmem:[%s4984_s8 + $0x6a8] sm:$0xff] }
 0x12b   : > { %v467_v17 = vld [vmem:[%s4984_s8 + $0x6e8] sm:$0xff]  ;;  %v4510_v20 = vcombine.high %v458_v14, %v466_v15  ;;  %v4509_v26 = vcombine.low %v458_v14, %v466_v15 }
 0x12c   : > { %v4512_v21 = vcombine.high %v459_v16, %v467_v17  ;;  %v4511_v28 = vcombine.low %v459_v16, %v467_v17 }
 0x131   : > { %3599 = vmatpush1.bf16.xpose.msra.mxu0 %v4365_v22  ;;  %3642 = vmatpush1.bf16.xpose.msra.mxu1 %v4367_v23  ;;  %v442_v22 = vld [vmem:[%s4984_s8 + $0x620] sm:$0xff] }
 0x132   : > { %3600 = vmatprep.subr.bf16.mxu0 %v4350_v24  ;;  %3643 = vmatprep.subr.bf16.mxu1 %v4352_v25  ;;  %v450_v23 = vld [vmem:[%s4984_s8 + $0x660] sm:$0xff]  ;;  %v443_v24 = vld [vmem:[%s4984_s8 + $0x628] sm:$0xff] }
 0x133   : > { %v451_v25 = vld [vmem:[%s4984_s8 + $0x668] sm:$0xff]  ;;  %v4494_v29 = vcombine.high %v442_v22, %v450_v23  ;;  %v4493_v38 = vcombine.low %v442_v22, %v450_v23  ;;  %v356_v22 = vld [vmem:[%s4984_s8 + $0x370] sm:$0xff] }
 0x134   : > { %v4496_v30 = vcombine.high %v443_v24, %v451_v25  ;;  %v4495_v39 = vcombine.low %v443_v24, %v451_v25  ;;  %v245_v24 = vld [vmem:[%s5652_s0 + $0x78] sm:$0xff] }
 0x135   : > { %v349_v25 = vld [vmem:[%s4984_s8 + $0x338] sm:$0xff] }
 0x139   : > { %3601 = vmatpush1.bf16.xpose.msra.mxu0 %v4349_v32  ;;  %3644 = vmatpush1.bf16.xpose.msra.mxu1 %v4351_v33  ;;  %v426_v32 = vld [vmem:[%s4984_s8 + $0x5a0] sm:$0xff] }
 0x13a   : > { %3602 = vmatprep.subr.bf16.mxu0 %v4334_v34  ;;  %3645 = vmatprep.subr.bf16.mxu1 %v4336_v35  ;;  %v434_v33 = vld [vmem:[%s4984_s8 + $0x5e0] sm:$0xff]  ;;  %v427_v34 = vld [vmem:[%s4984_s8 + $0x5a8] sm:$0xff] }
 0x13b   : > { %v435_v35 = vld [vmem:[%s4984_s8 + $0x5e8] sm:$0xff]  ;;  %v4478_v40 = vcombine.high %v426_v32, %v434_v33  ;;  %v4477_v46 = vcombine.low %v426_v32, %v434_v33 }
 0x13c   : > { %v4480_v41 = vcombine.high %v427_v34, %v435_v35  ;;  %v4479_v47 = vcombine.low %v427_v34, %v435_v35 }
 0x141   : > { %3603 = vmatpush1.bf16.xpose.msra.mxu0 %v4333_v42  ;;  %3646 = vmatpush1.bf16.xpose.msra.mxu1 %v4335_v43  ;;  %v410_v42 = vld [vmem:[%s4984_s8 + $0x520] sm:$0xff] }
 0x142   : > { %3604 = vmatprep.subr.bf16.mxu0 %v4318_v44  ;;  %3647 = vmatprep.subr.bf16.mxu1 %v4320_v45  ;;  %v418_v43 = vld [vmem:[%s4984_s8 + $0x560] sm:$0xff]  ;;  %v411_v44 = vld [vmem:[%s4984_s8 + $0x528] sm:$0xff] }
 0x143   : > { %v419_v45 = vld [vmem:[%s4984_s8 + $0x568] sm:$0xff]  ;;  %v4462_v48 = vcombine.high %v410_v42, %v418_v43  ;;  %v4461_v56 = vcombine.low %v410_v42, %v418_v43 }
 0x144   : > { %v4464_v49 = vcombine.high %v411_v44, %v419_v45  ;;  %v4463_v57 = vcombine.low %v411_v44, %v419_v45 }
 0x149   : > { %3605 = vmatpush1.bf16.xpose.msra.mxu0 %v4317_v50  ;;  %3648 = vmatpush1.bf16.xpose.msra.mxu1 %v4319_v52  ;;  %v394_v50 = vld [vmem:[%s4984_s8 + $0x4a0] sm:$0xff] }
 0x14a   : > { %3606 = vmatprep.subr.bf16.mxu0 %v4302_v53  ;;  %3649 = vmatprep.subr.bf16.mxu1 %v4304_v54  ;;  %v402_v52 = vld [vmem:[%s4984_s8 + $0x4e0] sm:$0xff]  ;;  %v395_v53 = vld [vmem:[%s4984_s8 + $0x4a8] sm:$0xff] }
 0x14b   : > { %v403_v54 = vld [vmem:[%s4984_s8 + $0x4e8] sm:$0xff]  ;;  %v4446_v58 = vcombine.high %v394_v50, %v402_v52  ;;  %v4445_v2 = vcombine.low %v394_v50, %v402_v52 }
 0x14c   : > { %v4448_v59 = vcombine.high %v395_v53, %v403_v54  ;;  %v4447_v5 = vcombine.low %v395_v53, %v403_v54 }
 0x151   : > { %3607 = vmatpush1.bf16.xpose.msra.mxu0 %v4301_v62  ;;  %3650 = vmatpush1.bf16.xpose.msra.mxu1 %v4303_v63  ;;  %v378_v62 = vld [vmem:[%s4984_s8 + $0x420] sm:$0xff] }
 0x152   : > { %3608 = vmatprep.subr.bf16.mxu0 %v4542_v0  ;;  %3651 = vmatprep.subr.bf16.mxu1 %v4544_v1  ;;  %v386_v63 = vld [vmem:[%s4984_s8 + $0x460] sm:$0xff]  ;;  %v379_v0 = vld [vmem:[%s4984_s8 + $0x428] sm:$0xff] }
 0x153   : > { %v387_v1 = vld [vmem:[%s4984_s8 + $0x468] sm:$0xff]  ;;  %v4430_v8 = vcombine.high %v378_v62, %v386_v63  ;;  %v4429_v14 = vcombine.low %v378_v62, %v386_v63 }
 0x154   : > { %v4432_v9 = vcombine.high %v379_v0, %v387_v1  ;;  %v4431_v15 = vcombine.low %v379_v0, %v387_v1 }
 0x159   : > { %3609 = vmatpush2.bf16.xpose.msra.mxu0 %v4541_v10  ;;  %3652 = vmatpush2.bf16.xpose.msra.mxu1 %v4543_v11  ;;  %v364_v10 = vld [vmem:[%s4984_s8 + $0x3b0] sm:$0xff] }
 0x15a   : > { %3610 = vmatprep.subr.bf16.mxu0 %v4526_v12  ;;  %3653 = vmatprep.subr.bf16.mxu1 %v4528_v13  ;;  %v372_v11 = vld [vmem:[%s4984_s8 + $0x3f0] sm:$0xff]  ;;  %v365_v12 = vld [vmem:[%s4984_s8 + $0x3b8] sm:$0xff] }
 0x15b   : > { %v373_v13 = vld [vmem:[%s4984_s8 + $0x3f8] sm:$0xff]  ;;  %v4418_v16 = vcombine.high %v364_v10, %v372_v11 }
 0x15c   : > { %v4420_v17 = vcombine.high %v365_v12, %v373_v13 }
 0x161   : > { %3611 = vmatpush2.bf16.xpose.msra.mxu0 %v4525_v18  ;;  %3654 = vmatpush2.bf16.xpose.msra.mxu1 %v4527_v19  ;;  %v236_v18 = vld [vmem:[%s5652_s0 + $0x30] sm:$0xff] }
 0x162   : > { %3612 = vmatprep.subr.bf16.mxu0 %v4510_v20  ;;  %3655 = vmatprep.subr.bf16.mxu1 %v4512_v21  ;;  %v244_v19 = vld [vmem:[%s5652_s0 + $0x70] sm:$0xff]  ;;  %v237_v20 = vld [vmem:[%s5652_s0 + $0x38] sm:$0xff] }
 0x163   : > { %v348_v21 = vld [vmem:[%s4984_s8 + $0x330] sm:$0xff]  ;;  %v5247_v23 = vcombine.low %v236_v18, %v244_v19  ;;  %v5256_v34 = vcombine.high %v236_v18, %v244_v19  ;;  %v5259_v35 = vcombine.high %v237_v20, %v245_v24 }
 0x164   : > { %v4402_v32 = vcombine.high %v348_v21, %v356_v22  ;;  %v4401_v42 = vcombine.low %v348_v21, %v356_v22  ;;  %v252_v22 = vld [vmem:[%s4984_s8 + $0x30] sm:$0xff] }
 0x169   : > { %3613 = vmatpush2.bf16.xpose.msra.mxu0 %v4509_v26  ;;  %3656 = vmatpush2.bf16.xpose.msra.mxu1 %v4511_v28  ;;  %v357_v26 = vld [vmem:[%s4984_s8 + $0x378] sm:$0xff]  ;;  %v5254_v28 = vcombine.low %v237_v20, %v245_v24  ;;  %v260_v24 = vld [vmem:[%s4984_s8 + $0x70] sm:$0xff] }
 0x16a   : > { %3614 = vmatprep.subr.bf16.mxu0 %v4494_v29  ;;  %3657 = vmatprep.subr.bf16.mxu1 %v4496_v30  ;;  %v4417_v29 = vcombine.low %v364_v10, %v372_v11  ;;  %v4419_v30 = vcombine.low %v365_v12, %v373_v13  ;;  %v4404_v33 = vcombine.high %v349_v25, %v357_v26 }
 0x16b   : > { %v4403_v43 = vcombine.low %v349_v25, %v357_v26  ;;  %v253_v25 = vld [vmem:[%s4984_s8 + $0x38] sm:$0xff] }
 0x16c   : > { %v261_v26 = vld [vmem:[%s4984_s8 + $0x78] sm:$0xff] }
 0x171   : > { %3615 = vmatpush2.bf16.xpose.msra.mxu0 %v4493_v38  ;;  %3658 = vmatpush2.bf16.xpose.msra.mxu1 %v4495_v39  ;;  %v332_v38 = vld [vmem:[%s4984_s8 + $0x2b0] sm:$0xff] }
 0x172   : > { %3616 = vmatprep.subr.bf16.mxu0 %v4478_v40  ;;  %3659 = vmatprep.subr.bf16.mxu1 %v4480_v41  ;;  %v340_v39 = vld [vmem:[%s4984_s8 + $0x2f0] sm:$0xff]  ;;  %v333_v40 = vld [vmem:[%s4984_s8 + $0x2b8] sm:$0xff] }
 0x173   : > { %v341_v41 = vld [vmem:[%s4984_s8 + $0x2f8] sm:$0xff]  ;;  %v4386_v44 = vcombine.high %v332_v38, %v340_v39  ;;  %v4385_v50 = vcombine.low %v332_v38, %v340_v39  ;;  %v492_v38 = vld [vmem:[%s4984_s8 + $0x7b0] sm:$0xff] }
 0x174   : > { %v4388_v45 = vcombine.high %v333_v40, %v341_v41  ;;  %v4387_v52 = vcombine.low %v333_v40, %v341_v41  ;;  %v500_v39 = vld [vmem:[%s4984_s8 + $0x7f0] sm:$0xff]  ;;  %v493_v40 = vld [vmem:[%s4984_s8 + $0x7b8] sm:$0xff] }
 0x175   : > { %v501_v41 = vld [vmem:[%s4984_s8 + $0x7f8] sm:$0xff] }
 0x179   : > { %3617 = vmatpush2.bf16.xpose.msra.mxu0 %v4477_v46  ;;  %3660 = vmatpush2.bf16.xpose.msra.mxu1 %v4479_v47  ;;  %v316_v46 = vld [vmem:[%s4984_s8 + $0x230] sm:$0xff] }
 0x17a   : > { %3618 = vmatprep.subr.bf16.mxu0 %v4462_v48  ;;  %3661 = vmatprep.subr.bf16.mxu1 %v4464_v49  ;;  %v324_v47 = vld [vmem:[%s4984_s8 + $0x270] sm:$0xff]  ;;  %v317_v48 = vld [vmem:[%s4984_s8 + $0x238] sm:$0xff] }
 0x17b   : > { %v325_v49 = vld [vmem:[%s4984_s8 + $0x278] sm:$0xff]  ;;  %v4370_v53 = vcombine.high %v316_v46, %v324_v47  ;;  %v4369_v62 = vcombine.low %v316_v46, %v324_v47  ;;  %v476_v46 = vld [vmem:[%s4984_s8 + $0x730] sm:$0xff] }
 0x17c   : > { %v4372_v54 = vcombine.high %v317_v48, %v325_v49  ;;  %v4371_v63 = vcombine.low %v317_v48, %v325_v49  ;;  %v484_v47 = vld [vmem:[%s4984_s8 + $0x770] sm:$0xff]  ;;  %v477_v48 = vld [vmem:[%s4984_s8 + $0x738] sm:$0xff] }
 0x17d   : > { %v485_v49 = vld [vmem:[%s4984_s8 + $0x778] sm:$0xff] }
 0x181   : > { %3619 = vmatpush2.bf16.xpose.msra.mxu0 %v4461_v56  ;;  %3662 = vmatpush2.bf16.xpose.msra.mxu1 %v4463_v57  ;;  %v300_v56 = vld [vmem:[%s4984_s8 + $0x1b0] sm:$0xff] }
 0x182   : > { %3620 = vmatprep.subr.bf16.mxu0 %v4446_v58  ;;  %3663 = vmatprep.subr.bf16.mxu1 %v4448_v59  ;;  %v308_v57 = vld [vmem:[%s4984_s8 + $0x1f0] sm:$0xff]  ;;  %v301_v58 = vld [vmem:[%s4984_s8 + $0x1b8] sm:$0xff] }
 0x183   : > { %v309_v59 = vld [vmem:[%s4984_s8 + $0x1f8] sm:$0xff]  ;;  %v4354_v0 = vcombine.high %v300_v56, %v308_v57  ;;  %v4353_v10 = vcombine.low %v300_v56, %v308_v57  ;;  %v460_v56 = vld [vmem:[%s4984_s8 + $0x6b0] sm:$0xff] }
 0x184   : > { %v4356_v1 = vcombine.high %v301_v58, %v309_v59  ;;  %v4355_v11 = vcombine.low %v301_v58, %v309_v59  ;;  %v468_v57 = vld [vmem:[%s4984_s8 + $0x6f0] sm:$0xff]  ;;  %v461_v58 = vld [vmem:[%s4984_s8 + $0x6b8] sm:$0xff] }
 0x185   : > { %v469_v59 = vld [vmem:[%s4984_s8 + $0x6f8] sm:$0xff] }
 0x189   : > { %3621 = vmatpush2.bf16.xpose.msra.mxu0 %v4445_v2  ;;  %3664 = vmatpush2.bf16.xpose.msra.mxu1 %v4447_v5  ;;  %v284_v2 = vld [vmem:[%s4984_s8 + $0x130] sm:$0xff] }
 0x18a   : > { %3622 = vmatprep.subr.bf16.mxu0 %v4430_v8  ;;  %3665 = vmatprep.subr.bf16.mxu1 %v4432_v9  ;;  %v292_v5 = vld [vmem:[%s4984_s8 + $0x170] sm:$0xff]  ;;  %v285_v8 = vld [vmem:[%s4984_s8 + $0x138] sm:$0xff] }
 0x18b   : > { %v293_v9 = vld [vmem:[%s4984_s8 + $0x178] sm:$0xff]  ;;  %v4338_v12 = vcombine.high %v284_v2, %v292_v5  ;;  %v4337_v18 = vcombine.low %v284_v2, %v292_v5  ;;  %v444_v2 = vld [vmem:[%s4984_s8 + $0x630] sm:$0xff] }
 0x18c   : > { %v4340_v13 = vcombine.high %v285_v8, %v293_v9  ;;  %v4339_v19 = vcombine.low %v285_v8, %v293_v9  ;;  %v452_v5 = vld [vmem:[%s4984_s8 + $0x670] sm:$0xff]  ;;  %v445_v8 = vld [vmem:[%s4984_s8 + $0x638] sm:$0xff] }
 0x18d   : > { %v453_v9 = vld [vmem:[%s4984_s8 + $0x678] sm:$0xff] }
 0x191   : > { %3623 = vmatpush2.bf16.xpose.msra.mxu0 %v4429_v14  ;;  %3666 = vmatpush2.bf16.xpose.msra.mxu1 %v4431_v15  ;;  %v268_v14 = vld [vmem:[%s4984_s8 + $0xb0] sm:$0xff] }
 0x192   : > { %3678 = vmatprep.subr.bf16.mxu0 %v4418_v16  ;;  %3721 = vmatprep.subr.bf16.mxu1 %v4420_v17  ;;  %v276_v15 = vld [vmem:[%s4984_s8 + $0xf0] sm:$0xff]  ;;  %v269_v16 = vld [vmem:[%s4984_s8 + $0xb8] sm:$0xff] }
 0x193   : > { %v277_v17 = vld [vmem:[%s4984_s8 + $0xf8] sm:$0xff]  ;;  %v4322_v20 = vcombine.high %v268_v14, %v276_v15 }
 0x194   : > { %v4324_v21 = vcombine.high %v269_v16, %v277_v17 }
 0x198   : > { %3625 = vmatmul.mubr.bf16.vlgmr.msra.gmra.mxu0 %v5159_v51  ;;  %3668 = vmatmul.mubr.bf16.vlgmr.msra.gmra.mxu1 %v5166_v55 }
 0x199   : > { %3679 = vmatpush1.bf16.xpose.msra.mxu0 %v4417_v29  ;;  %3722 = vmatpush1.bf16.xpose.msra.mxu1 %v4419_v30  ;;  %v4321_v29 = vcombine.low %v268_v14, %v276_v15  ;;  %v4323_v30 = vcombine.low %v269_v16, %v277_v17  ;;  %v428_v14 = vld [vmem:[%s4984_s8 + $0x5b0] sm:$0xff]  ;;  %v429_v16 = vld [vmem:[%s4984_s8 + $0x5b8] sm:$0xff] }
 0x19a   : > { %3680 = vmatprep.subr.bf16.mxu0 %v4402_v32  ;;  %3723 = vmatprep.subr.bf16.mxu1 %v4404_v33  ;;  %v4306_v32 = vcombine.high %v252_v22, %v260_v24  ;;  %v4308_v33 = vcombine.high %v253_v25, %v261_v26  ;;  %v436_v15 = vld [vmem:[%s4984_s8 + $0x5f0] sm:$0xff]  ;;  %v437_v17 = vld [vmem:[%s4984_s8 + $0x5f8] sm:$0xff] }
 0x19b   : > { %3710 = vmatprep.mubr.bf16.mxu0 %v5256_v34  ;;  %3753 = vmatprep.mubr.bf16.mxu1 %v5259_v35 }
 0x1a1   : > { %3681 = vmatpush1.bf16.xpose.msra.mxu0 %v4401_v42  ;;  %3724 = vmatpush1.bf16.xpose.msra.mxu1 %v4403_v43  ;;  %v4305_v42 = vcombine.low %v252_v22, %v260_v24  ;;  %v4307_v43 = vcombine.low %v253_v25, %v261_v26  ;;  %v412_v22 = vld [vmem:[%s4984_s8 + $0x530] sm:$0xff]  ;;  %v413_v25 = vld [vmem:[%s4984_s8 + $0x538] sm:$0xff] }
 0x1a2   : > { %3682 = vmatprep.subr.bf16.mxu0 %v4386_v44  ;;  %3725 = vmatprep.subr.bf16.mxu1 %v4388_v45  ;;  %v4546_v44 = vcombine.high %v492_v38, %v500_v39  ;;  %v4548_v45 = vcombine.high %v493_v40, %v501_v41  ;;  %v420_v24 = vld [vmem:[%s4984_s8 + $0x570] sm:$0xff]  ;;  %v421_v26 = vld [vmem:[%s4984_s8 + $0x578] sm:$0xff] }
 0x1a9   : > { %3683 = vmatpush1.bf16.xpose.msra.mxu0 %v4385_v50  ;;  %3726 = vmatpush1.bf16.xpose.msra.mxu1 %v4387_v52  ;;  %v4545_v50 = vcombine.low %v492_v38, %v500_v39  ;;  %v4547_v52 = vcombine.low %v493_v40, %v501_v41  ;;  %v396_v38 = vld [vmem:[%s4984_s8 + $0x4b0] sm:$0xff]  ;;  %v397_v40 = vld [vmem:[%s4984_s8 + $0x4b8] sm:$0xff] }
 0x1aa   : > { %3684 = vmatprep.subr.bf16.mxu0 %v4370_v53  ;;  %3727 = vmatprep.subr.bf16.mxu1 %v4372_v54  ;;  %v4530_v53 = vcombine.high %v476_v46, %v484_v47  ;;  %v4532_v54 = vcombine.high %v477_v48, %v485_v49  ;;  %v404_v39 = vld [vmem:[%s4984_s8 + $0x4f0] sm:$0xff]  ;;  %v405_v41 = vld [vmem:[%s4984_s8 + $0x4f8] sm:$0xff] }
 0x1b1   : > { %3685 = vmatpush1.bf16.xpose.msra.mxu0 %v4369_v62  ;;  %3728 = vmatpush1.bf16.xpose.msra.mxu1 %v4371_v63  ;;  %v4529_v62 = vcombine.low %v476_v46, %v484_v47  ;;  %v4531_v63 = vcombine.low %v477_v48, %v485_v49  ;;  %v380_v46 = vld [vmem:[%s4984_s8 + $0x430] sm:$0xff]  ;;  %v381_v48 = vld [vmem:[%s4984_s8 + $0x438] sm:$0xff] }
 0x1b2   : > { %3686 = vmatprep.subr.bf16.mxu0 %v4354_v0  ;;  %3729 = vmatprep.subr.bf16.mxu1 %v4356_v1  ;;  %v4514_v0 = vcombine.high %v460_v56, %v468_v57  ;;  %v4516_v1 = vcombine.high %v461_v58, %v469_v59  ;;  %v388_v47 = vld [vmem:[%s4984_s8 + $0x470] sm:$0xff]  ;;  %v389_v49 = vld [vmem:[%s4984_s8 + $0x478] sm:$0xff] }
 0x1b9   : > { %3687 = vmatpush1.bf16.xpose.msra.mxu0 %v4353_v10  ;;  %3730 = vmatpush1.bf16.xpose.msra.mxu1 %v4355_v11  ;;  %v4513_v10 = vcombine.low %v460_v56, %v468_v57  ;;  %v4515_v11 = vcombine.low %v461_v58, %v469_v59  ;;  %v614_v56 = vld [vmem:[%s4984_s8 + $0xb80] sm:$0xff]  ;;  %v615_v58 = vld [vmem:[%s4984_s8 + $0xb88] sm:$0xff] }
 0x1ba   : > { %3688 = vmatprep.subr.bf16.mxu0 %v4338_v12  ;;  %3731 = vmatprep.subr.bf16.mxu1 %v4340_v13  ;;  %v4498_v12 = vcombine.high %v444_v2, %v452_v5  ;;  %v4500_v13 = vcombine.high %v445_v8, %v453_v9  ;;  %v622_v57 = vld [vmem:[%s4984_s8 + $0xbc0] sm:$0xff]  ;;  %v623_v59 = vld [vmem:[%s4984_s8 + $0xbc8] sm:$0xff] }
 0x1c1   : > { %3689 = vmatpush1.bf16.xpose.msra.mxu0 %v4337_v18  ;;  %3732 = vmatpush1.bf16.xpose.msra.mxu1 %v4339_v19  ;;  %v4497_v18 = vcombine.low %v444_v2, %v452_v5  ;;  %v4499_v19 = vcombine.low %v445_v8, %v453_v9  ;;  %v598_v2 = vld [vmem:[%s4984_s8 + $0xb00] sm:$0xff]  ;;  %v599_v8 = vld [vmem:[%s4984_s8 + $0xb08] sm:$0xff] }
 0x1c2   : > { %3690 = vmatprep.subr.bf16.mxu0 %v4322_v20  ;;  %3733 = vmatprep.subr.bf16.mxu1 %v4324_v21  ;;  %v4482_v20 = vcombine.high %v428_v14, %v436_v15  ;;  %v4484_v21 = vcombine.high %v429_v16, %v437_v17  ;;  %v606_v5 = vld [vmem:[%s4984_s8 + $0xb40] sm:$0xff]  ;;  %v607_v9 = vld [vmem:[%s4984_s8 + $0xb48] sm:$0xff] }
 0x1c9   : > { %3691 = vmatpush1.bf16.xpose.msra.mxu0 %v4321_v29  ;;  %3734 = vmatpush1.bf16.xpose.msra.mxu1 %v4323_v30  ;;  %v4481_v29 = vcombine.low %v428_v14, %v436_v15  ;;  %v4483_v30 = vcombine.low %v429_v16, %v437_v17  ;;  %v582_v14 = vld [vmem:[%s4984_s8 + $0xa80] sm:$0xff]  ;;  %v583_v16 = vld [vmem:[%s4984_s8 + $0xa88] sm:$0xff] }
 0x1ca   : > { %3692 = vmatprep.subr.bf16.mxu0 %v4306_v32  ;;  %3735 = vmatprep.subr.bf16.mxu1 %v4308_v33  ;;  %v4466_v32 = vcombine.high %v412_v22, %v420_v24  ;;  %v4468_v33 = vcombine.high %v413_v25, %v421_v26  ;;  %v590_v15 = vld [vmem:[%s4984_s8 + $0xac0] sm:$0xff]  ;;  %v591_v17 = vld [vmem:[%s4984_s8 + $0xac8] sm:$0xff] }
 0x1d1   : > { %3693 = vmatpush1.bf16.xpose.msra.mxu0 %v4305_v42  ;;  %3736 = vmatpush1.bf16.xpose.msra.mxu1 %v4307_v43  ;;  %v4465_v42 = vcombine.low %v412_v22, %v420_v24  ;;  %v4467_v43 = vcombine.low %v413_v25, %v421_v26  ;;  %v566_v22 = vld [vmem:[%s4984_s8 + $0xa00] sm:$0xff]  ;;  %v567_v25 = vld [vmem:[%s4984_s8 + $0xa08] sm:$0xff]  ;;  %v4629_v26 = vcombine.low %v582_v14, %v590_v15 }
 0x1d2   : > { %3694 = vmatprep.subr.bf16.mxu0 %v4546_v44  ;;  %3737 = vmatprep.subr.bf16.mxu1 %v4548_v45  ;;  %v4450_v44 = vcombine.high %v396_v38, %v404_v39  ;;  %v4452_v45 = vcombine.high %v397_v40, %v405_v41  ;;  %v574_v24 = vld [vmem:[%s4984_s8 + $0xa40] sm:$0xff] }
 0x1d9   : > { %3695 = vmatpush2.bf16.xpose.msra.mxu0 %v4545_v50  ;;  %3738 = vmatpush2.bf16.xpose.msra.mxu1 %v4547_v52  ;;  %v4449_v50 = vcombine.low %v396_v38, %v404_v39  ;;  %v4451_v52 = vcombine.low %v397_v40, %v405_v41  ;;  %v551_v38 = vld [vmem:[%s4984_s8 + $0x988] sm:$0xff]  ;;  %v4613_v40 = vcombine.low %v566_v22, %v574_v24 }
 0x1da   : > { %3696 = vmatprep.subr.bf16.mxu0 %v4530_v53  ;;  %3739 = vmatprep.subr.bf16.mxu1 %v4532_v54  ;;  %v4434_v53 = vcombine.high %v380_v46, %v388_v47  ;;  %v4436_v54 = vcombine.high %v381_v48, %v389_v49  ;;  %v559_v39 = vld [vmem:[%s4984_s8 + $0x9c8] sm:$0xff] }
 0x1e1   : > { %3697 = vmatpush2.bf16.xpose.msra.mxu0 %v4529_v62  ;;  %3740 = vmatpush2.bf16.xpose.msra.mxu1 %v4531_v63  ;;  %v4433_v62 = vcombine.low %v380_v46, %v388_v47  ;;  %v4435_v63 = vcombine.low %v381_v48, %v389_v49  ;;  %v535_v46 = vld [vmem:[%s4984_s8 + $0x908] sm:$0xff]  ;;  %v4599_v49 = vcombine.low %v551_v38, %v559_v39 }
 0x1e2   : > { %3698 = vmatprep.subr.bf16.mxu0 %v4514_v0  ;;  %3741 = vmatprep.subr.bf16.mxu1 %v4516_v1  ;;  %v4662_v0 = vcombine.high %v614_v56, %v622_v57  ;;  %v4664_v1 = vcombine.high %v615_v58, %v623_v59  ;;  %v543_v47 = vld [vmem:[%s4984_s8 + $0x948] sm:$0xff] }
 0x1e9   : > { %3699 = vmatpush2.bf16.xpose.msra.mxu0 %v4513_v10  ;;  %3742 = vmatpush2.bf16.xpose.msra.mxu1 %v4515_v11  ;;  %v4661_v10 = vcombine.low %v614_v56, %v622_v57  ;;  %v4663_v11 = vcombine.low %v615_v58, %v623_v59  ;;  %v519_v56 = vld [vmem:[%s4984_s8 + $0x888] sm:$0xff]  ;;  %v4583_v59 = vcombine.low %v535_v46, %v543_v47 }
 0x1ea   : > { %3700 = vmatprep.subr.bf16.mxu0 %v4498_v12  ;;  %3743 = vmatprep.subr.bf16.mxu1 %v4500_v13  ;;  %v4646_v12 = vcombine.high %v598_v2, %v606_v5  ;;  %v4648_v13 = vcombine.high %v599_v8, %v607_v9  ;;  %v527_v57 = vld [vmem:[%s4984_s8 + $0x8c8] sm:$0xff] }
 0x1f1   : > { %3701 = vmatpush2.bf16.xpose.msra.mxu0 %v4497_v18  ;;  %3744 = vmatpush2.bf16.xpose.msra.mxu1 %v4499_v19  ;;  %v4645_v18 = vcombine.low %v598_v2, %v606_v5  ;;  %v4647_v19 = vcombine.low %v599_v8, %v607_v9  ;;  %v503_v2 = vld [vmem:[%s4984_s8 + $0x808] sm:$0xff]  ;;  %v4567_v9 = vcombine.low %v519_v56, %v527_v57 }
 0x1f2   : > { %3702 = vmatprep.subr.bf16.mxu0 %v4482_v20  ;;  %3745 = vmatprep.subr.bf16.mxu1 %v4484_v21  ;;  %v4630_v20 = vcombine.high %v582_v14, %v590_v15  ;;  %v4632_v21 = vcombine.high %v583_v16, %v591_v17  ;;  %v511_v5 = vld [vmem:[%s4984_s8 + $0x848] sm:$0xff] }
 0x1f3   : > { %v743_v14 = vld [vmem:[%s4984_s8 + $0xf88] sm:$0xff] }
 0x1f4   : > { %v751_v15 = vld [vmem:[%s4984_s8 + $0xfc8] sm:$0xff] }
 0x1f9   : > { %3703 = vmatpush2.bf16.xpose.msra.mxu0 %v4481_v29  ;;  %3746 = vmatpush2.bf16.xpose.msra.mxu1 %v4483_v30  ;;  %v4631_v29 = vcombine.low %v583_v16, %v591_v17  ;;  %v4614_v30 = vcombine.high %v566_v22, %v574_v24  ;;  %v4551_v17 = vcombine.low %v503_v2, %v511_v5  ;;  %v727_v22 = vld [vmem:[%s4984_s8 + $0xf08] sm:$0xff] }
 0x1fa   : > { %3704 = vmatprep.subr.bf16.mxu0 %v4466_v32  ;;  %3747 = vmatprep.subr.bf16.mxu1 %v4468_v33  ;;  %v550_v32 = vld [vmem:[%s4984_s8 + $0x980] sm:$0xff]  ;;  %v735_v24 = vld [vmem:[%s4984_s8 + $0xf48] sm:$0xff] }
 0x1fb   : > { %v558_v33 = vld [vmem:[%s4984_s8 + $0x9c0] sm:$0xff] }
 0x1fc   : > { %v4597_v48 = vcombine.low %v550_v32, %v558_v33 }
 0x201   : > { %3705 = vmatpush2.bf16.xpose.msra.mxu0 %v4465_v42  ;;  %3748 = vmatpush2.bf16.xpose.msra.mxu1 %v4467_v43  ;;  %v4598_v42 = vcombine.high %v550_v32, %v558_v33  ;;  %v4600_v43 = vcombine.high %v551_v38, %v559_v39  ;;  %v711_v32 = vld [vmem:[%s4984_s8 + $0xe88] sm:$0xff]  ;;  %v4775_v39 = vcombine.low %v727_v22, %v735_v24 }
 0x202   : > { %3706 = vmatprep.subr.bf16.mxu0 %v4450_v44  ;;  %3749 = vmatprep.subr.bf16.mxu1 %v4452_v45  ;;  %v534_v44 = vld [vmem:[%s4984_s8 + $0x900] sm:$0xff]  ;;  %v719_v33 = vld [vmem:[%s4984_s8 + $0xec8] sm:$0xff] }
 0x203   : > { %v542_v45 = vld [vmem:[%s4984_s8 + $0x940] sm:$0xff] }
 0x204   : > { %v4581_v58 = vcombine.low %v534_v44, %v542_v45 }
 0x209   : > { %3707 = vmatpush2.bf16.xpose.msra.mxu0 %v4449_v50  ;;  %3750 = vmatpush2.bf16.xpose.msra.mxu1 %v4451_v52  ;;  %v4582_v50 = vcombine.high %v534_v44, %v542_v45  ;;  %v4584_v52 = vcombine.high %v535_v46, %v543_v47  ;;  %v695_v44 = vld [vmem:[%s4984_s8 + $0xe08] sm:$0xff]  ;;  %v4759_v47 = vcombine.low %v711_v32, %v719_v33 }
 0x20a   : > { %3708 = vmatprep.subr.bf16.mxu0 %v4434_v53  ;;  %3751 = vmatprep.subr.bf16.mxu1 %v4436_v54  ;;  %v518_v53 = vld [vmem:[%s4984_s8 + $0x880] sm:$0xff]  ;;  %v703_v45 = vld [vmem:[%s4984_s8 + $0xe48] sm:$0xff] }
 0x20b   : > { %v526_v54 = vld [vmem:[%s4984_s8 + $0x8c0] sm:$0xff] }
 0x20c   : > { %v4565_v8 = vcombine.low %v518_v53, %v526_v54 }
 0x211   : > { %3709 = vmatpush2.bf16.xpose.msra.mxu0 %v4433_v62  ;;  %3752 = vmatpush2.bf16.xpose.msra.mxu1 %v4435_v63  ;;  %v4566_v62 = vcombine.high %v518_v53, %v526_v54  ;;  %v4568_v63 = vcombine.high %v519_v56, %v527_v57  ;;  %v679_v53 = vld [vmem:[%s4984_s8 + $0xd88] sm:$0xff]  ;;  %v4743_v57 = vcombine.low %v695_v44, %v703_v45 }
 0x212   : > { %3764 = vmatprep.subr.bf16.mxu0 %v4662_v0  ;;  %3807 = vmatprep.subr.bf16.mxu1 %v4664_v1  ;;  %v502_v0 = vld [vmem:[%s4984_s8 + $0x800] sm:$0xff]  ;;  %v687_v54 = vld [vmem:[%s4984_s8 + $0xdc8] sm:$0xff] }
 0x213   : > { %v510_v1 = vld [vmem:[%s4984_s8 + $0x840] sm:$0xff] }
 0x214   : > { %v4549_v16 = vcombine.low %v502_v0, %v510_v1 }
 0x218   : > { %3711 = vmatmul.mubr.bf16.vlgmr.msra.gmra.mxu0 %v5247_v23  ;;  %3754 = vmatmul.mubr.bf16.vlgmr.msra.gmra.mxu1 %v5254_v28 }
 0x219   : > { %3765 = vmatpush1.bf16.xpose.msra.mxu0 %v4661_v10  ;;  %3808 = vmatpush1.bf16.xpose.msra.mxu1 %v4663_v11  ;;  %v4550_v10 = vcombine.high %v502_v0, %v510_v1  ;;  %v4552_v11 = vcombine.high %v503_v2, %v511_v5  ;;  %v663_v0 = vld [vmem:[%s4984_s8 + $0xd08] sm:$0xff]  ;;  %v4727_v5 = vcombine.low %v679_v53, %v687_v54 }
 0x21a   : > { %3766 = vmatprep.subr.bf16.mxu0 %v4646_v12  ;;  %3809 = vmatprep.subr.bf16.mxu1 %v4648_v13  ;;  %v742_v12 = vld [vmem:[%s4984_s8 + $0xf80] sm:$0xff]  ;;  %v671_v1 = vld [vmem:[%s4984_s8 + $0xd48] sm:$0xff] }
 0x21b   : > { %3796 = vmatprep.mubr.bf16.mxu0 %v4976_v4  ;;  %3839 = vmatprep.mubr.bf16.mxu1 %v4988_v7  ;;  %v575_v4 = vld [vmem:[%s4984_s8 + $0xa48] sm:$0xff]  ;;  %v750_v13 = vld [vmem:[%s4984_s8 + $0xfc0] sm:$0xff] }
 0x21c   : > { %v4616_v7 = vcombine.high %v567_v25, %v575_v4  ;;  %v4615_v41 = vcombine.low %v567_v25, %v575_v4  ;;  %v4789_v25 = vcombine.low %v742_v12, %v750_v13  ;;  %v4791_v4 = vcombine.low %v743_v14, %v751_v15 }
 0x221   : > { %3767 = vmatpush1.bf16.xpose.msra.mxu0 %v4645_v18  ;;  %3810 = vmatpush1.bf16.xpose.msra.mxu1 %v4647_v19  ;;  %v4790_v18 = vcombine.high %v742_v12, %v750_v13  ;;  %v4792_v19 = vcombine.high %v743_v14, %v751_v15  ;;  %v647_v12 = vld [vmem:[%s4984_s8 + $0xc88] sm:$0xff]  ;;  %v4711_v15 = vcombine.low %v663_v0, %v671_v1 }
 0x222   : > { %3768 = vmatprep.subr.bf16.mxu0 %v4630_v20  ;;  %3811 = vmatprep.subr.bf16.mxu1 %v4632_v21  ;;  %v726_v20 = vld [vmem:[%s4984_s8 + $0xf00] sm:$0xff]  ;;  %v655_v13 = vld [vmem:[%s4984_s8 + $0xcc8] sm:$0xff] }
 0x223   : > { %v734_v21 = vld [vmem:[%s4984_s8 + $0xf40] sm:$0xff] }
 0x224   : > { %v4773_v38 = vcombine.low %v726_v20, %v734_v21 }
 0x229   : > { %3769 = vmatpush1.bf16.xpose.msra.mxu0 %v4629_v26  ;;  %3812 = vmatpush1.bf16.xpose.msra.mxu1 %v4631_v29  ;;  %v4774_v26 = vcombine.high %v726_v20, %v734_v21  ;;  %v4776_v29 = vcombine.high %v727_v22, %v735_v24  ;;  %v631_v20 = vld [vmem:[%s4984_s8 + $0xc08] sm:$0xff]  ;;  %v4695_v24 = vcombine.low %v647_v12, %v655_v13 }
 0x22a   : > { %3770 = vmatprep.subr.bf16.mxu0 %v4614_v30  ;;  %3813 = vmatprep.subr.bf16.mxu1 %v4616_v7  ;;  %v710_v30 = vld [vmem:[%s4984_s8 + $0xe80] sm:$0xff]  ;;  %v639_v21 = vld [vmem:[%s4984_s8 + $0xc48] sm:$0xff] }
 0x22b   : > { %v718_v7 = vld [vmem:[%s4984_s8 + $0xec0] sm:$0xff] }
 0x22c   : > { %v4757_v46 = vcombine.low %v710_v30, %v718_v7 }
 0x231   : > { %3771 = vmatpush1.bf16.xpose.msra.mxu0 %v4613_v40  ;;  %3814 = vmatpush1.bf16.xpose.msra.mxu1 %v4615_v41  ;;  %v4758_v40 = vcombine.high %v710_v30, %v718_v7  ;;  %v4760_v41 = vcombine.high %v711_v32, %v719_v33  ;;  %v617_v30 = vld [vmem:[%s4984_s8 + $0xb98] sm:$0xff]  ;;  %v4679_v33 = vcombine.low %v631_v20, %v639_v21 }
 0x232   : > { %3772 = vmatprep.subr.bf16.mxu0 %v4598_v42  ;;  %3815 = vmatprep.subr.bf16.mxu1 %v4600_v43  ;;  %v694_v42 = vld [vmem:[%s4984_s8 + $0xe00] sm:$0xff]  ;;  %v625_v7 = vld [vmem:[%s4984_s8 + $0xbd8] sm:$0xff] }
 0x233   : > { %v702_v43 = vld [vmem:[%s4984_s8 + $0xe40] sm:$0xff] }
 0x234   : > { %v4741_v56 = vcombine.low %v694_v42, %v702_v43 }
 0x239   : > { %3773 = vmatpush1.bf16.xpose.msra.mxu0 %v4597_v48  ;;  %3816 = vmatpush1.bf16.xpose.msra.mxu1 %v4599_v49  ;;  %v4742_v48 = vcombine.high %v694_v42, %v702_v43  ;;  %v4744_v49 = vcombine.high %v695_v44, %v703_v45  ;;  %v601_v42 = vld [vmem:[%s4984_s8 + $0xb18] sm:$0xff]  ;;  %v4667_v45 = vcombine.low %v617_v30, %v625_v7 }
 0x23a   : > { %3774 = vmatprep.subr.bf16.mxu0 %v4582_v50  ;;  %3817 = vmatprep.subr.bf16.mxu1 %v4584_v52  ;;  %v678_v50 = vld [vmem:[%s4984_s8 + $0xd80] sm:$0xff]  ;;  %v609_v43 = vld [vmem:[%s4984_s8 + $0xb58] sm:$0xff] }
 0x23b   : > { %v686_v52 = vld [vmem:[%s4984_s8 + $0xdc0] sm:$0xff] }
 0x23c   : > { %v4725_v2 = vcombine.low %v678_v50, %v686_v52 }
 0x241   : > { %3775 = vmatpush1.bf16.xpose.msra.mxu0 %v4581_v58  ;;  %3818 = vmatpush1.bf16.xpose.msra.mxu1 %v4583_v59  ;;  %v4726_v58 = vcombine.high %v678_v50, %v686_v52  ;;  %v4728_v59 = vcombine.high %v679_v53, %v687_v54  ;;  %v585_v50 = vld [vmem:[%s4984_s8 + $0xa98] sm:$0xff] }
 0x242   : > { %3776 = vmatprep.subr.bf16.mxu0 %v4566_v62  ;;  %3819 = vmatprep.subr.bf16.mxu1 %v4568_v63  ;;  %v662_v62 = vld [vmem:[%s4984_s8 + $0xd00] sm:$0xff]  ;;  %v593_v52 = vld [vmem:[%s4984_s8 + $0xad8] sm:$0xff] }
 0x243   : > { %v670_v63 = vld [vmem:[%s4984_s8 + $0xd40] sm:$0xff] }
 0x244   : > { %v4709_v14 = vcombine.low %v662_v62, %v670_v63 }
 0x249   : > { %3777 = vmatpush1.bf16.xpose.msra.mxu0 %v4565_v8  ;;  %3820 = vmatpush1.bf16.xpose.msra.mxu1 %v4567_v9  ;;  %v4710_v8 = vcombine.high %v662_v62, %v670_v63  ;;  %v4712_v9 = vcombine.high %v663_v0, %v671_v1  ;;  %v4635_v62 = vcombine.low %v585_v50, %v593_v52  ;;  %v552_v0 = vld [vmem:[%s4984_s8 + $0x990] sm:$0xff] }
 0x24a   : > { %3778 = vmatprep.subr.bf16.mxu0 %v4550_v10  ;;  %3821 = vmatprep.subr.bf16.mxu1 %v4552_v11  ;;  %v646_v10 = vld [vmem:[%s4984_s8 + $0xc80] sm:$0xff]  ;;  %v560_v1 = vld [vmem:[%s4984_s8 + $0x9d0] sm:$0xff] }
 0x24b   : > { %v654_v11 = vld [vmem:[%s4984_s8 + $0xcc0] sm:$0xff] }
 0x24c   : > { %v4693_v22 = vcombine.low %v646_v10, %v654_v11 }
 0x251   : > { %3779 = vmatpush1.bf16.xpose.msra.mxu0 %v4549_v16  ;;  %3822 = vmatpush1.bf16.xpose.msra.mxu1 %v4551_v17  ;;  %v4694_v16 = vcombine.high %v646_v10, %v654_v11  ;;  %v4696_v17 = vcombine.high %v647_v12, %v655_v13  ;;  %v4602_v11 = vcombine.high %v552_v0, %v560_v1  ;;  %v5414_v12 = vpop.f32.mrf.mxu1 }
 0x252   : > { %3780 = vmatprep.subr.bf16.mxu0 %v4790_v18  ;;  %3823 = vmatprep.subr.bf16.mxu1 %v4792_v19  ;;  %v630_v18 = vld [vmem:[%s4984_s8 + $0xc00] sm:$0xff] }
 0x253   : > { %v638_v19 = vld [vmem:[%s4984_s8 + $0xc40] sm:$0xff] }
 0x254   : > { %v4677_v32 = vcombine.low %v630_v18, %v638_v19 }
 0x259   : > { %3781 = vmatpush2.bf16.xpose.msra.mxu0 %v4789_v25  ;;  %3824 = vmatpush2.bf16.xpose.msra.mxu1 %v4791_v4  ;;  %v4678_v25 = vcombine.high %v630_v18, %v638_v19  ;;  %v4680_v4 = vcombine.high %v631_v20, %v639_v21  ;;  %v537_v18 = vld [vmem:[%s4984_s8 + $0x918] sm:$0xff]  ;;  %v4601_v20 = vcombine.low %v552_v0, %v560_v1 }
 0x25a   : > { %3782 = vmatprep.subr.bf16.mxu0 %v4774_v26  ;;  %3825 = vmatprep.subr.bf16.mxu1 %v4776_v29  ;;  %v616_v26 = vld [vmem:[%s4984_s8 + $0xb90] sm:$0xff]  ;;  %v545_v19 = vld [vmem:[%s4984_s8 + $0x958] sm:$0xff] }
 0x25b   : > { %v624_v29 = vld [vmem:[%s4984_s8 + $0xbd0] sm:$0xff] }
 0x25c   : > { %v4665_v44 = vcombine.low %v616_v26, %v624_v29 }
 0x261   : > { %3783 = vmatpush2.bf16.xpose.msra.mxu0 %v4773_v38  ;;  %3826 = vmatpush2.bf16.xpose.msra.mxu1 %v4775_v39  ;;  %v4666_v38 = vcombine.high %v616_v26, %v624_v29  ;;  %v4668_v39 = vcombine.high %v617_v30, %v625_v7  ;;  %v4588_v26 = vcombine.high %v537_v18, %v545_v19 }
 0x262   : > { %3784 = vmatprep.subr.bf16.mxu0 %v4758_v40  ;;  %3827 = vmatprep.subr.bf16.mxu1 %v4760_v41  ;;  %v600_v40 = vld [vmem:[%s4984_s8 + $0xb10] sm:$0xff] }
 0x263   : > { %v608_v41 = vld [vmem:[%s4984_s8 + $0xb50] sm:$0xff] }
 0x264   : > { %v4649_v53 = vcombine.low %v600_v40, %v608_v41 }
 0x269   : > { %3785 = vmatpush2.bf16.xpose.msra.mxu0 %v4757_v46  ;;  %3828 = vmatpush2.bf16.xpose.msra.mxu1 %v4759_v47  ;;  %v4650_v46 = vcombine.high %v600_v40, %v608_v41  ;;  %v4652_v47 = vcombine.high %v601_v42, %v609_v43  ;;  %v529_v40 = vld [vmem:[%s4984_s8 + $0x8d8] sm:$0xff] }
 0x26a   : > { %3786 = vmatprep.subr.bf16.mxu0 %v4742_v48  ;;  %3829 = vmatprep.subr.bf16.mxu1 %v4744_v49  ;;  %v584_v48 = vld [vmem:[%s4984_s8 + $0xa90] sm:$0xff] }
 0x26b   : > { %v592_v49 = vld [vmem:[%s4984_s8 + $0xad0] sm:$0xff] }
 0x26c   : > { %v4634_v54 = vcombine.high %v584_v48, %v592_v49 }
 0x271   : > { %3787 = vmatpush2.bf16.xpose.msra.mxu0 %v4741_v56  ;;  %3830 = vmatpush2.bf16.xpose.msra.mxu1 %v4743_v57  ;;  %v568_v56 = vld [vmem:[%s4984_s8 + $0xa10] sm:$0xff] }
 0x272   : > { %3788 = vmatprep.subr.bf16.mxu0 %v4726_v58  ;;  %3831 = vmatprep.subr.bf16.mxu1 %v4728_v59  ;;  %v576_v57 = vld [vmem:[%s4984_s8 + $0xa50] sm:$0xff]  ;;  %v569_v58 = vld [vmem:[%s4984_s8 + $0xa18] sm:$0xff]  ;;  %v4633_v59 = vcombine.low %v584_v48, %v592_v49 }
 0x273   : > { %v4618_v63 = vcombine.high %v568_v56, %v576_v57 }
 0x279   : > { %3789 = vmatpush2.bf16.xpose.msra.mxu0 %v4725_v2  ;;  %3832 = vmatpush2.bf16.xpose.msra.mxu1 %v4727_v5  ;;  %v553_v2 = vld [vmem:[%s4984_s8 + $0x998] sm:$0xff] }
 0x27a   : > { %3790 = vmatprep.subr.bf16.mxu0 %v4710_v8  ;;  %3833 = vmatprep.subr.bf16.mxu1 %v4712_v9  ;;  %v561_v5 = vld [vmem:[%s4984_s8 + $0x9d8] sm:$0xff]  ;;  %v4617_v8 = vcombine.low %v568_v56, %v576_v57  ;;  %v5412_v9 = vpop.f32.mrf.mxu0 }
 0x27b   : > { %v4604_v13 = vcombine.high %v553_v2, %v561_v5  ;;  %v513_v56 = vld [vmem:[%s4984_s8 + $0x858] sm:$0xff] }
 0x281   : > { %3791 = vmatpush2.bf16.xpose.msra.mxu0 %v4709_v14  ;;  %3834 = vmatpush2.bf16.xpose.msra.mxu1 %v4711_v15  ;;  %v3456_v14 = vpop.f32.mrf.mxu0  ;;  %v5417_v15 = vpop.f32.mrf.mxu1 }
 0x282   : > { %3792 = vmatprep.subr.bf16.mxu0 %v4694_v16  ;;  %3835 = vmatprep.subr.bf16.mxu1 %v4696_v17  ;;  %v536_v16 = vld [vmem:[%s4984_s8 + $0x910] sm:$0xff] }
 0x283   : > { %v544_v17 = vld [vmem:[%s4984_s8 + $0x950] sm:$0xff]  ;;  %v3458_v21 = vpop.f32.mrf.mxu0 }
 0x285   : > { %v3460_v29 = vpop.f32.mrf.mxu0 }
 0x289   : > { %3793 = vmatpush2.bf16.xpose.msra.mxu0 %v4693_v22  ;;  %3836 = vmatpush2.bf16.xpose.msra.mxu1 %v4695_v24  ;;  %v4603_v22 = vcombine.low %v553_v2, %v561_v5  ;;  %v4586_v24 = vcombine.high %v536_v16, %v544_v17 }
 0x28a   : > { %3794 = vmatprep.subr.bf16.mxu0 %v4678_v25  ;;  %3837 = vmatprep.subr.bf16.mxu1 %v4680_v4  ;;  %v760_v25 = vlaneseq  ;;  %v5423_v4 = vpop.f32.mrf.mxu1 }
 0x28c   : > { %v5425_v30 = vshrl.u32 %v760_v25, 7  ;;  %v3503_v7 = vpop.f32.mrf.mxu1 }
 0x28e   : > { %v3583_v41 = vpop.f32.mrf.mxu1  ;;  %v766_v49 = vsub.s32 1, %v5425_v30 }
 0x291   : > { %3795 = vmatpush2.bf16.xpose.msra.mxu0 %v4677_v32  ;;  %3838 = vmatpush2.bf16.xpose.msra.mxu1 %v4679_v33  ;;  %v520_v32 = vld [vmem:[%s4984_s8 + $0x890] sm:$0xff] }
 0x292   : > { %3850 = vmatprep.subr.bf16.mxu0 %v4666_v38  ;;  %3893 = vmatprep.subr.bf16.mxu1 %v4668_v39  ;;  %v528_v33 = vld [vmem:[%s4984_s8 + $0x8d0] sm:$0xff]  ;;  %v3540_v38 = vpop.f32.mrf.mxu0  ;;  %v521_v39 = vld [vmem:[%s4984_s8 + $0x898] sm:$0xff] }
 0x294   : > { %v3542_v48 = vpop.f32.mrf.mxu0 }
 0x298   : > { %3797 = vmatmul.mubr.bf16.vlgmr.msra.gmra.mxu0 %v4974_v3  ;;  %3840 = vmatmul.mubr.bf16.vlgmr.msra.gmra.mxu1 %v4986_v6  ;;  %v4651_v3 = vcombine.low %v601_v42, %v609_v43  ;;  %v4636_v6 = vcombine.high %v585_v50, %v593_v52  ;;  %v4585_v42 = vcombine.low %v536_v16, %v544_v17  ;;  %v3585_v50 = vpop.f32.mrf.mxu1  ;;  %v752_v16 = vld [vmem:[%s4984_s8 + $0xfd0] sm:$0xff]  ;;  %v745_v17 = vld [vmem:[%s4984_s8 + $0xf98] sm:$0xff] }
 0x299   : > { %3851 = vmatpush1.bf16.xpose.msra.mxu0 %v4665_v44  ;;  %3894 = vmatpush1.bf16.xpose.msra.mxu1 %v4667_v45  ;;  %v4587_v43 = vcombine.low %v537_v18, %v545_v19  ;;  %v4570_v44 = vcombine.high %v520_v32, %v528_v33  ;;  %v762_v45 = vsub.s32 0, %v5425_v30  ;;  %v753_v18 = vld [vmem:[%s4984_s8 + $0xfd8] sm:$0xff] }
 0x29a   : > { %3852 = vmatprep.subr.bf16.mxu0 %v4650_v46  ;;  %3895 = vmatprep.subr.bf16.mxu1 %v4652_v47  ;;  %v4572_v46 = vcombine.high %v521_v39, %v529_v40  ;;  %v758_v47 = vld [vmem:[%s5434_s26] sm:$0xf] }
 0x29b   : > { %3882 = vmatprep.mubr.bf16.mxu0 %v5080_v36  ;;  %3925 = vmatprep.mubr.bf16.mxu1 %v5083_v37  ;;  %v577_v36 = vld [vmem:[%s4984_s8 + $0xa58] sm:$0xff]  ;;  %v763_v52 = vrot.slane %v758_v47, %v762_v45  ;;  %v767_v57 = vrot.slane %v758_v47, %v766_v49 }
 0x29c   : > { %v4620_v37 = vcombine.high %v569_v58, %v577_v36  ;;  %v4619_v10 = vcombine.low %v569_v58, %v577_v36  ;;  %v3587_v58 = vpop.f32.mrf.mxu1  ;;  %v4569_v36 = vcombine.low %v520_v32, %v528_v33  ;;  %v729_v45 = vld [vmem:[%s4984_s8 + $0xf18] sm:$0xff] }
 0x29d   : > { %v3457_v1 = vadd.f32 %v3456_v14, %v767_v57  ;;  %v3461_v19 = vadd.f32 %v3460_v29, %v767_v57 }
 0x29e   : > { %v3589_v2 = vpop.f32.mrf.mxu1 }
 0x29f   : > { %v3504_v33 = vadd.f32 %v3503_v7, %v3461_v19  ;;  %v4795_v7 = vcombine.low %v745_v17, %v753_v18 }
 0x2a1   : > { %3853 = vmatpush1.bf16.xpose.msra.mxu0 %v4649_v53  ;;  %3896 = vmatpush1.bf16.xpose.msra.mxu1 %v4651_v3  ;;  %v504_v53 = vld [vmem:[%s4984_s8 + $0x810] sm:$0xff] }
 0x2a2   : > { %3854 = vmatprep.subr.bf16.mxu0 %v4634_v54  ;;  %3897 = vmatprep.subr.bf16.mxu1 %v4636_v6  ;;  %v512_v3 = vld [vmem:[%s4984_s8 + $0x850] sm:$0xff]  ;;  %v3544_v54 = vpop.f32.mrf.mxu0  ;;  %v505_v6 = vld [vmem:[%s4984_s8 + $0x818] sm:$0xff] }
 0x2a4   : > { %v3546_v0 = vpop.f32.mrf.mxu0 }
 0x2a6   : > { %v3626_v5 = vpop.f32.mrf.mxu0 }
 0x2a8   : > { %v3628_v14 = vpop.f32.mrf.mxu0 }
 0x2a9   : > { %3855 = vmatpush1.bf16.xpose.msra.mxu0 %v4633_v59  ;;  %3898 = vmatpush1.bf16.xpose.msra.mxu1 %v4635_v62  ;;  %v4571_v59 = vcombine.low %v521_v39, %v529_v40  ;;  %v4554_v62 = vcombine.high %v504_v53, %v512_v3 }
 0x2aa   : > { %3856 = vmatprep.subr.bf16.mxu0 %v4618_v63  ;;  %3899 = vmatprep.subr.bf16.mxu1 %v4620_v37  ;;  %v3455_v63 = vadd.f32 %v5412_v9, %v763_v52  ;;  %v4556_v37 = vcombine.high %v505_v6, %v513_v56  ;;  %v3500_v9 = vadd.f32 %v5417_v15, %v3457_v1  ;;  %v3630_v15 = vpop.f32.mrf.mxu0 }
 0x2ac   : > { %v3543_v32 = vadd.f32 %v3542_v48, %v3500_v9 }
 0x2ae   : > { %v3586_v29 = vadd.f32 %v3585_v50, %v3543_v32 }
 0x2b0   : > { %v3629_v48 = vadd.f32 %v3628_v14, %v3586_v29  ;;  %v704_v29 = vld [vmem:[%s4984_s8 + $0xe50] sm:$0xff] }
 0x2b1   : > { %3857 = vmatpush1.bf16.xpose.msra.mxu0 %v4617_v8  ;;  %3900 = vmatpush1.bf16.xpose.msra.mxu1 %v4619_v10  ;;  %v3498_v8 = vadd.f32 %v5414_v12, %v3455_v63  ;;  %v3459_v10 = vadd.f32 %v3458_v21, %v763_v52  ;;  %v4796_v21 = vcombine.high %v745_v17, %v753_v18  ;;  %v3632_v52 = vpop.f32.mrf.mxu0  ;;  %v712_v63 = vld [vmem:[%s4984_s8 + $0xe90] sm:$0xff] }
 0x2b2   : > { %3858 = vmatprep.subr.bf16.mxu0 %v4602_v11  ;;  %3901 = vmatprep.subr.bf16.mxu1 %v4604_v13  ;;  %v3669_v11 = vpop.f32.mrf.mxu1  ;;  %v744_v13 = vld [vmem:[%s4984_s8 + $0xf90] sm:$0xff] }
 0x2b3   : > { %v4794_v25 = vcombine.high %v744_v13, %v752_v16  ;;  %v4793_v49 = vcombine.low %v744_v13, %v752_v16 }
 0x2b4   : > { %v3671_v12 = vpop.f32.mrf.mxu1 }
 0x2b5   : > { %v3672_v57 = vadd.f32 %v3671_v12, %v3629_v48  ;;  %v688_v48 = vld [vmem:[%s4984_s8 + $0xdd0] sm:$0xff] }
 0x2b9   : > { %3859 = vmatpush1.bf16.xpose.msra.mxu0 %v4601_v20  ;;  %3902 = vmatpush1.bf16.xpose.msra.mxu1 %v4603_v22  ;;  %v3541_v20 = vadd.f32 %v3540_v38, %v3498_v8  ;;  %v4553_v22 = vcombine.low %v504_v53, %v512_v3  ;;  %v3547_v38 = vadd.f32 %v3546_v0, %v3504_v33  ;;  %v713_v8 = vld [vmem:[%s4984_s8 + $0xe98] sm:$0xff] }
 0x2ba   : > { %3860 = vmatprep.subr.bf16.mxu0 %v4586_v24  ;;  %3903 = vmatprep.subr.bf16.mxu1 %v4588_v26  ;;  %v4555_v24 = vcombine.low %v505_v6, %v513_v56  ;;  %v3502_v26 = vadd.f32 %v5423_v4, %v3459_v10  ;;  %v728_v4 = vld [vmem:[%s4984_s8 + $0xf10] sm:$0xff]  ;;  %v721_v10 = vld [vmem:[%s4984_s8 + $0xed8] sm:$0xff] }
 0x2bb   : > { %v3584_v39 = vadd.f32 %v3583_v41, %v3541_v20  ;;  %v3590_v53 = vadd.f32 %v3589_v2, %v3547_v38  ;;  %v4764_v14 = vcombine.high %v713_v8, %v721_v10  ;;  %v697_v38 = vld [vmem:[%s4984_s8 + $0xe18] sm:$0xff] }
 0x2bc   : > { %v3545_v40 = vadd.f32 %v3544_v54, %v3502_v26 }
 0x2be   : > { %v3588_v47 = vadd.f32 %v3587_v58, %v3545_v40 }
 0x2c0   : > { %v3631_v54 = vadd.f32 %v3630_v15, %v3588_v47  ;;  %v696_v15 = vld [vmem:[%s4984_s8 + $0xe10] sm:$0xff] }
 0x2c1   : > { %3861 = vmatpush1.bf16.xpose.msra.mxu0 %v4585_v42  ;;  %3904 = vmatpush1.bf16.xpose.msra.mxu1 %v4587_v43  ;;  %v3627_v42 = vadd.f32 %v3626_v5, %v3584_v39  ;;  %v3673_v43 = vpop.f32.mrf.mxu1  ;;  %v720_v5 = vld [vmem:[%s4984_s8 + $0xed0] sm:$0xff] }
 0x2c2   : > { %3862 = vmatprep.subr.bf16.mxu0 %v4570_v44  ;;  %3905 = vmatprep.subr.bf16.mxu1 %v4572_v46  ;;  %v736_v44 = vld [vmem:[%s4984_s8 + $0xf50] sm:$0xff]  ;;  %v737_v46 = vld [vmem:[%s4984_s8 + $0xf58] sm:$0xff] }
 0x2c3   : > { %v4778_v41 = vcombine.high %v728_v4, %v736_v44  ;;  %v3670_v3 = vadd.f32 %v3669_v11, %v3627_v42  ;;  %v3675_v50 = vpop.f32.mrf.mxu1  ;;  %v4780_v6 = vcombine.high %v729_v45, %v737_v46  ;;  %v4777_v9 = vcombine.low %v728_v4, %v736_v44  ;;  %v705_v42 = vld [vmem:[%s4984_s8 + $0xe58] sm:$0xff]  ;;  %v680_v47 = vld [vmem:[%s4984_s8 + $0xd90] sm:$0xff] }
 0x2c4   : > { %v4779_v20 = vcombine.low %v729_v45, %v737_v46  ;;  %v4761_v4 = vcombine.low %v712_v63, %v720_v5  ;;  %v4763_v44 = vcombine.low %v713_v8, %v721_v10  ;;  %v4746_v45 = vcombine.high %v696_v15, %v704_v29  ;;  %v632_v10 = vld [vmem:[%s4984_s8 + $0xc10] sm:$0xff] }
 0x2c5   : > { %v4748_v46 = vcombine.high %v697_v38, %v705_v42 }
 0x2c9   : > { %3863 = vmatpush1.bf16.xpose.msra.mxu0 %v4569_v36  ;;  %3906 = vmatpush1.bf16.xpose.msra.mxu1 %v4571_v59  ;;  %v3633_v36 = vadd.f32 %v3632_v52, %v3590_v53  ;;  %v689_v52 = vld [vmem:[%s4984_s8 + $0xdd8] sm:$0xff]  ;;  %v4730_v53 = vcombine.high %v680_v47, %v688_v48 }
 0x2ca   : > { %3864 = vmatprep.subr.bf16.mxu0 %v4554_v62  ;;  %3907 = vmatprep.subr.bf16.mxu1 %v4556_v37  ;;  %v3674_v37 = vadd.f32 %v3673_v43, %v3631_v54  ;;  %v664_v54 = vld [vmem:[%s4984_s8 + $0xd10] sm:$0xff] }
 0x2cb   : > { %v3676_v13 = vadd.f32 %v3675_v50, %v3633_v36  ;;  %v672_v50 = vld [vmem:[%s4984_s8 + $0xd50] sm:$0xff] }
 0x2d1   : > { %3865 = vmatpush1.bf16.xpose.msra.mxu0 %v4553_v22  ;;  %3908 = vmatpush1.bf16.xpose.msra.mxu1 %v4555_v24  ;;  %v4762_v22 = vcombine.high %v712_v63, %v720_v5  ;;  %v656_v63 = vld [vmem:[%s4984_s8 + $0xcd0] sm:$0xff] }
 0x2d2   : > { %3866 = vmatprep.subr.bf16.mxu0 %v4794_v25  ;;  %3909 = vmatprep.subr.bf16.mxu1 %v4796_v21 }
 0x2d8   : > { %v3712_v56 = vpop.f32.mrf.mxu0  ;;  %v3755_v58 = vpop.f32.mrf.mxu1 }
 0x2d9   : > { %v3713_v59 = vadd.f32 %v3712_v56, %v3670_v3  ;;  %3867 = vmatpush2.bf16.xpose.msra.mxu0 %v4793_v49  ;;  %3910 = vmatpush2.bf16.xpose.msra.mxu1 %v4795_v7  ;;  %v681_v49 = vld [vmem:[%s4984_s8 + $0xd98] sm:$0xff]  ;;  %v4745_v7 = vcombine.low %v696_v15, %v704_v29 }
 0x2da   : > { %v3714_v62 = vpop.f32.mrf.mxu0  ;;  %3868 = vmatprep.subr.bf16.mxu0 %v4778_v41  ;;  %v3757_v2 = vpop.f32.mrf.mxu1  ;;  %3911 = vmatprep.subr.bf16.mxu1 %v4780_v6  ;;  %v4747_v41 = vcombine.low %v697_v38, %v705_v42  ;;  %v4732_v3 = vcombine.high %v681_v49, %v689_v52  ;;  %v665_v6 = vld [vmem:[%s4984_s8 + $0xd18] sm:$0xff]  ;;  %v4731_v36 = vcombine.low %v681_v49, %v689_v52  ;;  %v578_v49 = vld [vmem:[%s4984_s8 + $0xa60] sm:$0xff]  ;;  %v571_v52 = vld [vmem:[%s4984_s8 + $0xa28] sm:$0xff] }
 0x2db   : > { %v3756_v0 = vadd.f32 %v3755_v58, %v3713_v59  ;;  %v3715_v1 = vadd.f32 %v3714_v62, %v3672_v57  ;;  %v673_v56 = vld [vmem:[%s4984_s8 + $0xd58] sm:$0xff]  ;;  %v4729_v57 = vcombine.low %v680_v47, %v688_v48  ;;  %v4714_v59 = vcombine.high %v664_v54, %v672_v50  ;;  %v648_v62 = vld [vmem:[%s4984_s8 + $0xc90] sm:$0xff]  ;;  %v570_v48 = vld [vmem:[%s4984_s8 + $0xa20] sm:$0xff] }
 0x2dc   : > { %v3716_v11 = vpop.f32.mrf.mxu0  ;;  %v3759_v18 = vpop.f32.mrf.mxu1  ;;  %v4716_v58 = vcombine.high %v665_v6, %v673_v56  ;;  %v4698_v5 = vcombine.high %v648_v62, %v656_v63 }
 0x2dd   : > { %v3758_v16 = vadd.f32 %v3757_v2, %v3715_v1  ;;  %v3717_v17 = vadd.f32 %v3716_v11, %v3674_v37  ;;  %v4108_v24 = vmax.f32 %v3756_v0, 0.0  ;;  %v649_v37 = vld [vmem:[%s4984_s8 + $0xc98] sm:$0xff]  ;;  %v4713_v1 = vcombine.low %v664_v54, %v672_v50  ;;  %v640_v11 = vld [vmem:[%s4984_s8 + $0xc50] sm:$0xff]  ;;  %v562_v54 = vld [vmem:[%s4984_s8 + $0x9e0] sm:$0xff] }
 0x2de   : > { %v3718_v19 = vpop.f32.mrf.mxu0  ;;  %v3761_v12 = vpop.f32.mrf.mxu1  ;;  %v657_v0 = vld [vmem:[%s4984_s8 + $0xcd8] sm:$0xff]  ;;  %v4715_v2 = vcombine.low %v665_v6, %v673_v56  ;;  %v555_v50 = vld [vmem:[%s4984_s8 + $0x9a8] sm:$0xff]  ;;  %v4621_v56 = vcombine.low %v570_v48, %v578_v49 }
 0x2df   : > { %v4109_v25 = vmax.f32 %v3758_v16, 0.0  ;;  %v3760_v26 = vadd.f32 %v3759_v18, %v3717_v17  ;;  %v3719_v32 = vadd.f32 %v3718_v19, %v3676_v13  ;;  %v4700_v8 = vcombine.high %v649_v37, %v657_v0  ;;  %v633_v13 = vld [vmem:[%s4984_s8 + $0xc18] sm:$0xff]  ;;  %v563_v6 = vld [vmem:[%s4984_s8 + $0x9e8] sm:$0xff] }
 0x2e0   : > { %v641_v16 = vld [vmem:[%s4984_s8 + $0xc58] sm:$0xff]  ;;  %v4697_v17 = vcombine.low %v648_v62, %v656_v63  ;;  %v4699_v18 = vcombine.low %v649_v37, %v657_v0  ;;  %v546_v62 = vld [vmem:[%s4984_s8 + $0x960] sm:$0xff]  ;;  %v539_v63 = vld [vmem:[%s4984_s8 + $0x928] sm:$0xff] }
 0x2e1   : > { %v4815_v21 = vpack.c.bf16 %v4109_v25, %v4108_v24  ;;  %v3762_v33 = vadd.f32 %v3761_v12, %v3719_v32  ;;  %3869 = vmatpush2.bf16.xpose.msra.mxu0 %v4777_v9  ;;  %3912 = vmatpush2.bf16.xpose.msra.mxu1 %v4779_v20  ;;  %v4112_v39 = vmax.f32 %v3760_v26, 0.0  ;;  %v4682_v9 = vcombine.high %v632_v10, %v640_v11  ;;  %v618_v20 = vld [vmem:[%s4984_s8 + $0xba0] sm:$0xff]  ;;  %v627_v24 = vld [vmem:[%s4984_s8 + $0xbe8] sm:$0xff] }
 0x2e2   : > { %3870 = vmatprep.subr.bf16.mxu0 %v4762_v22  ;;  %3913 = vmatprep.subr.bf16.mxu1 %v4764_v14  ;;  %v4684_v19 = vcombine.high %v633_v13, %v641_v16  ;;  %v626_v22 = vld [vmem:[%s4984_s8 + $0xbe0] sm:$0xff]  ;;  %v619_v14 = vld [vmem:[%s4984_s8 + $0xba8] sm:$0xff]  ;;  %v4681_v25 = vcombine.low %v632_v10, %v640_v11  ;;  %v4683_v26 = vcombine.low %v633_v13, %v641_v16 }
 0x2e3   : > { %4140 = vst [vmem:[%s5460_s12] sm:$0xff] %v4815_v21  ;;  %v4113_v40 = vmax.f32 %v3762_v33, 0.0  ;;  %v4670_v32 = vcombine.high %v618_v20, %v626_v22  ;;  %v4672_v12 = vcombine.high %v619_v14, %v627_v24  ;;  %v602_v21 = vld [vmem:[%s4984_s8 + $0xb20] sm:$0xff]  ;;  %v4669_v15 = vcombine.low %v618_v20, %v626_v22  ;;  %v547_v37 = vld [vmem:[%s4984_s8 + $0x968] sm:$0xff] }
 0x2e4   : > { %v610_v33 = vld [vmem:[%s4984_s8 + $0xb60] sm:$0xff]  ;;  %v4671_v29 = vcombine.low %v619_v14, %v627_v24  ;;  %v523_v11 = vld [vmem:[%s4984_s8 + $0x8a8] sm:$0xff] }
 0x2e5   : > { %v4817_v43 = vpack.c.bf16 %v4113_v40, %v4112_v39  ;;  %v603_v39 = vld [vmem:[%s4984_s8 + $0xb28] sm:$0xff]  ;;  %v4654_v38 = vcombine.high %v602_v21, %v610_v33  ;;  %v530_v10 = vld [vmem:[%s4984_s8 + $0x8e0] sm:$0xff] }
 0x2e6   : > { %v611_v40 = vld [vmem:[%s4984_s8 + $0xb68] sm:$0xff]  ;;  %v514_v20 = vld [vmem:[%s4984_s8 + $0x860] sm:$0xff] }
 0x2e7   : > { %4142 = vst [vmem:[%s5460_s12 + $0x10] sm:$0xff] %v4817_v43  ;;  %v4656_v42 = vcombine.high %v603_v39, %v611_v40  ;;  %v586_v43 = vld [vmem:[%s4984_s8 + $0xaa0] sm:$0xff]  ;;  %v531_v13 = vld [vmem:[%s4984_s8 + $0x8e8] sm:$0xff] }
 0x2e8   : > { %v507_v22 = vld [vmem:[%s4984_s8 + $0x828] sm:$0xff] }
 0x2e9   : > { %3871 = vmatpush2.bf16.xpose.msra.mxu0 %v4761_v4  ;;  %3914 = vmatpush2.bf16.xpose.msra.mxu1 %v4763_v44  ;;  %v594_v4 = vld [vmem:[%s4984_s8 + $0xae0] sm:$0xff]  ;;  %v587_v44 = vld [vmem:[%s4984_s8 + $0xaa8] sm:$0xff] }
 0x2ea   : > { %3872 = vmatprep.subr.bf16.mxu0 %v4746_v45  ;;  %3915 = vmatprep.subr.bf16.mxu1 %v4748_v46  ;;  %v595_v45 = vld [vmem:[%s4984_s8 + $0xae8] sm:$0xff]  ;;  %v4653_v46 = vcombine.low %v602_v21, %v610_v33  ;;  %v4638_v47 = vcombine.high %v586_v43, %v594_v4  ;;  %v754_v21 = vld [vmem:[%s4984_s8 + $0xfe0] sm:$0xff] }
 0x2eb   : > { %v515_v14 = vld [vmem:[%s4984_s8 + $0x868] sm:$0xff] }
 0x2ec   : > { %v747_v33 = vld [vmem:[%s4984_s8 + $0xfa8] sm:$0xff] }
 0x2f1   : > { %3873 = vmatpush2.bf16.xpose.msra.mxu0 %v4745_v7  ;;  %3916 = vmatpush2.bf16.xpose.msra.mxu1 %v4747_v41  ;;  %v4637_v7 = vcombine.low %v586_v43, %v594_v4  ;;  %v4639_v41 = vcombine.low %v587_v44, %v595_v45  ;;  %v738_v43 = vld [vmem:[%s4984_s8 + $0xf60] sm:$0xff]  ;;  %v731_v4 = vld [vmem:[%s4984_s8 + $0xf28] sm:$0xff] }
 0x2f2   : > { %3874 = vmatprep.subr.bf16.mxu0 %v4730_v53  ;;  %3917 = vmatprep.subr.bf16.mxu1 %v4732_v3  ;;  %v4622_v53 = vcombine.high %v570_v48, %v578_v49  ;;  %v554_v3 = vld [vmem:[%s4984_s8 + $0x9a0] sm:$0xff]  ;;  %v715_v49 = vld [vmem:[%s4984_s8 + $0xea8] sm:$0xff] }
 0x2f3   : > { %v4605_v0 = vcombine.low %v554_v3, %v562_v54  ;;  %v722_v48 = vld [vmem:[%s4984_s8 + $0xee0] sm:$0xff] }
 0x2f9   : > { %3875 = vmatpush2.bf16.xpose.msra.mxu0 %v4729_v57  ;;  %3918 = vmatpush2.bf16.xpose.msra.mxu1 %v4731_v36  ;;  %v4606_v36 = vcombine.high %v554_v3, %v562_v54  ;;  %v706_v3 = vld [vmem:[%s4984_s8 + $0xe60] sm:$0xff]  ;;  %v699_v54 = vld [vmem:[%s4984_s8 + $0xe28] sm:$0xff] }
 0x2fa   : > { %3876 = vmatprep.subr.bf16.mxu0 %v4714_v59  ;;  %3919 = vmatprep.subr.bf16.mxu1 %v4716_v58  ;;  %v4608_v59 = vcombine.high %v555_v50, %v563_v6  ;;  %v538_v58 = vld [vmem:[%s4984_s8 + $0x920] sm:$0xff] }
 0x2fb   : > { %v4589_v16 = vcombine.low %v538_v58, %v546_v62 }
 0x301   : > { %3877 = vmatpush2.bf16.xpose.msra.mxu0 %v4713_v1  ;;  %3920 = vmatpush2.bf16.xpose.msra.mxu1 %v4715_v2  ;;  %v4607_v1 = vcombine.low %v555_v50, %v563_v6  ;;  %v4590_v2 = vcombine.high %v538_v58, %v546_v62  ;;  %v707_v50 = vld [vmem:[%s4984_s8 + $0xe68] sm:$0xff]  ;;  %v690_v58 = vld [vmem:[%s4984_s8 + $0xde0] sm:$0xff] }
 0x302   : > { %3878 = vmatprep.subr.bf16.mxu0 %v4698_v5  ;;  %3921 = vmatprep.subr.bf16.mxu1 %v4700_v8  ;;  %v4592_v5 = vcombine.high %v539_v63, %v547_v37  ;;  %v522_v8 = vld [vmem:[%s4984_s8 + $0x8a0] sm:$0xff]  ;;  %v683_v62 = vld [vmem:[%s4984_s8 + $0xda8] sm:$0xff] }
 0x303   : > { %v4573_v24 = vcombine.low %v522_v8, %v530_v10 }
 0x309   : > { %3879 = vmatpush2.bf16.xpose.msra.mxu0 %v4697_v17  ;;  %3922 = vmatpush2.bf16.xpose.msra.mxu1 %v4699_v18  ;;  %v4591_v17 = vcombine.low %v539_v63, %v547_v37  ;;  %v4574_v18 = vcombine.high %v522_v8, %v530_v10  ;;  %v691_v63 = vld [vmem:[%s4984_s8 + $0xde8] sm:$0xff]  ;;  %v674_v8 = vld [vmem:[%s4984_s8 + $0xd60] sm:$0xff] }
 0x30a   : > { %3880 = vmatprep.subr.bf16.mxu0 %v4682_v9  ;;  %3923 = vmatprep.subr.bf16.mxu1 %v4684_v19  ;;  %v4576_v9 = vcombine.high %v523_v11, %v531_v13  ;;  %v506_v19 = vld [vmem:[%s4984_s8 + $0x820] sm:$0xff]  ;;  %v667_v10 = vld [vmem:[%s4984_s8 + $0xd28] sm:$0xff] }
 0x311   : > { %3881 = vmatpush2.bf16.xpose.msra.mxu0 %v4681_v25  ;;  %3924 = vmatpush2.bf16.xpose.msra.mxu1 %v4683_v26  ;;  %v4575_v25 = vcombine.low %v523_v11, %v531_v13  ;;  %v4558_v26 = vcombine.high %v506_v19, %v514_v20  ;;  %v675_v11 = vld [vmem:[%s4984_s8 + $0xd68] sm:$0xff] }
 0x312   : > { %3936 = vmatprep.subr.bf16.mxu0 %v4670_v32  ;;  %3979 = vmatprep.subr.bf16.mxu1 %v4672_v12  ;;  %v4560_v32 = vcombine.high %v507_v22, %v515_v14  ;;  %v746_v12 = vld [vmem:[%s4984_s8 + $0xfa0] sm:$0xff] }
 0x318   : > { %3883 = vmatmul.mubr.bf16.vlgmr.msra.gmra.mxu0 %v5071_v27  ;;  %3926 = vmatmul.mubr.bf16.vlgmr.msra.gmra.mxu1 %v5078_v31  ;;  %v4655_v27 = vcombine.low %v603_v39, %v611_v40  ;;  %v4640_v31 = vcombine.high %v587_v44, %v595_v45  ;;  %v755_v39 = vld [vmem:[%s4984_s8 + $0xfe8] sm:$0xff]  ;;  %v4557_v40 = vcombine.low %v506_v19, %v514_v20  ;;  %v658_v19 = vld [vmem:[%s4984_s8 + $0xce0] sm:$0xff] }
 0x319   : > { %3937 = vmatpush1.bf16.xpose.msra.mxu0 %v4669_v15  ;;  %3980 = vmatpush1.bf16.xpose.msra.mxu1 %v4671_v29  ;;  %v4559_v15 = vcombine.low %v507_v22, %v515_v14  ;;  %v4798_v29 = vcombine.high %v746_v12, %v754_v21  ;;  %v739_v44 = vld [vmem:[%s4984_s8 + $0xf68] sm:$0xff]  ;;  %v4797_v45 = vcombine.low %v746_v12, %v754_v21  ;;  %v642_v12 = vld [vmem:[%s4984_s8 + $0xc60] sm:$0xff] }
 0x31a   : > { %3938 = vmatprep.subr.bf16.mxu0 %v4654_v38  ;;  %3981 = vmatprep.subr.bf16.mxu1 %v4656_v42  ;;  %v4800_v38 = vcombine.high %v747_v33, %v755_v39  ;;  %v730_v42 = vld [vmem:[%s4984_s8 + $0xf20] sm:$0xff]  ;;  %v651_v20 = vld [vmem:[%s4984_s8 + $0xca8] sm:$0xff] }
 0x31b   : > { %3968 = vmatprep.mubr.bf16.mxu0 %v5168_v60  ;;  %4011 = vmatprep.mubr.bf16.mxu1 %v5171_v61  ;;  %v579_v60 = vld [vmem:[%s4984_s8 + $0xa68] sm:$0xff] }
 0x31c   : > { %v4624_v61 = vcombine.high %v571_v52, %v579_v60  ;;  %v4623_v57 = vcombine.low %v571_v52, %v579_v60  ;;  %v723_v52 = vld [vmem:[%s4984_s8 + $0xee8] sm:$0xff]  ;;  %v4781_v60 = vcombine.low %v730_v42, %v738_v43 }
 0x31d   : > { %v659_v22 = vld [vmem:[%s4984_s8 + $0xce8] sm:$0xff] }
 0x31e   : > { %v635_v21 = vld [vmem:[%s4984_s8 + $0xc28] sm:$0xff] }
 0x321   : > { %3939 = vmatpush1.bf16.xpose.msra.mxu0 %v4653_v46  ;;  %3982 = vmatpush1.bf16.xpose.msra.mxu1 %v4655_v27  ;;  %v4799_v46 = vcombine.low %v747_v33, %v755_v39  ;;  %v4782_v27 = vcombine.high %v730_v42, %v738_v43  ;;  %v643_v33 = vld [vmem:[%s4984_s8 + $0xc68] sm:$0xff]  ;;  %v628_v42 = vld [vmem:[%s4984_s8 + $0xbf0] sm:$0xff]  ;;  %v621_v43 = vld [vmem:[%s4984_s8 + $0xbb8] sm:$0xff] }
 0x322   : > { %3940 = vmatprep.subr.bf16.mxu0 %v4638_v47  ;;  %3983 = vmatprep.subr.bf16.mxu1 %v4640_v31  ;;  %v4784_v47 = vcombine.high %v731_v4, %v739_v44  ;;  %v714_v31 = vld [vmem:[%s4984_s8 + $0xea0] sm:$0xff] }
 0x323   : > { %v4765_v6 = vcombine.low %v714_v31, %v722_v48 }
 0x329   : > { %3941 = vmatpush1.bf16.xpose.msra.mxu0 %v4637_v7  ;;  %3984 = vmatpush1.bf16.xpose.msra.mxu1 %v4639_v41  ;;  %v4783_v7 = vcombine.low %v731_v4, %v739_v44  ;;  %v4766_v41 = vcombine.high %v714_v31, %v722_v48  ;;  %v629_v4 = vld [vmem:[%s4984_s8 + $0xbf8] sm:$0xff]  ;;  %v612_v31 = vld [vmem:[%s4984_s8 + $0xb70] sm:$0xff] }
 0x32a   : > { %3942 = vmatprep.subr.bf16.mxu0 %v4622_v53  ;;  %3985 = vmatprep.subr.bf16.mxu1 %v4624_v61  ;;  %v4768_v53 = vcombine.high %v715_v49, %v723_v52  ;;  %v698_v61 = vld [vmem:[%s4984_s8 + $0xe20] sm:$0xff]  ;;  %v605_v48 = vld [vmem:[%s4984_s8 + $0xb38] sm:$0xff] }
 0x32b   : > { %v4749_v37 = vcombine.low %v698_v61, %v706_v3 }
 0x331   : > { %3943 = vmatpush1.bf16.xpose.msra.mxu0 %v4621_v56  ;;  %3986 = vmatpush1.bf16.xpose.msra.mxu1 %v4623_v57  ;;  %v4767_v56 = vcombine.low %v715_v49, %v723_v52  ;;  %v4750_v57 = vcombine.high %v698_v61, %v706_v3  ;;  %v613_v49 = vld [vmem:[%s4984_s8 + $0xb78] sm:$0xff]  ;;  %v596_v61 = vld [vmem:[%s4984_s8 + $0xaf0] sm:$0xff] }
 0x332   : > { %3944 = vmatprep.subr.bf16.mxu0 %v4606_v36  ;;  %3987 = vmatprep.subr.bf16.mxu1 %v4608_v59  ;;  %v4752_v36 = vcombine.high %v699_v54, %v707_v50  ;;  %v682_v59 = vld [vmem:[%s4984_s8 + $0xda0] sm:$0xff]  ;;  %v589_v3 = vld [vmem:[%s4984_s8 + $0xab8] sm:$0xff] }
 0x333   : > { %v4733_v13 = vcombine.low %v682_v59, %v690_v58 }
 0x339   : > { %3945 = vmatpush1.bf16.xpose.msra.mxu0 %v4605_v0  ;;  %3988 = vmatpush1.bf16.xpose.msra.mxu1 %v4607_v1  ;;  %v4751_v0 = vcombine.low %v699_v54, %v707_v50  ;;  %v4734_v1 = vcombine.high %v682_v59, %v690_v58  ;;  %v597_v54 = vld [vmem:[%s4984_s8 + $0xaf8] sm:$0xff] }
 0x33a   : > { %3946 = vmatprep.subr.bf16.mxu0 %v4590_v2  ;;  %3989 = vmatprep.subr.bf16.mxu1 %v4592_v5  ;;  %v4736_v2 = vcombine.high %v683_v62, %v691_v63  ;;  %v666_v5 = vld [vmem:[%s4984_s8 + $0xd20] sm:$0xff]  ;;  %v4643_v58 = vcombine.low %v589_v3, %v597_v54 }
 0x33b   : > { %v4717_v14 = vcombine.low %v666_v5, %v674_v8 }
 0x341   : > { %3947 = vmatpush1.bf16.xpose.msra.mxu0 %v4589_v16  ;;  %3990 = vmatpush1.bf16.xpose.msra.mxu1 %v4591_v17  ;;  %v4735_v16 = vcombine.low %v683_v62, %v691_v63  ;;  %v4718_v17 = vcombine.high %v666_v5, %v674_v8  ;;  %v556_v63 = vld [vmem:[%s4984_s8 + $0x9b0] sm:$0xff] }
 0x342   : > { %3948 = vmatprep.subr.bf16.mxu0 %v4574_v18  ;;  %3991 = vmatprep.subr.bf16.mxu1 %v4576_v9  ;;  %v4720_v18 = vcombine.high %v667_v10, %v675_v11  ;;  %v650_v9 = vld [vmem:[%s4984_s8 + $0xca0] sm:$0xff] }
 0x343   : > { %v4701_v39 = vcombine.low %v650_v9, %v658_v19 }
 0x349   : > { %3949 = vmatpush1.bf16.xpose.msra.mxu0 %v4573_v24  ;;  %3992 = vmatpush1.bf16.xpose.msra.mxu1 %v4575_v25  ;;  %v4719_v24 = vcombine.low %v667_v10, %v675_v11  ;;  %v4702_v25 = vcombine.high %v650_v9, %v658_v19  ;;  %v540_v11 = vld [vmem:[%s4984_s8 + $0x930] sm:$0xff] }
 0x34a   : > { %3950 = vmatprep.subr.bf16.mxu0 %v4558_v26  ;;  %3993 = vmatprep.subr.bf16.mxu1 %v4560_v32  ;;  %v4704_v26 = vcombine.high %v651_v20, %v659_v22  ;;  %v634_v32 = vld [vmem:[%s4984_s8 + $0xc20] sm:$0xff] }
 0x34b   : > { %v4685_v44 = vcombine.low %v634_v32, %v642_v12 }
 0x351   : > { %3951 = vmatpush1.bf16.xpose.msra.mxu0 %v4557_v40  ;;  %3994 = vmatpush1.bf16.xpose.msra.mxu1 %v4559_v15  ;;  %v4703_v40 = vcombine.low %v651_v20, %v659_v22  ;;  %v4686_v15 = vcombine.high %v634_v32, %v642_v12  ;;  %v524_v22 = vld [vmem:[%s4984_s8 + $0x8b0] sm:$0xff] }
 0x352   : > { %3952 = vmatprep.subr.bf16.mxu0 %v4798_v29  ;;  %3995 = vmatprep.subr.bf16.mxu1 %v4800_v38  ;;  %v4688_v29 = vcombine.high %v635_v21, %v643_v33  ;;  %v620_v38 = vld [vmem:[%s4984_s8 + $0xbb0] sm:$0xff] }
 0x353   : > { %v4673_v52 = vcombine.low %v620_v38, %v628_v42 }
 0x359   : > { %3953 = vmatpush2.bf16.xpose.msra.mxu0 %v4797_v45  ;;  %3996 = vmatpush2.bf16.xpose.msra.mxu1 %v4799_v46  ;;  %v4687_v45 = vcombine.low %v635_v21, %v643_v33  ;;  %v4674_v46 = vcombine.high %v620_v38, %v628_v42  ;;  %v508_v33 = vld [vmem:[%s4984_s8 + $0x830] sm:$0xff] }
 0x35a   : > { %3954 = vmatprep.subr.bf16.mxu0 %v4782_v27  ;;  %3997 = vmatprep.subr.bf16.mxu1 %v4784_v47  ;;  %v4676_v27 = vcombine.high %v621_v43, %v629_v4  ;;  %v604_v47 = vld [vmem:[%s4984_s8 + $0xb30] sm:$0xff] }
 0x35b   : > { %v4657_v50 = vcombine.low %v604_v47, %v612_v31 }
 0x361   : > { %3955 = vmatpush2.bf16.xpose.msra.mxu0 %v4781_v60  ;;  %3998 = vmatpush2.bf16.xpose.msra.mxu1 %v4783_v7  ;;  %v4675_v60 = vcombine.low %v621_v43, %v629_v4  ;;  %v4658_v7 = vcombine.high %v604_v47, %v612_v31  ;;  %v748_v4 = vld [vmem:[%s4984_s8 + $0xfb0] sm:$0xff] }
 0x362   : > { %3956 = vmatprep.subr.bf16.mxu0 %v4766_v41  ;;  %3999 = vmatprep.subr.bf16.mxu1 %v4768_v53  ;;  %v4660_v41 = vcombine.high %v605_v48, %v613_v49  ;;  %v588_v53 = vld [vmem:[%s4984_s8 + $0xab0] sm:$0xff] }
 0x363   : > { %v4641_v59 = vcombine.low %v588_v53, %v596_v61 }
 0x369   : > { %3957 = vmatpush2.bf16.xpose.msra.mxu0 %v4765_v6  ;;  %4000 = vmatpush2.bf16.xpose.msra.mxu1 %v4767_v56  ;;  %v4642_v6 = vcombine.high %v588_v53, %v596_v61  ;;  %v572_v56 = vld [vmem:[%s4984_s8 + $0xa30] sm:$0xff] }
 0x36a   : > { %3958 = vmatprep.subr.bf16.mxu0 %v4750_v57  ;;  %4001 = vmatprep.subr.bf16.mxu1 %v4752_v36  ;;  %v580_v57 = vld [vmem:[%s4984_s8 + $0xa70] sm:$0xff]  ;;  %v573_v36 = vld [vmem:[%s4984_s8 + $0xa38] sm:$0xff] }
 0x36b   : > { %v4626_v62 = vcombine.high %v572_v56, %v580_v57 }
 0x371   : > { %3959 = vmatpush2.bf16.xpose.msra.mxu0 %v4749_v37  ;;  %4002 = vmatpush2.bf16.xpose.msra.mxu1 %v4751_v0  ;;  %v564_v37 = vld [vmem:[%s4984_s8 + $0x9f0] sm:$0xff]  ;;  %v557_v0 = vld [vmem:[%s4984_s8 + $0x9b8] sm:$0xff] }
 0x372   : > { %3960 = vmatprep.subr.bf16.mxu0 %v4734_v1  ;;  %4003 = vmatprep.subr.bf16.mxu1 %v4736_v2  ;;  %v565_v1 = vld [vmem:[%s4984_s8 + $0x9f8] sm:$0xff]  ;;  %v4625_v2 = vcombine.low %v572_v56, %v580_v57  ;;  %v4610_v8 = vcombine.high %v556_v63, %v564_v37 }
 0x373   : > { %v4612_v10 = vcombine.high %v557_v0, %v565_v1  ;;  %v4611_v9 = vcombine.low %v557_v0, %v565_v1  ;;  %v684_v1 = vld [vmem:[%s4984_s8 + $0xdb0] sm:$0xff] }
 0x379   : > { %3961 = vmatpush2.bf16.xpose.msra.mxu0 %v4733_v13  ;;  %4004 = vmatpush2.bf16.xpose.msra.mxu1 %v4735_v16  ;;  %v548_v13 = vld [vmem:[%s4984_s8 + $0x970] sm:$0xff]  ;;  %v541_v16 = vld [vmem:[%s4984_s8 + $0x938] sm:$0xff] }
 0x37a   : > { %3962 = vmatprep.subr.bf16.mxu0 %v4718_v17  ;;  %4005 = vmatprep.subr.bf16.mxu1 %v4720_v18  ;;  %v549_v17 = vld [vmem:[%s4984_s8 + $0x978] sm:$0xff]  ;;  %v4609_v18 = vcombine.low %v556_v63, %v564_v37  ;;  %v4594_v19 = vcombine.high %v540_v11, %v548_v13 }
 0x37b   : > { %v4596_v20 = vcombine.high %v541_v16, %v549_v17  ;;  %v4595_v32 = vcombine.low %v541_v16, %v549_v17  ;;  %v668_v17 = vld [vmem:[%s4984_s8 + $0xd30] sm:$0xff] }
 0x381   : > { %3963 = vmatpush2.bf16.xpose.msra.mxu0 %v4717_v14  ;;  %4006 = vmatpush2.bf16.xpose.msra.mxu1 %v4719_v24  ;;  %v532_v14 = vld [vmem:[%s4984_s8 + $0x8f0] sm:$0xff]  ;;  %v525_v24 = vld [vmem:[%s4984_s8 + $0x8b8] sm:$0xff] }
 0x382   : > { %3964 = vmatprep.subr.bf16.mxu0 %v4702_v25  ;;  %4007 = vmatprep.subr.bf16.mxu1 %v4704_v26  ;;  %v533_v25 = vld [vmem:[%s4984_s8 + $0x8f8] sm:$0xff]  ;;  %v4593_v26 = vcombine.low %v540_v11, %v548_v13  ;;  %v4578_v12 = vcombine.high %v524_v22, %v532_v14 }
 0x383   : > { %v4580_v21 = vcombine.high %v525_v24, %v533_v25  ;;  %v4579_v38 = vcombine.low %v525_v24, %v533_v25  ;;  %v652_v25 = vld [vmem:[%s4984_s8 + $0xcb0] sm:$0xff] }
 0x389   : > { %3965 = vmatpush2.bf16.xpose.msra.mxu0 %v4701_v39  ;;  %4008 = vmatpush2.bf16.xpose.msra.mxu1 %v4703_v40  ;;  %v516_v39 = vld [vmem:[%s4984_s8 + $0x870] sm:$0xff]  ;;  %v509_v40 = vld [vmem:[%s4984_s8 + $0x838] sm:$0xff] }
 0x38a   : > { %3966 = vmatprep.subr.bf16.mxu0 %v4686_v15  ;;  %4009 = vmatprep.subr.bf16.mxu1 %v4688_v29  ;;  %v517_v15 = vld [vmem:[%s4984_s8 + $0x878] sm:$0xff]  ;;  %v4577_v29 = vcombine.low %v524_v22, %v532_v14  ;;  %v4562_v42 = vcombine.high %v508_v33, %v516_v39 }
 0x38b   : > { %v4564_v43 = vcombine.high %v509_v40, %v517_v15  ;;  %v4563_v47 = vcombine.low %v509_v40, %v517_v15  ;;  %v636_v15 = vld [vmem:[%s4984_s8 + $0xc30] sm:$0xff] }
 0x391   : > { %3967 = vmatpush2.bf16.xpose.msra.mxu0 %v4685_v44  ;;  %4010 = vmatpush2.bf16.xpose.msra.mxu1 %v4687_v45  ;;  %v756_v44 = vld [vmem:[%s4984_s8 + $0xff0] sm:$0xff]  ;;  %v749_v45 = vld [vmem:[%s4984_s8 + $0xfb8] sm:$0xff] }
 0x392   : > { %4022 = vmatprep.subr.bf16.mxu0 %v4674_v46  ;;  %4065 = vmatprep.subr.bf16.mxu1 %v4676_v27  ;;  %v757_v46 = vld [vmem:[%s4984_s8 + $0xff8] sm:$0xff]  ;;  %v4561_v27 = vcombine.low %v508_v33, %v516_v39  ;;  %v4802_v31 = vcombine.high %v748_v4, %v756_v44 }
 0x393   : > { %v4803_v53 = vcombine.low %v749_v45, %v757_v46 }
 0x398   : > { %3969 = vmatmul.mubr.bf16.vlgmr.msra.gmra.mxu0 %v5159_v51  ;;  %4012 = vmatmul.mubr.bf16.vlgmr.msra.gmra.mxu1 %v5166_v55  ;;  %v4659_v51 = vcombine.low %v605_v48, %v613_v49  ;;  %v4644_v55 = vcombine.high %v589_v3, %v597_v54  ;;  %v4804_v48 = vcombine.high %v749_v45, %v757_v46  ;;  %v732_v49 = vld [vmem:[%s4984_s8 + $0xf30] sm:$0xff] }
 0x399   : > { %4023 = vmatpush1.bf16.xpose.msra.mxu0 %v4673_v52  ;;  %4066 = vmatpush1.bf16.xpose.msra.mxu1 %v4675_v60  ;;  %v740_v52 = vld [vmem:[%s4984_s8 + $0xf70] sm:$0xff]  ;;  %v733_v60 = vld [vmem:[%s4984_s8 + $0xf38] sm:$0xff] }
 0x39a   : > { %4024 = vmatprep.subr.bf16.mxu0 %v4658_v7  ;;  %4067 = vmatprep.subr.bf16.mxu1 %v4660_v41  ;;  %v741_v7 = vld [vmem:[%s4984_s8 + $0xf78] sm:$0xff]  ;;  %v4801_v41 = vcombine.low %v748_v4, %v756_v44  ;;  %v4786_v61 = vcombine.high %v732_v49, %v740_v52  ;;  %v716_v54 = vld [vmem:[%s4984_s8 + $0xeb0] sm:$0xff] }
 0x39b   : > { %4054 = vmatprep.mubr.bf16.mxu0 %v5256_v34  ;;  %4097 = vmatprep.mubr.bf16.mxu1 %v5259_v35  ;;  %v581_v34 = vld [vmem:[%s4984_s8 + $0xa78] sm:$0xff]  ;;  %v4788_v3 = vcombine.high %v733_v60, %v741_v7  ;;  %v4787_v56 = vcombine.low %v733_v60, %v741_v7 }
 0x39c   : > { %v4628_v35 = vcombine.high %v573_v36, %v581_v34  ;;  %v4627_v5 = vcombine.low %v573_v36, %v581_v34  ;;  %v700_v34 = vld [vmem:[%s4984_s8 + $0xe30] sm:$0xff] }
 0x3a1   : > { %4025 = vmatpush1.bf16.xpose.msra.mxu0 %v4657_v50  ;;  %4068 = vmatpush1.bf16.xpose.msra.mxu1 %v4659_v51  ;;  %v724_v50 = vld [vmem:[%s4984_s8 + $0xef0] sm:$0xff]  ;;  %v717_v51 = vld [vmem:[%s4984_s8 + $0xeb8] sm:$0xff] }
 0x3a2   : > { %4026 = vmatprep.subr.bf16.mxu0 %v4642_v6  ;;  %4069 = vmatprep.subr.bf16.mxu1 %v4644_v55  ;;  %v725_v6 = vld [vmem:[%s4984_s8 + $0xef8] sm:$0xff]  ;;  %v4785_v55 = vcombine.low %v732_v49, %v740_v52  ;;  %v4770_v57 = vcombine.high %v716_v54, %v724_v50 }
 0x3a3   : > { %v4772_v36 = vcombine.high %v717_v51, %v725_v6  ;;  %v4771_v63 = vcombine.low %v717_v51, %v725_v6 }
 0x3a9   : > { %4027 = vmatpush1.bf16.xpose.msra.mxu0 %v4641_v59  ;;  %4070 = vmatpush1.bf16.xpose.msra.mxu1 %v4643_v58  ;;  %v708_v59 = vld [vmem:[%s4984_s8 + $0xe70] sm:$0xff]  ;;  %v701_v58 = vld [vmem:[%s4984_s8 + $0xe38] sm:$0xff] }
 0x3aa   : > { %4028 = vmatprep.subr.bf16.mxu0 %v4626_v62  ;;  %4071 = vmatprep.subr.bf16.mxu1 %v4628_v35  ;;  %v709_v62 = vld [vmem:[%s4984_s8 + $0xe78] sm:$0xff]  ;;  %v4769_v35 = vcombine.low %v716_v54, %v724_v50  ;;  %v4754_v37 = vcombine.high %v700_v34, %v708_v59  ;;  %v774_v50 = vsub.s32 3, %v5425_v30 }
 0x3ab   : > { %v4756_v0 = vcombine.high %v701_v58, %v709_v62  ;;  %v4755_v11 = vcombine.low %v701_v58, %v709_v62 }
 0x3b1   : > { %4029 = vmatpush1.bf16.xpose.msra.mxu0 %v4625_v2  ;;  %4072 = vmatpush1.bf16.xpose.msra.mxu1 %v4627_v5  ;;  %v692_v2 = vld [vmem:[%s4984_s8 + $0xdf0] sm:$0xff]  ;;  %v685_v5 = vld [vmem:[%s4984_s8 + $0xdb8] sm:$0xff] }
 0x3b2   : > { %4030 = vmatprep.subr.bf16.mxu0 %v4610_v8  ;;  %4073 = vmatprep.subr.bf16.mxu1 %v4612_v10  ;;  %v693_v8 = vld [vmem:[%s4984_s8 + $0xdf8] sm:$0xff]  ;;  %v4753_v10 = vcombine.low %v700_v34, %v708_v59  ;;  %v4738_v13 = vcombine.high %v684_v1, %v692_v2 }
 0x3b3   : > { %v4740_v16 = vcombine.high %v685_v5, %v693_v8  ;;  %v4739_v22 = vcombine.low %v685_v5, %v693_v8 }
 0x3b9   : > { %4031 = vmatpush1.bf16.xpose.msra.mxu0 %v4609_v18  ;;  %4074 = vmatpush1.bf16.xpose.msra.mxu1 %v4611_v9  ;;  %v676_v18 = vld [vmem:[%s4984_s8 + $0xd70] sm:$0xff]  ;;  %v669_v9 = vld [vmem:[%s4984_s8 + $0xd38] sm:$0xff] }
 0x3ba   : > { %4032 = vmatprep.subr.bf16.mxu0 %v4594_v19  ;;  %4075 = vmatprep.subr.bf16.mxu1 %v4596_v20  ;;  %v677_v19 = vld [vmem:[%s4984_s8 + $0xd78] sm:$0xff]  ;;  %v4737_v20 = vcombine.low %v684_v1, %v692_v2  ;;  %v4722_v14 = vcombine.high %v668_v17, %v676_v18 }
 0x3bb   : > { %v4724_v24 = vcombine.high %v669_v9, %v677_v19  ;;  %v4723_v33 = vcombine.low %v669_v9, %v677_v19 }
 0x3c1   : > { %4033 = vmatpush1.bf16.xpose.msra.mxu0 %v4593_v26  ;;  %4076 = vmatpush1.bf16.xpose.msra.mxu1 %v4595_v32  ;;  %v660_v26 = vld [vmem:[%s4984_s8 + $0xcf0] sm:$0xff]  ;;  %v653_v32 = vld [vmem:[%s4984_s8 + $0xcb8] sm:$0xff] }
 0x3c2   : > { %4034 = vmatprep.subr.bf16.mxu0 %v4578_v12  ;;  %4077 = vmatprep.subr.bf16.mxu1 %v4580_v21  ;;  %v661_v12 = vld [vmem:[%s4984_s8 + $0xcf8] sm:$0xff]  ;;  %v4721_v21 = vcombine.low %v668_v17, %v676_v18  ;;  %v4706_v39 = vcombine.high %v652_v25, %v660_v26 }
 0x3c3   : > { %v4708_v40 = vcombine.high %v653_v32, %v661_v12  ;;  %v4707_v4 = vcombine.low %v653_v32, %v661_v12 }
 0x3c9   : > { %4035 = vmatpush1.bf16.xpose.msra.mxu0 %v4577_v29  ;;  %4078 = vmatpush1.bf16.xpose.msra.mxu1 %v4579_v38  ;;  %v644_v29 = vld [vmem:[%s4984_s8 + $0xc70] sm:$0xff]  ;;  %v637_v38 = vld [vmem:[%s4984_s8 + $0xc38] sm:$0xff] }
 0x3ca   : > { %4036 = vmatprep.subr.bf16.mxu0 %v4562_v42  ;;  %4079 = vmatprep.subr.bf16.mxu1 %v4564_v43  ;;  %v645_v42 = vld [vmem:[%s4984_s8 + $0xc78] sm:$0xff]  ;;  %v4705_v43 = vcombine.low %v652_v25, %v660_v26  ;;  %v4690_v44 = vcombine.high %v636_v15, %v644_v29  ;;  %v4689_v46 = vcombine.low %v636_v15, %v644_v29  ;;  %s4819_s8 = sshll.u32 (%p4953_p3), %s4891_s14, 4 }
 0x3cb   : > { %v4692_v45 = vcombine.high %v637_v38, %v645_v42  ;;  %s4156_s4 = scalar_lea.vmem (%p4953_p3), %s5655_s3, %s4819_s8 }
 0x3d1   : > { %4037 = vmatpush1.bf16.xpose.msra.mxu0 %v4561_v27  ;;  %4080 = vmatpush1.bf16.xpose.msra.mxu1 %v4563_v47  ;;  %v4691_v27 = vcombine.low %v637_v38, %v645_v42  ;;  %v3798_v47 = vpop.f32.mrf.mxu0 }
 0x3d2   : > { %4038 = vmatprep.subr.bf16.mxu0 %v4802_v31  ;;  %4081 = vmatprep.subr.bf16.mxu1 %v4804_v48  ;;  %v3841_v31 = vpop.f32.mrf.mxu1 }
 0x3d3   : > { %v3800_v48 = vpop.f32.mrf.mxu0 }
 0x3d4   : > { %v3843_v49 = vpop.f32.mrf.mxu1 }
 0x3d5   : > { %v3802_v52 = vpop.f32.mrf.mxu0 }
 0x3d6   : > { %v3845_v60 = vpop.f32.mrf.mxu1 }
 0x3d7   : > { %v3804_v7 = vpop.f32.mrf.mxu0 }
 0x3d9   : > { %4039 = vmatpush2.bf16.xpose.msra.mxu0 %v4801_v41  ;;  %4082 = vmatpush2.bf16.xpose.msra.mxu1 %v4803_v53  ;;  %v3847_v41 = vpop.f32.mrf.mxu1  ;;  %v3884_v53 = vpop.f32.mrf.mxu0 }
 0x3da   : > { %4040 = vmatprep.subr.bf16.mxu0 %v4786_v61  ;;  %4083 = vmatprep.subr.bf16.mxu1 %v4788_v3  ;;  %v770_v3 = vsub.s32 2, %v5425_v30 }
 0x3db   : > { %v3927_v61 = vpop.f32.mrf.mxu1  ;;  %v3886_v54 = vpop.f32.mrf.mxu0 }
 0x3dd   : > { %v3929_v51 = vpop.f32.mrf.mxu1 }
 0x3e1   : > { %4041 = vmatpush2.bf16.xpose.msra.mxu0 %v4785_v55  ;;  %4084 = vmatpush2.bf16.xpose.msra.mxu1 %v4787_v56  ;;  %v3888_v55 = vpop.f32.mrf.mxu0  ;;  %v3931_v56 = vpop.f32.mrf.mxu1 }
 0x3e2   : > { %4042 = vmatprep.subr.bf16.mxu0 %v4770_v57  ;;  %4085 = vmatprep.subr.bf16.mxu1 %v4772_v36 }
 0x3e3   : > { %v3890_v36 = vpop.f32.mrf.mxu0  ;;  %v3933_v59 = vpop.f32.mrf.mxu1 }
 0x3e9   : > { %4043 = vmatpush2.bf16.xpose.msra.mxu0 %v4769_v35  ;;  %4086 = vmatpush2.bf16.xpose.msra.mxu1 %v4771_v63 }
 0x3ea   : > { %4044 = vmatprep.subr.bf16.mxu0 %v4754_v37  ;;  %4087 = vmatprep.subr.bf16.mxu1 %v4756_v0 }
 0x3f1   : > { %4045 = vmatpush2.bf16.xpose.msra.mxu0 %v4753_v10  ;;  %4088 = vmatpush2.bf16.xpose.msra.mxu1 %v4755_v11 }
 0x3f2   : > { %4046 = vmatprep.subr.bf16.mxu0 %v4738_v13  ;;  %4089 = vmatprep.subr.bf16.mxu1 %v4740_v16 }
 0x3f9   : > { %4047 = vmatpush2.bf16.xpose.msra.mxu0 %v4737_v20  ;;  %4090 = vmatpush2.bf16.xpose.msra.mxu1 %v4739_v22 }
 0x3fa   : > { %4048 = vmatprep.subr.bf16.mxu0 %v4722_v14  ;;  %4091 = vmatprep.subr.bf16.mxu1 %v4724_v24 }
 0x401   : > { %4049 = vmatpush2.bf16.xpose.msra.mxu0 %v4721_v21  ;;  %4092 = vmatpush2.bf16.xpose.msra.mxu1 %v4723_v33 }
 0x402   : > { %4050 = vmatprep.subr.bf16.mxu0 %v4706_v39  ;;  %4093 = vmatprep.subr.bf16.mxu1 %v4708_v40 }
 0x409   : > { %4051 = vmatpush2.bf16.xpose.msra.mxu0 %v4705_v43  ;;  %4094 = vmatpush2.bf16.xpose.msra.mxu1 %v4707_v4 }
 0x40a   : > { %4052 = vmatprep.subr.bf16.mxu0 %v4690_v44  ;;  %4095 = vmatprep.subr.bf16.mxu1 %v4692_v45 }
 0x411   : > { %4053 = vmatpush2.bf16.xpose.msra.mxu0 %v4689_v46  ;;  %4096 = vmatpush2.bf16.xpose.msra.mxu1 %v4691_v27 }
 0x418   : > { %4055 = vmatmul.mubr.bf16.vlgmr.msra.gmra.mxu0 %v5247_v23  ;;  %4098 = vmatmul.mubr.bf16.vlgmr.msra.gmra.mxu1 %v5254_v28  ;;  %v4860_v23 = vld [vmem:[%s5434_s26] sm:$0xf] }
 0x419   : > { %v771_v6 = vrot.slane %v4860_v23, %v770_v3  ;;  %v775_v28 = vrot.slane %v4860_v23, %v774_v50 }
 0x41b   : > { %v3799_v57 = vadd.f32 %v3798_v47, %v771_v6  ;;  %v3801_v34 = vadd.f32 %v3800_v48, %v775_v28  ;;  %v3803_v35 = vadd.f32 %v3802_v52, %v771_v6  ;;  %v3805_v0 = vadd.f32 %v3804_v7, %v775_v28 }
 0x41d   : > { %v3842_v62 = vadd.f32 %v3841_v31, %v3799_v57  ;;  %v3844_v37 = vadd.f32 %v3843_v49, %v3801_v34  ;;  %v3846_v5 = vadd.f32 %v3845_v60, %v3803_v35  ;;  %v3848_v10 = vadd.f32 %v3847_v41, %v3805_v0 }
 0x41f   : > { %v3885_v1 = vadd.f32 %v3884_v53, %v3842_v62  ;;  %v3887_v30 = vadd.f32 %v3886_v54, %v3844_v37  ;;  %v3889_v13 = vadd.f32 %v3888_v55, %v3846_v5  ;;  %v3891_v18 = vadd.f32 %v3890_v36, %v3848_v10  ;;  %v4169_v54 = vld [vmem:[%s5460_s12] sm:$0xff] (%p4953_p3) }
 0x420   : > { %4170 = vst [vmem:[%s4156_s4] sm:$0xff] (%p4953_p3), %v4169_v54 }
 0x421   : > { %v3928_v11 = vadd.f32 %v3927_v61, %v3885_v1  ;;  %v3930_v17 = vadd.f32 %v3929_v51, %v3887_v30  ;;  %v3932_v20 = vadd.f32 %v3931_v56, %v3889_v13  ;;  %v3934_v24 = vadd.f32 %v3933_v59, %v3891_v18  ;;  %v4173_v51 = vld [vmem:[%s5460_s12 + $0x10] sm:$0xff] (%p4953_p3) }
 0x422   : > { %4174 = vst [vmem:[%s4156_s4 + $0x40] sm:$0xff] (%p4953_p3), %v4173_v51 }
 0x458   : > { %v3970_v58 = vpop.f32.mrf.mxu0  ;;  %v4013_v63 = vpop.f32.mrf.mxu1 }
 0x459   : > { %v3971_v9 = vadd.f32 %v3970_v58, %v3928_v11 }
 0x45a   : > { %v3972_v2 = vpop.f32.mrf.mxu0  ;;  %v4015_v8 = vpop.f32.mrf.mxu1 }
 0x45b   : > { %v3973_v22 = vadd.f32 %v3972_v2, %v3930_v17  ;;  %v4014_v25 = vadd.f32 %v4013_v63, %v3971_v9 }
 0x45c   : > { %v3974_v16 = vpop.f32.mrf.mxu0  ;;  %v4017_v19 = vpop.f32.mrf.mxu1 }
 0x45d   : > { %v3975_v26 = vadd.f32 %v3974_v16, %v3932_v20  ;;  %v4016_v21 = vadd.f32 %v4015_v8, %v3973_v22 }
 0x45e   : > { %v3976_v14 = vpop.f32.mrf.mxu0  ;;  %v4019_v32 = vpop.f32.mrf.mxu1 }
 0x45f   : > { %v3977_v33 = vadd.f32 %v3976_v14, %v3934_v24  ;;  %v4018_v29 = vadd.f32 %v4017_v19, %v3975_v26 }
 0x461   : > { %v4020_v44 = vadd.f32 %v4019_v32, %v3977_v33 }
 0x4d8   : > { %v4056_v12 = vpop.f32.mrf.mxu0  ;;  %v4099_v40 = vpop.f32.mrf.mxu1 }
 0x4d9   : > { %v4057_v39 = vadd.f32 %v4056_v12, %v4014_v25 }
 0x4da   : > { %v4058_v15 = vpop.f32.mrf.mxu0  ;;  %v4101_v43 = vpop.f32.mrf.mxu1 }
 0x4db   : > { %v4100_v38 = vadd.f32 %v4099_v40, %v4057_v39  ;;  %v4059_v42 = vadd.f32 %v4058_v15, %v4016_v21 }
 0x4dc   : > { %v4060_v4 = vpop.f32.mrf.mxu0  ;;  %v4103_v27 = vpop.f32.mrf.mxu1 }
 0x4dd   : > { %v4102_v45 = vadd.f32 %v4101_v43, %v4059_v42  ;;  %v4061_v46 = vadd.f32 %v4060_v4, %v4018_v29  ;;  %v4110_v31 = vmax.f32 %v4100_v38, 0.0 }
 0x4de   : > { %v4062_v47 = vpop.f32.mrf.mxu0  ;;  %v4105_v60 = vpop.f32.mrf.mxu1 }
 0x4df   : > { %v4111_v48 = vmax.f32 %v4102_v45, 0.0  ;;  %v4104_v49 = vadd.f32 %v4103_v27, %v4061_v46  ;;  %v4063_v52 = vadd.f32 %v4062_v47, %v4020_v44 }
 0x4e1   : > { %v4816_v7 = vpack.c.bf16 %v4111_v48, %v4110_v31  ;;  %v4106_v41 = vadd.f32 %v4105_v60, %v4063_v52  ;;  %v4114_v53 = vmax.f32 %v4104_v49, 0.0 }
 0x4e3   : > { %4141 = vst [vmem:[%s5460_s12 + $0x8] sm:$0xff] %v4816_v7  ;;  %v4115_v61 = vmax.f32 %v4106_v41, 0.0  ;;  %4150 = sbr.rel (!%p4953_p3) target bundleno = 1264 (0x4f0), region = 36 }
 0x4e5   : > { %v4818_v3 = vpack.c.bf16 %v4115_v61, %v4114_v53 }
 0x4e7   : > { %4143 = vst [vmem:[%s5460_s12 + $0x18] sm:$0xff] %v4818_v3 }
 0x4ea   : > { %v4171_v50 = vld [vmem:[%s5460_s12 + $0x8] sm:$0xff] }
 0x4eb   : > { %4172 = vst [vmem:[%s4156_s4 + $0x8] sm:$0xff] %v4171_v50 }
 0x4ee   : > { %v4175_v23 = vld [vmem:[%s5460_s12 + $0x18] sm:$0xff] }
 0x4ef   : > { %4176 = vst [vmem:[%s4156_s4 + $0x48] sm:$0xff] %v4175_v23 }
 0x4f0 PF: > { %s13_s16 = sadd.s32 1, %s4899_s16   ;;  %s5657_s12 = smov %s4887_s13 }
 0x4f1   : > { %p10_p10 = scmp.ge.s32.totalorder %s13_s16, 6   ;;  %s5658_s13 = smov %s4962_s22 }
 0x4f2   : > { %s5659_s14 = smov %s4895_s15  ;;  %s5660_s15 = smov %s5662_s18 }
 0x4f3   :  { %12 = sbr.rel (!%p10_p10) target bundleno = 3 (0x3), region = 91 }

// kernel: encoder_forward.3
= control target key start
LH: loop header
LB: loop body
LE: loop exit
PB: predicated region body
PF: predicated region fallthrough
CT: control target
= control target key end

     0   :  { %s1890_s1 = inlined_call_operand.vmem [shape: bf16[128,2048], index: 1, kind: input, shape index: {}]   ;;  %s1891_s0 = inlined_call_operand.vmem [shape: bf16[16,2048], index: 0, kind: input, shape index: {}]   ;;  %s1892_s2 = inlined_call_operand.vmem [shape: f32[1,128], index: 2, kind: input, shape index: {}]   ;;  %s1893_s3 = inlined_call_operand.vmem [shape: f32[16,128], index: 3, kind: output, shape index: {}]  }
   0x1   :  { %v143_v0 = vld [vmem:[%s1890_s1 + $0x380] sm:$0xff]  ;;  %v144_v2 = vld [vmem:[%s1890_s1 + $0x388] sm:$0xff] }
   0x2   :  { %v151_v1 = vld [vmem:[%s1890_s1 + $0x3c0] sm:$0xff]  ;;  %v152_v4 = vld [vmem:[%s1890_s1 + $0x3c8] sm:$0xff] }
   0x3   :  { %v1350_v3 = vcombine.high %v143_v0, %v151_v1  ;;  %v1349_v5 = vcombine.low %v143_v0, %v151_v1  ;;  %v127_v6 = vld [vmem:[%s1890_s1 + $0x300] sm:$0xff]  ;;  %v1352_v8 = vcombine.high %v144_v2, %v152_v4  ;;  %v1351_v9 = vcombine.low %v144_v2, %v152_v4  ;;  %v128_v11 = vld [vmem:[%s1890_s1 + $0x308] sm:$0xff]  ;;  %v145_v4 = vld [vmem:[%s1890_s1 + $0x390] sm:$0xff] }
   0x4   :  { %v135_v7 = vld [vmem:[%s1890_s1 + $0x340] sm:$0xff]  ;;  %v136_v12 = vld [vmem:[%s1890_s1 + $0x348] sm:$0xff] }
   0x5   :  { %v1334_v10 = vcombine.high %v127_v6, %v135_v7  ;;  %886 = vmatprep.subr.bf16.mxu0 %v1350_v3  ;;  %v1336_v13 = vcombine.high %v128_v11, %v136_v12  ;;  %927 = vmatprep.subr.bf16.mxu1 %v1352_v8  ;;  %v111_v14 = vld [vmem:[%s1890_s1 + $0x280] sm:$0xff]  ;;  %v112_v16 = vld [vmem:[%s1890_s1 + $0x288] sm:$0xff]  ;;  %v1333_v18 = vcombine.low %v127_v6, %v135_v7  ;;  %v146_v6 = vld [vmem:[%s1890_s1 + $0x398] sm:$0xff] }
   0x6   :  { %887 = vmatpush1.bf16.xpose.msra.mxu0 %v1349_v5  ;;  %928 = vmatpush1.bf16.xpose.msra.mxu1 %v1351_v9  ;;  %v119_v15 = vld [vmem:[%s1890_s1 + $0x2c0] sm:$0xff]  ;;  %v120_v17 = vld [vmem:[%s1890_s1 + $0x2c8] sm:$0xff]  ;;  %v1335_v19 = vcombine.low %v128_v11, %v136_v12  ;;  %v153_v5 = vld [vmem:[%s1890_s1 + $0x3d0] sm:$0xff] }
   0x7   :  { %888 = vmatprep.subr.bf16.mxu0 %v1334_v10  ;;  %929 = vmatprep.subr.bf16.mxu1 %v1336_v13  ;;  %v1318_v20 = vcombine.high %v111_v14, %v119_v15  ;;  %v1320_v21 = vcombine.high %v112_v16, %v120_v17  ;;  %v1424_v22 = vld [vmem:[%s1891_s0] sm:$0xff]  ;;  %v1434_v24 = vld [vmem:[%s1891_s0 + $0x8] sm:$0xff]  ;;  %v1317_v32 = vcombine.low %v111_v14, %v119_v15  ;;  %v154_v7 = vld [vmem:[%s1890_s1 + $0x3d8] sm:$0xff] }
   0x8   :  { %v1429_v23 = vld [vmem:[%s1891_s0 + $0x40] sm:$0xff]  ;;  %v1439_v25 = vld [vmem:[%s1891_s0 + $0x48] sm:$0xff]  ;;  %v1319_v33 = vcombine.low %v112_v16, %v120_v17  ;;  %v1354_v10 = vcombine.high %v145_v4, %v153_v5  ;;  %v1356_v11 = vcombine.high %v146_v6, %v154_v7  ;;  %v129_v12 = vld [vmem:[%s1890_s1 + $0x310] sm:$0xff] }
   0x9   :  { %v1222_v26 = vcombine.high %v1424_v22, %v1429_v23  ;;  %v1224_v27 = vcombine.high %v1434_v24, %v1439_v25  ;;  %v95_v28 = vld [vmem:[%s1890_s1 + $0x200] sm:$0xff]  ;;  %v96_v30 = vld [vmem:[%s1890_s1 + $0x208] sm:$0xff]  ;;  %v137_v13 = vld [vmem:[%s1890_s1 + $0x350] sm:$0xff]  ;;  %v1221_v15 = vcombine.low %v1424_v22, %v1429_v23  ;;  %v1355_v23 = vcombine.low %v146_v6, %v154_v7 }
   0xa   :  { %v103_v29 = vld [vmem:[%s1890_s1 + $0x240] sm:$0xff]  ;;  %v104_v31 = vld [vmem:[%s1890_s1 + $0x248] sm:$0xff]  ;;  %v130_v14 = vld [vmem:[%s1890_s1 + $0x318] sm:$0xff] }
   0xb   :  { %918 = vmatprep.mubr.bf16.mxu0 %v1222_v26  ;;  %959 = vmatprep.mubr.bf16.mxu1 %v1224_v27  ;;  %v1302_v34 = vcombine.high %v95_v28, %v103_v29  ;;  %v1304_v35 = vcombine.high %v96_v30, %v104_v31  ;;  %v79_v36 = vld [vmem:[%s1890_s1 + $0x180] sm:$0xff]  ;;  %v80_v38 = vld [vmem:[%s1890_s1 + $0x188] sm:$0xff]  ;;  %v1301_v40 = vcombine.low %v95_v28, %v103_v29  ;;  %v138_v16 = vld [vmem:[%s1890_s1 + $0x358] sm:$0xff] }
   0xc   :  { %v87_v37 = vld [vmem:[%s1890_s1 + $0x1c0] sm:$0xff]  ;;  %v88_v39 = vld [vmem:[%s1890_s1 + $0x1c8] sm:$0xff]  ;;  %v1303_v41 = vcombine.low %v96_v30, %v104_v31  ;;  %v1534_v17 = vld [vmem:[%s1891_s0 + $0x10] sm:$0xff]  ;;  %v1338_v26 = vcombine.high %v129_v12, %v137_v13  ;;  %v1340_v27 = vcombine.high %v130_v14, %v138_v16 }
   0xd   :  { %v1286_v42 = vcombine.high %v79_v36, %v87_v37  ;;  %v1288_v43 = vcombine.high %v80_v38, %v88_v39  ;;  %v63_v44 = vld [vmem:[%s1890_s1 + $0x100] sm:$0xff]  ;;  %v64_v46 = vld [vmem:[%s1890_s1 + $0x108] sm:$0xff]  ;;  %v1285_v48 = vcombine.low %v79_v36, %v87_v37  ;;  %v1287_v49 = vcombine.low %v80_v38, %v88_v39  ;;  %v1551_v22 = vld [vmem:[%s1891_s0 + $0x58] sm:$0xff] }
   0xe   :  { %889 = vmatpush1.bf16.xpose.msra.mxu0 %v1333_v18  ;;  %930 = vmatpush1.bf16.xpose.msra.mxu1 %v1335_v19  ;;  %v71_v45 = vld [vmem:[%s1890_s1 + $0x140] sm:$0xff]  ;;  %v72_v47 = vld [vmem:[%s1890_s1 + $0x148] sm:$0xff]  ;;  %v1539_v18 = vld [vmem:[%s1891_s0 + $0x50] sm:$0xff]  ;;  %v1223_v19 = vcombine.low %v1434_v24, %v1439_v25 }
   0xf   :  { %890 = vmatprep.subr.bf16.mxu0 %v1318_v20  ;;  %931 = vmatprep.subr.bf16.mxu1 %v1320_v21  ;;  %v1270_v50 = vcombine.high %v63_v44, %v71_v45  ;;  %v1272_v51 = vcombine.high %v64_v46, %v72_v47  ;;  %v47_v52 = vld [vmem:[%s1890_s1 + $0x80] sm:$0xff]  ;;  %v48_v54 = vld [vmem:[%s1890_s1 + $0x88] sm:$0xff]  ;;  %v1269_v56 = vcombine.low %v63_v44, %v71_v45  ;;  %v1546_v21 = vld [vmem:[%s1891_s0 + $0x18] sm:$0xff] }
  0x10   :  { %v55_v53 = vld [vmem:[%s1890_s1 + $0xc0] sm:$0xff]  ;;  %v56_v55 = vld [vmem:[%s1890_s1 + $0xc8] sm:$0xff]  ;;  %v1271_v57 = vcombine.low %v64_v46, %v72_v47  ;;  %v1353_v20 = vcombine.low %v145_v4, %v153_v5  ;;  %v1226_v28 = vcombine.high %v1534_v17, %v1539_v18  ;;  %v1228_v24 = vcombine.high %v1546_v21, %v1551_v22  ;;  %v113_v25 = vld [vmem:[%s1890_s1 + $0x290] sm:$0xff] }
  0x11   :  { %v1254_v58 = vcombine.high %v47_v52, %v55_v53  ;;  %v1256_v59 = vcombine.high %v48_v54, %v56_v55  ;;  %v31_v60 = vld [vmem:[%s1890_s1] sm:$0xff]  ;;  %v32_v62 = vld [vmem:[%s1890_s1 + $0x8] sm:$0xff]  ;;  %v1253_v0 = vcombine.low %v47_v52, %v55_v53  ;;  %v1255_v1 = vcombine.low %v48_v54, %v56_v55  ;;  %v121_v29 = vld [vmem:[%s1890_s1 + $0x2d0] sm:$0xff] }
  0x12   :  { %v39_v61 = vld [vmem:[%s1890_s1 + $0x40] sm:$0xff]  ;;  %v40_v63 = vld [vmem:[%s1890_s1 + $0x48] sm:$0xff]  ;;  %v114_v30 = vld [vmem:[%s1890_s1 + $0x298] sm:$0xff] }
  0x13   :  { %v1238_v2 = vcombine.high %v31_v60, %v39_v61  ;;  %v1240_v3 = vcombine.high %v32_v62, %v40_v63  ;;  %v1237_v8 = vcombine.low %v31_v60, %v39_v61  ;;  %v1239_v9 = vcombine.low %v32_v62, %v40_v63  ;;  %v122_v31 = vld [vmem:[%s1890_s1 + $0x2d8] sm:$0xff]  ;;  %v97_v36 = vld [vmem:[%s1890_s1 + $0x210] sm:$0xff] }
  0x14   :  { %v105_v37 = vld [vmem:[%s1890_s1 + $0x250] sm:$0xff]  ;;  %v98_v38 = vld [vmem:[%s1890_s1 + $0x218] sm:$0xff] }
  0x15   :  { %v106_v39 = vld [vmem:[%s1890_s1 + $0x258] sm:$0xff]  ;;  %v81_v44 = vld [vmem:[%s1890_s1 + $0x190] sm:$0xff] }
  0x16   :  { %891 = vmatpush1.bf16.xpose.msra.mxu0 %v1317_v32  ;;  %932 = vmatpush1.bf16.xpose.msra.mxu1 %v1319_v33  ;;  %v1337_v32 = vcombine.low %v129_v12, %v137_v13  ;;  %v1339_v33 = vcombine.low %v130_v14, %v138_v16  ;;  %v89_v45 = vld [vmem:[%s1890_s1 + $0x1d0] sm:$0xff]  ;;  %v82_v46 = vld [vmem:[%s1890_s1 + $0x198] sm:$0xff]  ;;  %v147_v12 = vld [vmem:[%s1890_s1 + $0x3a0] sm:$0xff] }
  0x17   :  { %892 = vmatprep.subr.bf16.mxu0 %v1302_v34  ;;  %933 = vmatprep.subr.bf16.mxu1 %v1304_v35  ;;  %v1322_v34 = vcombine.high %v113_v25, %v121_v29  ;;  %v1324_v35 = vcombine.high %v114_v30, %v122_v31  ;;  %v90_v47 = vld [vmem:[%s1890_s1 + $0x1d8] sm:$0xff]  ;;  %v65_v52 = vld [vmem:[%s1890_s1 + $0x110] sm:$0xff]  ;;  %v155_v13 = vld [vmem:[%s1890_s1 + $0x3e0] sm:$0xff] }
  0x18   :  { %v73_v53 = vld [vmem:[%s1890_s1 + $0x150] sm:$0xff]  ;;  %v66_v54 = vld [vmem:[%s1890_s1 + $0x118] sm:$0xff]  ;;  %v148_v14 = vld [vmem:[%s1890_s1 + $0x3a8] sm:$0xff] }
  0x19   :  { %v74_v55 = vld [vmem:[%s1890_s1 + $0x158] sm:$0xff]  ;;  %v49_v60 = vld [vmem:[%s1890_s1 + $0x90] sm:$0xff] }
  0x1a   :  { %v57_v61 = vld [vmem:[%s1890_s1 + $0xd0] sm:$0xff]  ;;  %v50_v62 = vld [vmem:[%s1890_s1 + $0x98] sm:$0xff] }
  0x1b   :  { %v58_v63 = vld [vmem:[%s1890_s1 + $0xd8] sm:$0xff]  ;;  %v33_v4 = vld [vmem:[%s1890_s1 + $0x10] sm:$0xff] }
  0x1c   :  { %v41_v5 = vld [vmem:[%s1890_s1 + $0x50] sm:$0xff]  ;;  %v34_v6 = vld [vmem:[%s1890_s1 + $0x18] sm:$0xff] }
  0x1d   :  { %v42_v7 = vld [vmem:[%s1890_s1 + $0x58] sm:$0xff]  ;;  %v1241_v16 = vcombine.low %v33_v4, %v41_v5 }
  0x1e   :  { %893 = vmatpush1.bf16.xpose.msra.mxu0 %v1301_v40  ;;  %934 = vmatpush1.bf16.xpose.msra.mxu1 %v1303_v41  ;;  %v1321_v40 = vcombine.low %v113_v25, %v121_v29  ;;  %v1323_v41 = vcombine.low %v114_v30, %v122_v31  ;;  %v140_v25 = vld [vmem:[%s1890_s1 + $0x368] sm:$0xff]  ;;  %v1658_v29 = vld [vmem:[%s1891_s0 + $0x20] sm:$0xff]  ;;  %v1227_v31 = vcombine.low %v1546_v21, %v1551_v22 }
  0x1f   :  { %894 = vmatprep.subr.bf16.mxu0 %v1286_v42  ;;  %935 = vmatprep.subr.bf16.mxu1 %v1288_v43  ;;  %v1306_v42 = vcombine.high %v97_v36, %v105_v37  ;;  %v1308_v43 = vcombine.high %v98_v38, %v106_v39  ;;  %v1663_v30 = vld [vmem:[%s1891_s0 + $0x60] sm:$0xff] }
  0x20   :  { %v115_v22 = vld [vmem:[%s1890_s1 + $0x2a0] sm:$0xff] }
  0x26   :  { %895 = vmatpush1.bf16.xpose.msra.mxu0 %v1285_v48  ;;  %936 = vmatpush1.bf16.xpose.msra.mxu1 %v1287_v49  ;;  %v1305_v48 = vcombine.low %v97_v36, %v105_v37  ;;  %v1307_v49 = vcombine.low %v98_v38, %v106_v39  ;;  %v1230_v36 = vcombine.high %v1658_v29, %v1663_v30  ;;  %v123_v37 = vld [vmem:[%s1890_s1 + $0x2e0] sm:$0xff]  ;;  %v116_v38 = vld [vmem:[%s1890_s1 + $0x2a8] sm:$0xff] }
  0x27   :  { %896 = vmatprep.subr.bf16.mxu0 %v1270_v50  ;;  %937 = vmatprep.subr.bf16.mxu1 %v1272_v51  ;;  %v1290_v50 = vcombine.high %v81_v44, %v89_v45  ;;  %v1292_v51 = vcombine.high %v82_v46, %v90_v47  ;;  %v124_v39 = vld [vmem:[%s1890_s1 + $0x2e8] sm:$0xff] }
  0x2e   :  { %897 = vmatpush1.bf16.xpose.msra.mxu0 %v1269_v56  ;;  %938 = vmatpush1.bf16.xpose.msra.mxu1 %v1271_v57  ;;  %v1289_v56 = vcombine.low %v81_v44, %v89_v45  ;;  %v1291_v57 = vcombine.low %v82_v46, %v90_v47  ;;  %v99_v44 = vld [vmem:[%s1890_s1 + $0x220] sm:$0xff]  ;;  %v100_v46 = vld [vmem:[%s1890_s1 + $0x228] sm:$0xff] }
  0x2f   :  { %898 = vmatprep.subr.bf16.mxu0 %v1254_v58  ;;  %939 = vmatprep.subr.bf16.mxu1 %v1256_v59  ;;  %v1274_v58 = vcombine.high %v65_v52, %v73_v53  ;;  %v1276_v59 = vcombine.high %v66_v54, %v74_v55  ;;  %v107_v45 = vld [vmem:[%s1890_s1 + $0x260] sm:$0xff]  ;;  %v108_v47 = vld [vmem:[%s1890_s1 + $0x268] sm:$0xff] }
  0x36   :  { %899 = vmatpush1.bf16.xpose.msra.mxu0 %v1253_v0  ;;  %940 = vmatpush1.bf16.xpose.msra.mxu1 %v1255_v1  ;;  %v1273_v0 = vcombine.low %v65_v52, %v73_v53  ;;  %v1275_v1 = vcombine.low %v66_v54, %v74_v55  ;;  %v83_v52 = vld [vmem:[%s1890_s1 + $0x1a0] sm:$0xff]  ;;  %v84_v54 = vld [vmem:[%s1890_s1 + $0x1a8] sm:$0xff] }
  0x37   :  { %900 = vmatprep.subr.bf16.mxu0 %v1238_v2  ;;  %941 = vmatprep.subr.bf16.mxu1 %v1240_v3  ;;  %v1258_v2 = vcombine.high %v49_v60, %v57_v61  ;;  %v1260_v3 = vcombine.high %v50_v62, %v58_v63  ;;  %v91_v53 = vld [vmem:[%s1890_s1 + $0x1e0] sm:$0xff]  ;;  %v92_v55 = vld [vmem:[%s1890_s1 + $0x1e8] sm:$0xff] }
  0x3e   :  { %901 = vmatpush1.bf16.xpose.msra.mxu0 %v1237_v8  ;;  %942 = vmatpush1.bf16.xpose.msra.mxu1 %v1239_v9  ;;  %v1257_v8 = vcombine.low %v49_v60, %v57_v61  ;;  %v1259_v9 = vcombine.low %v50_v62, %v58_v63  ;;  %v67_v60 = vld [vmem:[%s1890_s1 + $0x120] sm:$0xff]  ;;  %v68_v62 = vld [vmem:[%s1890_s1 + $0x128] sm:$0xff] }
  0x3f   :  { %968 = vmatprep.subr.bf16.mxu0 %v1354_v10  ;;  %1009 = vmatprep.subr.bf16.mxu1 %v1356_v11  ;;  %v1242_v10 = vcombine.high %v33_v4, %v41_v5  ;;  %v1244_v11 = vcombine.high %v34_v6, %v42_v7  ;;  %v75_v61 = vld [vmem:[%s1890_s1 + $0x160] sm:$0xff]  ;;  %v76_v63 = vld [vmem:[%s1890_s1 + $0x168] sm:$0xff] }
  0x40   :  { %v51_v4 = vld [vmem:[%s1890_s1 + $0xa0] sm:$0xff] }
  0x41   :  { %v59_v5 = vld [vmem:[%s1890_s1 + $0xe0] sm:$0xff] }
  0x45   :  { %919 = vmatmul.mubr.bf16.vlgmr.msra.gmra.mxu0 %v1221_v15  ;;  %960 = vmatmul.mubr.bf16.vlgmr.msra.gmra.mxu1 %v1223_v19  ;;  %v156_v15 = vld [vmem:[%s1890_s1 + $0x3e8] sm:$0xff]  ;;  %v1243_v19 = vcombine.low %v34_v6, %v42_v7 }
  0x46   :  { %969 = vmatpush1.bf16.xpose.msra.mxu0 %v1353_v20  ;;  %1010 = vmatpush1.bf16.xpose.msra.mxu1 %v1355_v23  ;;  %v1358_v20 = vcombine.high %v147_v12, %v155_v13  ;;  %v1360_v23 = vcombine.high %v148_v14, %v156_v15  ;;  %v52_v6 = vld [vmem:[%s1890_s1 + $0xa8] sm:$0xff] }
  0x47   :  { %970 = vmatprep.subr.bf16.mxu0 %v1338_v26  ;;  %1011 = vmatprep.subr.bf16.mxu1 %v1340_v27  ;;  %v131_v26 = vld [vmem:[%s1890_s1 + $0x320] sm:$0xff]  ;;  %v60_v7 = vld [vmem:[%s1890_s1 + $0xe8] sm:$0xff] }
  0x48   :  { %1000 = vmatprep.mubr.bf16.mxu0 %v1226_v28  ;;  %1041 = vmatprep.mubr.bf16.mxu1 %v1228_v24  ;;  %v139_v27 = vld [vmem:[%s1890_s1 + $0x360] sm:$0xff]  ;;  %v132_v28 = vld [vmem:[%s1890_s1 + $0x328] sm:$0xff]  ;;  %v1225_v24 = vcombine.low %v1534_v17, %v1539_v18 }
  0x49   :  { %v1670_v17 = vld [vmem:[%s1891_s0 + $0x28] sm:$0xff] }
  0x4a   :  { %v1675_v18 = vld [vmem:[%s1891_s0 + $0x68] sm:$0xff] }
  0x4b   :  { %v1232_v21 = vcombine.high %v1670_v17, %v1675_v18 }
  0x4e   :  { %971 = vmatpush1.bf16.xpose.msra.mxu0 %v1337_v32  ;;  %1012 = vmatpush1.bf16.xpose.msra.mxu1 %v1339_v33  ;;  %v1357_v32 = vcombine.low %v147_v12, %v155_v13  ;;  %v1359_v33 = vcombine.low %v148_v14, %v156_v15  ;;  %v35_v12 = vld [vmem:[%s1890_s1 + $0x20] sm:$0xff]  ;;  %v36_v14 = vld [vmem:[%s1890_s1 + $0x28] sm:$0xff] }
  0x4f   :  { %972 = vmatprep.subr.bf16.mxu0 %v1322_v34  ;;  %1013 = vmatprep.subr.bf16.mxu1 %v1324_v35  ;;  %v1342_v34 = vcombine.high %v131_v26, %v139_v27  ;;  %v1344_v35 = vcombine.high %v132_v28, %v140_v25  ;;  %v43_v13 = vld [vmem:[%s1890_s1 + $0x60] sm:$0xff]  ;;  %v44_v15 = vld [vmem:[%s1890_s1 + $0x68] sm:$0xff] }
  0x56   :  { %973 = vmatpush1.bf16.xpose.msra.mxu0 %v1321_v40  ;;  %1014 = vmatpush1.bf16.xpose.msra.mxu1 %v1323_v41  ;;  %v1341_v40 = vcombine.low %v131_v26, %v139_v27  ;;  %v1343_v41 = vcombine.low %v132_v28, %v140_v25  ;;  %v149_v26 = vld [vmem:[%s1890_s1 + $0x3b0] sm:$0xff]  ;;  %v150_v28 = vld [vmem:[%s1890_s1 + $0x3b8] sm:$0xff]  ;;  %v1245_v25 = vcombine.low %v35_v12, %v43_v13 }
  0x57   :  { %974 = vmatprep.subr.bf16.mxu0 %v1306_v42  ;;  %1015 = vmatprep.subr.bf16.mxu1 %v1308_v43  ;;  %v1326_v42 = vcombine.high %v115_v22, %v123_v37  ;;  %v1328_v43 = vcombine.high %v116_v38, %v124_v39  ;;  %v157_v27 = vld [vmem:[%s1890_s1 + $0x3f0] sm:$0xff] }
  0x5e   :  { %975 = vmatpush1.bf16.xpose.msra.mxu0 %v1305_v48  ;;  %1016 = vmatpush1.bf16.xpose.msra.mxu1 %v1307_v49  ;;  %v1325_v48 = vcombine.low %v115_v22, %v123_v37  ;;  %v1327_v49 = vcombine.low %v116_v38, %v124_v39  ;;  %v142_v22 = vld [vmem:[%s1890_s1 + $0x378] sm:$0xff]  ;;  %v1782_v37 = vld [vmem:[%s1891_s0 + $0x30] sm:$0xff]  ;;  %v1231_v39 = vcombine.low %v1670_v17, %v1675_v18 }
  0x5f   :  { %976 = vmatprep.subr.bf16.mxu0 %v1290_v50  ;;  %1017 = vmatprep.subr.bf16.mxu1 %v1292_v51  ;;  %v1310_v50 = vcombine.high %v99_v44, %v107_v45  ;;  %v1312_v51 = vcombine.high %v100_v46, %v108_v47  ;;  %v1787_v38 = vld [vmem:[%s1891_s0 + $0x70] sm:$0xff] }
  0x60   :  { %v117_v18 = vld [vmem:[%s1890_s1 + $0x2b0] sm:$0xff] }
  0x66   :  { %977 = vmatpush1.bf16.xpose.msra.mxu0 %v1289_v56  ;;  %1018 = vmatpush1.bf16.xpose.msra.mxu1 %v1291_v57  ;;  %v1309_v56 = vcombine.low %v99_v44, %v107_v45  ;;  %v1311_v57 = vcombine.low %v100_v46, %v108_v47  ;;  %v1234_v44 = vcombine.high %v1782_v37, %v1787_v38  ;;  %v125_v45 = vld [vmem:[%s1890_s1 + $0x2f0] sm:$0xff]  ;;  %v118_v46 = vld [vmem:[%s1890_s1 + $0x2b8] sm:$0xff] }
  0x67   :  { %978 = vmatprep.subr.bf16.mxu0 %v1274_v58  ;;  %1019 = vmatprep.subr.bf16.mxu1 %v1276_v59  ;;  %v1294_v58 = vcombine.high %v83_v52, %v91_v53  ;;  %v1296_v59 = vcombine.high %v84_v54, %v92_v55  ;;  %v126_v47 = vld [vmem:[%s1890_s1 + $0x2f8] sm:$0xff] }
  0x6e   :  { %979 = vmatpush1.bf16.xpose.msra.mxu0 %v1273_v0  ;;  %1020 = vmatpush1.bf16.xpose.msra.mxu1 %v1275_v1  ;;  %v1293_v0 = vcombine.low %v83_v52, %v91_v53  ;;  %v1295_v1 = vcombine.low %v84_v54, %v92_v55  ;;  %v101_v52 = vld [vmem:[%s1890_s1 + $0x230] sm:$0xff]  ;;  %v102_v54 = vld [vmem:[%s1890_s1 + $0x238] sm:$0xff] }
  0x6f   :  { %980 = vmatprep.subr.bf16.mxu0 %v1258_v2  ;;  %1021 = vmatprep.subr.bf16.mxu1 %v1260_v3  ;;  %v1278_v2 = vcombine.high %v67_v60, %v75_v61  ;;  %v1280_v3 = vcombine.high %v68_v62, %v76_v63  ;;  %v109_v53 = vld [vmem:[%s1890_s1 + $0x270] sm:$0xff]  ;;  %v110_v55 = vld [vmem:[%s1890_s1 + $0x278] sm:$0xff] }
  0x76   :  { %981 = vmatpush1.bf16.xpose.msra.mxu0 %v1257_v8  ;;  %1022 = vmatpush1.bf16.xpose.msra.mxu1 %v1259_v9  ;;  %v1277_v8 = vcombine.low %v67_v60, %v75_v61  ;;  %v1279_v9 = vcombine.low %v68_v62, %v76_v63  ;;  %v85_v60 = vld [vmem:[%s1890_s1 + $0x1b0] sm:$0xff]  ;;  %v86_v62 = vld [vmem:[%s1890_s1 + $0x1b8] sm:$0xff] }
  0x77   :  { %982 = vmatprep.subr.bf16.mxu0 %v1242_v10  ;;  %1023 = vmatprep.subr.bf16.mxu1 %v1244_v11  ;;  %v1262_v10 = vcombine.high %v51_v4, %v59_v5  ;;  %v1264_v11 = vcombine.high %v52_v6, %v60_v7  ;;  %v93_v61 = vld [vmem:[%s1890_s1 + $0x1f0] sm:$0xff]  ;;  %v94_v63 = vld [vmem:[%s1890_s1 + $0x1f8] sm:$0xff] }
  0x7e   :  { %983 = vmatpush1.bf16.xpose.msra.mxu0 %v1241_v16  ;;  %1024 = vmatpush1.bf16.xpose.msra.mxu1 %v1243_v19  ;;  %v1261_v16 = vcombine.low %v51_v4, %v59_v5  ;;  %v1263_v19 = vcombine.low %v52_v6, %v60_v7  ;;  %v69_v4 = vld [vmem:[%s1890_s1 + $0x130] sm:$0xff]  ;;  %v70_v6 = vld [vmem:[%s1890_s1 + $0x138] sm:$0xff] }
  0x7f   :  { %1050 = vmatprep.subr.bf16.mxu0 %v1358_v20  ;;  %1091 = vmatprep.subr.bf16.mxu1 %v1360_v23  ;;  %v1246_v20 = vcombine.high %v35_v12, %v43_v13  ;;  %v1248_v23 = vcombine.high %v36_v14, %v44_v15  ;;  %v77_v5 = vld [vmem:[%s1890_s1 + $0x170] sm:$0xff]  ;;  %v78_v7 = vld [vmem:[%s1890_s1 + $0x178] sm:$0xff] }
  0x80   :  { %v53_v12 = vld [vmem:[%s1890_s1 + $0xb0] sm:$0xff] }
  0x81   :  { %v61_v13 = vld [vmem:[%s1890_s1 + $0xf0] sm:$0xff] }
  0x85   :  { %1001 = vmatmul.mubr.bf16.vlgmr.msra.gmra.mxu0 %v1225_v24  ;;  %1042 = vmatmul.mubr.bf16.vlgmr.msra.gmra.mxu1 %v1227_v31  ;;  %v158_v24 = vld [vmem:[%s1890_s1 + $0x3f8] sm:$0xff]  ;;  %v1247_v31 = vcombine.low %v36_v14, %v44_v15 }
  0x86   :  { %1051 = vmatpush1.bf16.xpose.msra.mxu0 %v1357_v32  ;;  %1092 = vmatpush1.bf16.xpose.msra.mxu1 %v1359_v33  ;;  %v1362_v32 = vcombine.high %v149_v26, %v157_v27  ;;  %v1364_v33 = vcombine.high %v150_v28, %v158_v24  ;;  %v54_v14 = vld [vmem:[%s1890_s1 + $0xb8] sm:$0xff] }
  0x87   :  { %1052 = vmatprep.subr.bf16.mxu0 %v1342_v34  ;;  %1093 = vmatprep.subr.bf16.mxu1 %v1344_v35  ;;  %v133_v34 = vld [vmem:[%s1890_s1 + $0x330] sm:$0xff]  ;;  %v62_v15 = vld [vmem:[%s1890_s1 + $0xf8] sm:$0xff] }
  0x88   :  { %1082 = vmatprep.mubr.bf16.mxu0 %v1230_v36  ;;  %1123 = vmatprep.mubr.bf16.mxu1 %v1232_v21  ;;  %v141_v35 = vld [vmem:[%s1890_s1 + $0x370] sm:$0xff]  ;;  %v134_v36 = vld [vmem:[%s1890_s1 + $0x338] sm:$0xff]  ;;  %v1229_v21 = vcombine.low %v1658_v29, %v1663_v30 }
  0x89   :  { %v1794_v29 = vld [vmem:[%s1891_s0 + $0x38] sm:$0xff] }
  0x8a   :  { %v1799_v30 = vld [vmem:[%s1891_s0 + $0x78] sm:$0xff] }
  0x8b   :  { %v1236_v17 = vcombine.high %v1794_v29, %v1799_v30 }
  0x8e   :  { %1053 = vmatpush1.bf16.xpose.msra.mxu0 %v1341_v40  ;;  %1094 = vmatpush1.bf16.xpose.msra.mxu1 %v1343_v41  ;;  %v1361_v40 = vcombine.low %v149_v26, %v157_v27  ;;  %v1363_v41 = vcombine.low %v150_v28, %v158_v24  ;;  %v37_v26 = vld [vmem:[%s1890_s1 + $0x30] sm:$0xff]  ;;  %v38_v28 = vld [vmem:[%s1890_s1 + $0x38] sm:$0xff] }
  0x8f   :  { %1054 = vmatprep.subr.bf16.mxu0 %v1326_v42  ;;  %1095 = vmatprep.subr.bf16.mxu1 %v1328_v43  ;;  %v1346_v42 = vcombine.high %v133_v34, %v141_v35  ;;  %v1348_v43 = vcombine.high %v134_v36, %v142_v22  ;;  %v45_v27 = vld [vmem:[%s1890_s1 + $0x70] sm:$0xff]  ;;  %v46_v24 = vld [vmem:[%s1890_s1 + $0x78] sm:$0xff] }
  0x96   :  { %1055 = vmatpush1.bf16.xpose.msra.mxu0 %v1325_v48  ;;  %1096 = vmatpush1.bf16.xpose.msra.mxu1 %v1327_v49  ;;  %v1345_v48 = vcombine.low %v133_v34, %v141_v35  ;;  %v1347_v49 = vcombine.low %v134_v36, %v142_v22  ;;  %v1249_v34 = vcombine.low %v37_v26, %v45_v27  ;;  %v1220_v22 = vld [vmem:[%s1892_s2] ss:$0 sm:$0xff] }
  0x97   :  { %1056 = vmatprep.subr.bf16.mxu0 %v1310_v50  ;;  %1097 = vmatprep.subr.bf16.mxu1 %v1312_v51  ;;  %v1330_v50 = vcombine.high %v117_v18, %v125_v45  ;;  %v1332_v51 = vcombine.high %v118_v46, %v126_v47  ;;  %v1251_v35 = vcombine.low %v38_v28, %v46_v24 }
  0x98   :  { %v1233_v36 = vcombine.low %v1782_v37, %v1787_v38 }
  0x9e   :  { %1057 = vmatpush1.bf16.xpose.msra.mxu0 %v1309_v56  ;;  %1098 = vmatpush1.bf16.xpose.msra.mxu1 %v1311_v57  ;;  %v1329_v56 = vcombine.low %v117_v18, %v125_v45  ;;  %v1331_v57 = vcombine.low %v118_v46, %v126_v47 }
  0x9f   :  { %1058 = vmatprep.subr.bf16.mxu0 %v1294_v58  ;;  %1099 = vmatprep.subr.bf16.mxu1 %v1296_v59  ;;  %v1314_v58 = vcombine.high %v101_v52, %v109_v53  ;;  %v1316_v59 = vcombine.high %v102_v54, %v110_v55 }
  0xa6   :  { %1059 = vmatpush1.bf16.xpose.msra.mxu0 %v1293_v0  ;;  %1100 = vmatpush1.bf16.xpose.msra.mxu1 %v1295_v1  ;;  %v1313_v0 = vcombine.low %v101_v52, %v109_v53  ;;  %v1315_v1 = vcombine.low %v102_v54, %v110_v55 }
  0xa7   :  { %1060 = vmatprep.subr.bf16.mxu0 %v1278_v2  ;;  %1101 = vmatprep.subr.bf16.mxu1 %v1280_v3  ;;  %v1298_v2 = vcombine.high %v85_v60, %v93_v61  ;;  %v1300_v3 = vcombine.high %v86_v62, %v94_v63 }
  0xae   :  { %1061 = vmatpush1.bf16.xpose.msra.mxu0 %v1277_v8  ;;  %1102 = vmatpush1.bf16.xpose.msra.mxu1 %v1279_v9  ;;  %v1297_v8 = vcombine.low %v85_v60, %v93_v61  ;;  %v1299_v9 = vcombine.low %v86_v62, %v94_v63 }
  0xaf   :  { %1062 = vmatprep.subr.bf16.mxu0 %v1262_v10  ;;  %1103 = vmatprep.subr.bf16.mxu1 %v1264_v11  ;;  %v1282_v10 = vcombine.high %v69_v4, %v77_v5  ;;  %v1284_v11 = vcombine.high %v70_v6, %v78_v7 }
  0xb6   :  { %1063 = vmatpush1.bf16.xpose.msra.mxu0 %v1261_v16  ;;  %1104 = vmatpush1.bf16.xpose.msra.mxu1 %v1263_v19  ;;  %v1281_v16 = vcombine.low %v69_v4, %v77_v5  ;;  %v1283_v19 = vcombine.low %v70_v6, %v78_v7 }
  0xb7   :  { %1064 = vmatprep.subr.bf16.mxu0 %v1246_v20  ;;  %1105 = vmatprep.subr.bf16.mxu1 %v1248_v23  ;;  %v1266_v20 = vcombine.high %v53_v12, %v61_v13  ;;  %v1268_v23 = vcombine.high %v54_v14, %v62_v15 }
  0xbe   :  { %1065 = vmatpush1.bf16.xpose.msra.mxu0 %v1245_v25  ;;  %1106 = vmatpush1.bf16.xpose.msra.mxu1 %v1247_v31  ;;  %v1265_v25 = vcombine.low %v53_v12, %v61_v13  ;;  %v1267_v31 = vcombine.low %v54_v14, %v62_v15 }
  0xbf   :  { %1132 = vmatprep.subr.bf16.mxu0 %v1362_v32  ;;  %1173 = vmatprep.subr.bf16.mxu1 %v1364_v33  ;;  %v1250_v32 = vcombine.high %v37_v26, %v45_v27  ;;  %v1252_v33 = vcombine.high %v38_v28, %v46_v24 }
  0xc5   :  { %1083 = vmatmul.mubr.bf16.vlgmr.msra.gmra.mxu0 %v1229_v21  ;;  %1124 = vmatmul.mubr.bf16.vlgmr.msra.gmra.mxu1 %v1231_v39  ;;  %v1235_v21 = vcombine.low %v1794_v29, %v1799_v30 }
  0xc6   :  { %1133 = vmatpush1.bf16.xpose.msra.mxu0 %v1361_v40  ;;  %1174 = vmatpush1.bf16.xpose.msra.mxu1 %v1363_v41 }
  0xc7   :  { %1134 = vmatprep.subr.bf16.mxu0 %v1346_v42  ;;  %1175 = vmatprep.subr.bf16.mxu1 %v1348_v43 }
  0xc8   :  { %1164 = vmatprep.mubr.bf16.mxu0 %v1234_v44  ;;  %1205 = vmatprep.mubr.bf16.mxu1 %v1236_v17 }
  0xce   :  { %1135 = vmatpush1.bf16.xpose.msra.mxu0 %v1345_v48  ;;  %1176 = vmatpush1.bf16.xpose.msra.mxu1 %v1347_v49 }
  0xcf   :  { %1136 = vmatprep.subr.bf16.mxu0 %v1330_v50  ;;  %1177 = vmatprep.subr.bf16.mxu1 %v1332_v51 }
  0xd6   :  { %1137 = vmatpush1.bf16.xpose.msra.mxu0 %v1329_v56  ;;  %1178 = vmatpush1.bf16.xpose.msra.mxu1 %v1331_v57 }
  0xd7   :  { %1138 = vmatprep.subr.bf16.mxu0 %v1314_v58  ;;  %1179 = vmatprep.subr.bf16.mxu1 %v1316_v59 }
  0xde   :  { %1139 = vmatpush1.bf16.xpose.msra.mxu0 %v1313_v0  ;;  %1180 = vmatpush1.bf16.xpose.msra.mxu1 %v1315_v1 }
  0xdf   :  { %1140 = vmatprep.subr.bf16.mxu0 %v1298_v2  ;;  %1181 = vmatprep.subr.bf16.mxu1 %v1300_v3 }
  0xe6   :  { %1141 = vmatpush1.bf16.xpose.msra.mxu0 %v1297_v8  ;;  %1182 = vmatpush1.bf16.xpose.msra.mxu1 %v1299_v9 }
  0xe7   :  { %1142 = vmatprep.subr.bf16.mxu0 %v1282_v10  ;;  %1183 = vmatprep.subr.bf16.mxu1 %v1284_v11 }
  0xee   :  { %1143 = vmatpush1.bf16.xpose.msra.mxu0 %v1281_v16  ;;  %1184 = vmatpush1.bf16.xpose.msra.mxu1 %v1283_v19 }
  0xef   :  { %1144 = vmatprep.subr.bf16.mxu0 %v1266_v20  ;;  %1185 = vmatprep.subr.bf16.mxu1 %v1268_v23 }
  0xf6   :  { %1145 = vmatpush1.bf16.xpose.msra.mxu0 %v1265_v25  ;;  %1186 = vmatpush1.bf16.xpose.msra.mxu1 %v1267_v31 }
  0xf7   :  { %1146 = vmatprep.subr.bf16.mxu0 %v1250_v32  ;;  %1187 = vmatprep.subr.bf16.mxu1 %v1252_v33 }
  0xfe   :  { %1147 = vmatpush1.bf16.xpose.msra.mxu0 %v1249_v34  ;;  %1188 = vmatpush1.bf16.xpose.msra.mxu1 %v1251_v35 }
 0x105   :  { %v920_v39 = vpop.f32.mrf.mxu0  ;;  %1165 = vmatmul.mubr.bf16.vlgmr.msra.gmra.mxu0 %v1233_v36  ;;  %v961_v41 = vpop.f32.mrf.mxu1  ;;  %1206 = vmatmul.mubr.bf16.vlgmr.msra.gmra.mxu1 %v1235_v21 }
 0x106   :  { %v921_v40 = vadd.f32 %v1220_v22, %v920_v39 }
 0x107   :  { %v922_v42 = vpop.f32.mrf.mxu0  ;;  %v963_v44 = vpop.f32.mrf.mxu1 }
 0x108   :  { %v962_v43 = vadd.f32 %v961_v41, %v921_v40 }
 0x109   :  { %v923_v17 = vpop.f32.mrf.mxu0  ;;  %v964_v45 = vpop.f32.mrf.mxu1 }
 0x10a   :  { %v924_v18 = vadd.f32 %v1220_v22, %v923_v17 }
 0x10b   :  { %v925_v46 = vpop.f32.mrf.mxu0  ;;  %v966_v38 = vpop.f32.mrf.mxu1 }
 0x10c   :  { %v965_v37 = vadd.f32 %v964_v45, %v924_v18 }
 0x145   :  { %v1002_v47 = vpop.f32.mrf.mxu0  ;;  %v1043_v30 = vpop.f32.mrf.mxu1 }
 0x146   :  { %v1003_v29 = vadd.f32 %v1002_v47, %v962_v43 }
 0x147   :  { %v1004_v48 = vpop.f32.mrf.mxu0  ;;  %v1045_v50 = vpop.f32.mrf.mxu1 }
 0x148   :  { %v1044_v49 = vadd.f32 %v1043_v30, %v1003_v29 }
 0x149   :  { %v1005_v51 = vpop.f32.mrf.mxu0  ;;  %v1046_v53 = vpop.f32.mrf.mxu1 }
 0x14a   :  { %v1006_v52 = vadd.f32 %v1005_v51, %v965_v37 }
 0x14b   :  { %v1007_v54 = vpop.f32.mrf.mxu0  ;;  %v1048_v56 = vpop.f32.mrf.mxu1 }
 0x14c   :  { %v1047_v55 = vadd.f32 %v1046_v53, %v1006_v52 }
 0x185   :  { %v1084_v57 = vpop.f32.mrf.mxu0  ;;  %v1125_v58 = vpop.f32.mrf.mxu1 }
 0x186   :  { %v1085_v1 = vadd.f32 %v1084_v57, %v1044_v49 }
 0x187   :  { %v1086_v59 = vpop.f32.mrf.mxu0  ;;  %v1127_v60 = vpop.f32.mrf.mxu1 }
 0x188   :  { %v1126_v2 = vadd.f32 %v1125_v58, %v1085_v1 }
 0x189   :  { %v1087_v61 = vpop.f32.mrf.mxu0  ;;  %v1128_v62 = vpop.f32.mrf.mxu1 }
 0x18a   :  { %v1088_v3 = vadd.f32 %v1087_v61, %v1047_v55 }
 0x18b   :  { %v1089_v63 = vpop.f32.mrf.mxu0  ;;  %v1130_v0 = vpop.f32.mrf.mxu1 }
 0x18c   :  { %v1129_v8 = vadd.f32 %v1128_v62, %v1088_v3 }
 0x1c5   :  { %v1166_v4 = vpop.f32.mrf.mxu0  ;;  %v1207_v6 = vpop.f32.mrf.mxu1 }
 0x1c6   :  { %v1167_v5 = vadd.f32 %v1166_v4, %v1126_v2 }
 0x1c7   :  { %v1168_v7 = vpop.f32.mrf.mxu0  ;;  %v1209_v10 = vpop.f32.mrf.mxu1 }
 0x1c8   :  { %v1208_v9 = vadd.f32 %v1207_v6, %v1167_v5 }
 0x1c9   :  { %v1169_v11 = vpop.f32.mrf.mxu0  ;;  %v1210_v13 = vpop.f32.mrf.mxu1 }
 0x1ca   :  { %1214 = vst [vmem:[%s1893_s3] sm:$0xff] %v1208_v9  ;;  %v1170_v12 = vadd.f32 %v1169_v11, %v1129_v8 }
 0x1cb   :  { %v1171_v14 = vpop.f32.mrf.mxu0  ;;  %v1212_v16 = vpop.f32.mrf.mxu1 }
 0x1cc   :  { %v1211_v15 = vadd.f32 %v1210_v13, %v1170_v12 }
 0x1ce   :  { %1215 = vst [vmem:[%s1893_s3 + $0x8] sm:$0xff] %v1211_v15 }

</bundles_post_ra>
